<compile_context>
chip_gen: v6e
topology: v6e:2x2x1
jax: 0.10.0
libtpu: 0.0.40
codegen_flags: <defaults>
</compile_context>

<pallas_src>
import functools

import jax
import jax.numpy as jnp
from jax import lax
from jax.experimental import pallas as pl
from jax.experimental.pallas import tpu as pltpu


def _attention_kernel(x_ref, wq_ref, wk_ref, wv_ref, wp_ref, bproj_ref,
                      o_ref, k_scr, v_scr, ctx_scr,
                      *, num_heads, seq_len, q_tile):
    """One (batch, q-tile) grid step.

    x_ref    : (1, Npad, C)  bf16  full-sequence tokens of batch b
    wq_ref   : (C, C)        bf16  Wq^T with 1/sqrt(hd) folded in
    wk_ref   : (C, C)        bf16  Wk^T
    wv_ref   : (C, C)        bf16  Wv^T
    wp_ref   : (C, Cpad)     bf16  Wproj^T, output channels lane-padded
    bproj_ref: (1, Cpad)     f32   proj bias (lane-padded)
    o_ref    : (1, TQ, Cpad) f32   output tile
    k_scr/v_scr : (Npad, C)  bf16  per-batch K/V projections (scratch)
    ctx_scr  : (TQ, C)       bf16  per-tile head-context assembly (scratch)
    """
    qi = pl.program_id(1)
    n_pad, c = k_scr.shape
    hd = c // num_heads

    # K/V projection once per batch (q axis is sequential / "arbitrary").
    # Lane-dense (Npad,C) @ (C,C) bf16 matmuls with f32 MXU accumulation.
    @pl.when(qi == 0)
    def _():
        xs = x_ref[0]                                              # (Npad, C)
        k_scr[...] = jnp.dot(
            xs, wk_ref[...],
            preferred_element_type=jnp.float32).astype(jnp.bfloat16)
        v_scr[...] = jnp.dot(
            xs, wv_ref[...],
            preferred_element_type=jnp.float32).astype(jnp.bfloat16)

    # Query tile sliced out of the already-resident full-sequence block
    # (no separate q-tile DMA). Scale is folded into wq.
    q_off = pl.multiple_of(qi * q_tile, q_tile)
    xq = x_ref[0, pl.ds(q_off, q_tile), :]                         # (TQ, C)
    q_all = jnp.dot(xq, wq_ref[...],
                    preferred_element_type=jnp.float32).astype(jnp.bfloat16)

    # src_mask(N, p=0): -inf on the diagonal. Also mask padded key columns
    # when the sequence was padded up to a tile multiple.
    rows = lax.broadcasted_iota(jnp.int32, (q_tile, n_pad), 0) + q_off
    cols = lax.broadcasted_iota(jnp.int32, (q_tile, n_pad), 1)
    masked = rows == cols
    if n_pad != seq_len:
        masked = jnp.logical_or(masked, cols >= seq_len)

    k_all = k_scr[...]
    v_all = v_scr[...]

    # Per-head attention (QK^T -> softmax -> PV). Static Python loop with
    # static lane slices; fine for typical ViT head counts.
    for h in range(num_heads):
        lo, hi = h * hd, (h + 1) * hd
        qh = q_all[:, lo:hi]                                       # (TQ, hd)
        kh = k_all[:, lo:hi]                                       # (Npad, hd)
        vh = v_all[:, lo:hi]                                       # (Npad, hd)

        # QK^T without materializing a transpose (contract last axes).
        s = lax.dot_general(qh, kh,
                            dimension_numbers=(((1,), (1,)), ((), ())),
                            preferred_element_type=jnp.float32)    # (TQ, Npad)
        s = jnp.where(masked, -jnp.inf, s)

        # Numerically-stable softmax in f32.
        m = jnp.max(s, axis=-1, keepdims=True)
        e = jnp.exp(s - m)
        denom = jnp.sum(e, axis=-1, keepdims=True)

        # Normalize after PV: scales a (TQ,hd) tensor instead of (TQ,Npad);
        # divide goes to the EUP slot.
        ctx = jnp.dot(e.astype(jnp.bfloat16), vh,
                      preferred_element_type=jnp.float32)          # (TQ, hd)
        ctx = ctx * pl.reciprocal(denom, approx=True)
        ctx_scr[:, lo:hi] = ctx.astype(jnp.bfloat16)

    # Single lane-dense output projection over the assembled head contexts.
    out = jnp.dot(ctx_scr[...], wp_ref[...],
                  preferred_element_type=jnp.float32)              # (TQ, Cpad)
    o_ref[0] = out + bproj_ref[...]


def prepare_attention_params(w_qkv, w_proj, b_proj, *, num_heads):
    """One-time parameter prep: fused (in,out)-layout bf16 weights.

    w_qkv : (3C, C) PyTorch Linear weight (out, in), rows ordered [q | k | v].
    w_proj: (C, C)  PyTorch Linear weight (out, in).
    b_proj: (C,)
    """
    three_c, c = w_qkv.shape
    assert three_c == 3 * c and c % num_heads == 0
    hd = c // num_heads
    scale = hd ** (-0.5)
    c_pad = ((c + 127) // 128) * 128            # lane-dense output width

    wq = (w_qkv[:c].astype(jnp.float32) * scale).T.astype(jnp.bfloat16)  # (C,C)
    wk = w_qkv[c:2 * c].T.astype(jnp.bfloat16)                           # (C,C)
    wv = w_qkv[2 * c:].T.astype(jnp.bfloat16)                            # (C,C)

    wp = w_proj.T.astype(jnp.float32)                                    # (C,C)
    b = b_proj.astype(jnp.float32)
    if c_pad != c:
        wp = jnp.pad(wp, ((0, 0), (0, c_pad - c)))
        b = jnp.pad(b, (0, c_pad - c))
    wp = wp.astype(jnp.bfloat16)                                         # (C,Cpad)
    b = b.reshape(1, c_pad)
    return wq, wk, wv, wp, b


def attention_forward(x, params, *, num_heads):
    """x: (B, N, C) float32; params from prepare_attention_params."""
    wq, wk, wv, wp, b2 = params
    B, N, C = x.shape
    assert C % num_heads == 0
    assert N >= 2, "diagonal src_mask needs N >= 2 (else a fully-masked row)"
    c_pad = wp.shape[1]

    # q tiling: one tile if N <= 256 (fills the 256-wide MXU M dim on
    # v6e/v7x), else 256-row tiles. Pad N so tiles are exact; padded key
    # columns are masked in-kernel and padded rows sliced off afterwards.
    TQ = N if N <= 256 else 256
    n_q = pl.cdiv(N, TQ)
    n_pad = n_q * TQ

    x_bf = x.astype(jnp.bfloat16)
    if n_pad != N:
        x_bf = jnp.pad(x_bf, ((0, 0), (0, n_pad - N), (0, 0)))

    # Scoped-VMEM budget: x block + out block (double-buffered), resident
    # weights, K/V/ctx scratch, and headroom for logits / f32 temporaries.
    # Clamped below v7x's 64 MiB physical per-core VMEM.
    blk_in = 2 * n_pad * C * 2
    blk_out = 2 * TQ * c_pad * 4
    wts = (3 * C * C + C * c_pad) * 2 + c_pad * 4
    scr = 2 * n_pad * C * 2 + TQ * C * 2
    tmp = 4 * TQ * n_pad * 4 + 2 * TQ * c_pad * 4 + 4 * n_pad * C * 4
    vmem_limit = int(min(48 * 2 ** 20,
                         max(8 * 2 ** 20,
                             2 * (blk_in + blk_out + 2 * wts + scr + tmp))))

    kernel = functools.partial(_attention_kernel, num_heads=num_heads,
                               seq_len=N, q_tile=TQ)

    def build_and_run(single_buffer_weights):
        def wspec(shape):
            # Grid-invariant weights: single-buffer (double-buffering buys
            # nothing for a constant index_map, only wastes VMEM).
            if single_buffer_weights:
                return pl.BlockSpec(shape, lambda b_, q_: (0,) * len(shape),
                                    pipeline_mode=pl.Buffered(1))
            return pl.BlockSpec(shape, lambda b_, q_: (0,) * len(shape))

        out = pl.pallas_call(
            kernel,
            out_shape=jax.ShapeDtypeStruct((B, n_pad, c_pad), jnp.float32),
            grid_spec=pltpu.PrefetchScalarGridSpec(
                num_scalar_prefetch=0,
                grid=(B, n_q),
                in_specs=[
                    pl.BlockSpec((1, n_pad, C), lambda b_, q_: (b_, 0, 0)),
                    wspec((C, C)),            # Wq (scale folded in)
                    wspec((C, C)),            # Wk
                    wspec((C, C)),            # Wv
                    wspec((C, c_pad)),        # Wproj (lane-padded out dim)
                    wspec((1, c_pad)),        # proj bias
                ],
                out_specs=pl.BlockSpec((1, TQ, c_pad),
                                       lambda b_, q_: (b_, q_, 0)),
                scratch_shapes=[
                    pltpu.VMEM((n_pad, C), jnp.bfloat16),   # K_all
                    pltpu.VMEM((n_pad, C), jnp.bfloat16),   # V_all
                    pltpu.VMEM((TQ, C), jnp.bfloat16),      # head-ctx assembly
                ],
            ),
            compiler_params=pltpu.CompilerParams(
                dimension_semantics=("parallel", "arbitrary"),
                vmem_limit_bytes=vmem_limit),
        )(x_bf, wq, wk, wv, wp, b2)
        return jax.block_until_ready(out)

    try:
        out = build_and_run(True)
    except Exception:
        # Fallback if this jax version rejects pipeline_mode=pl.Buffered(1).
        out = build_and_run(False)

    return out[:, :N, :C]


def _reference(x, w_qkv, w_proj, b_proj, num_heads):
    """Pure-JAX f32 reference mirroring the PyTorch forward exactly."""
    B, N, C = x.shape
    hd = C // num_heads
    scale = hd ** (-0.5)
    mask = jnp.where(jnp.eye(N, dtype=bool),
                     jnp.float32(-jnp.inf), jnp.float32(0.0))
    qkv = jnp.einsum('bnc,oc->bno', x, w_qkv)                     # (B,N,3C)
    qkv = qkv.reshape(B, N, 3, num_heads, hd).transpose(2, 0, 3, 1, 4)
    q, k, v = qkv[0], qkv[1], qkv[2]                              # (B,H,N,hd)
    attn = jnp.einsum('bhqd,bhkd->bhqk', q, k) * scale + mask
    attn = jax.nn.softmax(attn, axis=-1)
    out = jnp.einsum('bhqk,bhkd->bhqd', attn, v)
    out = out.transpose(0, 2, 1, 3).reshape(B, N, C)
    return jnp.einsum('bnc,oc->bno', out, w_proj) + b_proj


if __name__ == "__main__":
    B, N, C = 2, 8, 32
    NUM_HEADS = 8   # head_dim = 4

    key = jax.random.PRNGKey(0)
    kx, kq, kp, kb = jax.random.split(key, 4)

    x = jax.random.normal(kx, (B, N, C), dtype=jnp.float32)
    # PyTorch Linear stores weight as (out, in).
    w_qkv = jax.random.normal(kq, (3 * C, C), dtype=jnp.float32) * 0.05
    w_proj = jax.random.normal(kp, (C, C), dtype=jnp.float32) * 0.05
    b_proj = jax.random.normal(kb, (C,), dtype=jnp.float32) * 0.05

    params = prepare_attention_params(w_qkv, w_proj, b_proj,
                                      num_heads=NUM_HEADS)
    out = attention_forward(x, params, num_heads=NUM_HEADS)
    out = jax.block_until_ready(out)

    ref = _reference(x, w_qkv, w_proj, b_proj, NUM_HEADS)
    assert out.shape == (B, N, C)
    # bf16 MXU operands + approx reciprocal -> looser tolerance than pure f32.
    assert jnp.allclose(out, ref, atol=2e-2, rtol=2e-2), "mismatch vs reference"

    print("KERNEL_OK")
</pallas_src>

<mosaic_0001>
module attributes {stable_mosaic.version = 11 : i64} {
  func.func @_attention_kernel(%arg0: i32, %arg1: i32, %arg2: memref<1x8x32xbf16, #tpu.memory_space<vmem>>, %arg3: memref<32x32xbf16, #tpu.memory_space<vmem>>, %arg4: memref<32x32xbf16, #tpu.memory_space<vmem>>, %arg5: memref<32x32xbf16, #tpu.memory_space<vmem>>, %arg6: memref<32x128xbf16, #tpu.memory_space<vmem>>, %arg7: memref<1x128xf32, #tpu.memory_space<vmem>>, %arg8: memref<1x8x128xf32, #tpu.memory_space<vmem>>, %arg9: memref<8x32xbf16, #tpu.memory_space<vmem>>, %arg10: memref<8x32xbf16, #tpu.memory_space<vmem>>, %arg11: memref<8x32xbf16, #tpu.memory_space<vmem>>) attributes {dimension_semantics = [#tpu.dimension_semantics<parallel>, #tpu.dimension_semantics<arbitrary>], iteration_bounds = array<i64: 2, 1>, scalar_prefetch = 0 : i64, scratch_operands = 3 : i64, tpu.core_type = #tpu.core_type<tc>, window_params = [{transform_indices = @transform_0, window_bounds = array<i64: 1, 8, 32>}, {pipeline_mode = #tpu.pipeline_mode<synchronous>, transform_indices = @transform_1, window_bounds = array<i64: 32, 32>}, {pipeline_mode = #tpu.pipeline_mode<synchronous>, transform_indices = @transform_2, window_bounds = array<i64: 32, 32>}, {pipeline_mode = #tpu.pipeline_mode<synchronous>, transform_indices = @transform_3, window_bounds = array<i64: 32, 32>}, {pipeline_mode = #tpu.pipeline_mode<synchronous>, transform_indices = @transform_4, window_bounds = array<i64: 32, 128>}, {pipeline_mode = #tpu.pipeline_mode<synchronous>, transform_indices = @transform_5, window_bounds = array<i64: 1, 128>}, {transform_indices = @transform_6, window_bounds = array<i64: 1, 8, 128>}]} {
    %c0_i32 = arith.constant 0 : i32
    %0 = arith.cmpi eq, %arg1, %c0_i32 : i32
    %1 = arith.extui %0 : i1 to i32
    %c0_i32_0 = arith.constant 0 : i32
    %2 = arith.cmpi ne, %1, %c0_i32_0 : i32
    scf.if %2 {
      %c0_67 = arith.constant 0 : index
      %c0_68 = arith.constant 0 : index
      %c0_69 = arith.constant 0 : index
      %187 = vector.load %arg2[%c0_67, %c0_68, %c0_69] : memref<1x8x32xbf16, #tpu.memory_space<vmem>>, vector<1x8x32xbf16>
      %188 = vector.shape_cast %187 : vector<1x8x32xbf16> to vector<8x32xbf16>
      %c0_70 = arith.constant 0 : index
      %c0_71 = arith.constant 0 : index
      %189 = vector.load %arg4[%c0_70, %c0_71] : memref<32x32xbf16, #tpu.memory_space<vmem>>, vector<32x32xbf16>
      %cst_72 = arith.constant dense<0.000000e+00> : vector<8x32xf32>
      %190 = tpu.matmul %188, %189, %cst_72 {dimension_numbers = #tpu.dot_dimension_numbers<[1], [0], [0], [1], [0, 0, 1, 1], [], []>} : vector<8x32xbf16>, vector<32x32xbf16>, vector<8x32xf32> -> vector<8x32xf32>
      %191 = arith.truncf %190 : vector<8x32xf32> to vector<8x32xbf16>
      %c0_73 = arith.constant 0 : index
      %c0_74 = arith.constant 0 : index
      %192 = vector.load %arg9[%c0_73, %c0_74] : memref<8x32xbf16, #tpu.memory_space<vmem>>, vector<8x32xbf16>
      tpu.vector_store %arg9[%c0_73, %c0_74], %191 {strides = array<i32>} : memref<8x32xbf16, #tpu.memory_space<vmem>>, vector<8x32xbf16>,
      %c0_75 = arith.constant 0 : index
      %c0_76 = arith.constant 0 : index
      %193 = vector.load %arg5[%c0_75, %c0_76] : memref<32x32xbf16, #tpu.memory_space<vmem>>, vector<32x32xbf16>
      %cst_77 = arith.constant dense<0.000000e+00> : vector<8x32xf32>
      %194 = tpu.matmul %188, %193, %cst_77 {dimension_numbers = #tpu.dot_dimension_numbers<[1], [0], [0], [1], [0, 0, 1, 1], [], []>} : vector<8x32xbf16>, vector<32x32xbf16>, vector<8x32xf32> -> vector<8x32xf32>
      %195 = arith.truncf %194 : vector<8x32xf32> to vector<8x32xbf16>
      %c0_78 = arith.constant 0 : index
      %c0_79 = arith.constant 0 : index
      %196 = vector.load %arg10[%c0_78, %c0_79] : memref<8x32xbf16, #tpu.memory_space<vmem>>, vector<8x32xbf16>
      tpu.vector_store %arg10[%c0_78, %c0_79], %195 {strides = array<i32>} : memref<8x32xbf16, #tpu.memory_space<vmem>>, vector<8x32xbf16>,
    } else {
    }
    %c8_i32 = arith.constant 8 : i32
    %3 = arith.muli %arg1, %c8_i32 : i32
    %4 = tpu.assume_multiple %3, 8 : i32
    %c0 = arith.constant 0 : index
    %5 = arith.index_cast %4 : i32 to index
    %c0_1 = arith.constant 0 : index
    %6 = vector.load %arg2[%c0, %5, %c0_1] : memref<1x8x32xbf16, #tpu.memory_space<vmem>>, vector<1x8x32xbf16>
    %7 = vector.shape_cast %6 : vector<1x8x32xbf16> to vector<8x32xbf16>
    %c0_2 = arith.constant 0 : index
    %c0_3 = arith.constant 0 : index
    %8 = vector.load %arg3[%c0_2, %c0_3] : memref<32x32xbf16, #tpu.memory_space<vmem>>, vector<32x32xbf16>
    %cst = arith.constant dense<0.000000e+00> : vector<8x32xf32>
    %9 = tpu.matmul %7, %8, %cst {dimension_numbers = #tpu.dot_dimension_numbers<[1], [0], [0], [1], [0, 0, 1, 1], [], []>} : vector<8x32xbf16>, vector<32x32xbf16>, vector<8x32xf32> -> vector<8x32xf32>
    %10 = arith.truncf %9 : vector<8x32xf32> to vector<8x32xbf16>
    %11 = tpu.iota {dimensions = array<i32: 0>} : vector<8x8xi32>
    %12 = vector.broadcast %4 : i32 to vector<8x8xi32>
    %13 = arith.addi %11, %12 : vector<8x8xi32>
    %14 = tpu.iota {dimensions = array<i32: 1>} : vector<8x8xi32>
    %15 = arith.cmpi eq, %13, %14 : vector<8x8xi32>
    %c0_4 = arith.constant 0 : index
    %c0_5 = arith.constant 0 : index
    %16 = vector.load %arg9[%c0_4, %c0_5] : memref<8x32xbf16, #tpu.memory_space<vmem>>, vector<8x32xbf16>
    %c0_6 = arith.constant 0 : index
    %c0_7 = arith.constant 0 : index
    %17 = vector.load %arg10[%c0_6, %c0_7] : memref<8x32xbf16, #tpu.memory_space<vmem>>, vector<8x32xbf16>
    %18 = vector.extract_strided_slice %10 {offsets = [0, 0], sizes = [8, 4], strides = [1, 1]} : vector<8x32xbf16> to vector<8x4xbf16>
    %19 = vector.extract_strided_slice %16 {offsets = [0, 0], sizes = [8, 4], strides = [1, 1]} : vector<8x32xbf16> to vector<8x4xbf16>
    %20 = vector.extract_strided_slice %17 {offsets = [0, 0], sizes = [8, 4], strides = [1, 1]} : vector<8x32xbf16> to vector<8x4xbf16>
    %cst_8 = arith.constant dense<0.000000e+00> : vector<8x8xf32>
    %21 = tpu.matmul %18, %19, %cst_8 {dimension_numbers = #tpu.dot_dimension_numbers<[1], [1], [0], [0], [0, 0, 1, 0], [], []>} : vector<8x4xbf16>, vector<8x4xbf16>, vector<8x8xf32> -> vector<8x8xf32>
    %cst_9 = arith.constant 0xFF800000 : f32
    %22 = vector.broadcast %cst_9 : f32 to vector<8x8xf32>
    %23 = arith.select %15, %22, %21 : vector<8x8xi1>, vector<8x8xf32>
    %cst_10 = arith.constant dense<0xFF800000> : vector<8xf32>
    %24 = vector.multi_reduction <maximumf>, %23, %cst_10 [1] : vector<8x8xf32> to vector<8xf32>
    %25 = vector.shape_cast %24 : vector<8xf32> to vector<8x1xf32>
    %26 = vector.broadcast %25 : vector<8x1xf32> to vector<8x8xf32>
    %27 = arith.subf %23, %26 : vector<8x8xf32>
    %28 = math.exp %27 : vector<8x8xf32>
    %cst_11 = arith.constant dense<0.000000e+00> : vector<8xf32>
    %29 = vector.multi_reduction <add>, %28, %cst_11 [1] : vector<8x8xf32> to vector<8xf32>
    %30 = vector.shape_cast %29 : vector<8xf32> to vector<8x1xf32>
    %31 = arith.truncf %28 : vector<8x8xf32> to vector<8x8xbf16>
    %cst_12 = arith.constant dense<0.000000e+00> : vector<8x4xf32>
    %32 = tpu.matmul %31, %20, %cst_12 {dimension_numbers = #tpu.dot_dimension_numbers<[1], [0], [0], [1], [0, 0, 1, 1], [], []>} : vector<8x8xbf16>, vector<8x4xbf16>, vector<8x4xf32> -> vector<8x4xf32>
    %33 = tpu.reciprocal %30 {approx = true} : vector<8x1xf32> -> vector<8x1xf32>
    %34 = vector.broadcast %33 : vector<8x1xf32> to vector<8x4xf32>
    %35 = arith.mulf %32, %34 : vector<8x4xf32>
    %36 = arith.truncf %35 : vector<8x4xf32> to vector<8x4xbf16>
    %c0_13 = arith.constant 0 : index
    %c0_14 = arith.constant 0 : index
    %37 = vector.load %arg11[%c0_13, %c0_14] : memref<8x32xbf16, #tpu.memory_space<vmem>>, vector<8x4xbf16>
    tpu.vector_store %arg11[%c0_13, %c0_14], %36 {strides = array<i32>} : memref<8x32xbf16, #tpu.memory_space<vmem>>, vector<8x4xbf16>,
    %38 = vector.extract_strided_slice %10 {offsets = [0, 4], sizes = [8, 4], strides = [1, 1]} : vector<8x32xbf16> to vector<8x4xbf16>
    %39 = vector.extract_strided_slice %16 {offsets = [0, 4], sizes = [8, 4], strides = [1, 1]} : vector<8x32xbf16> to vector<8x4xbf16>
    %40 = vector.extract_strided_slice %17 {offsets = [0, 4], sizes = [8, 4], strides = [1, 1]} : vector<8x32xbf16> to vector<8x4xbf16>
    %cst_15 = arith.constant dense<0.000000e+00> : vector<8x8xf32>
    %41 = tpu.matmul %38, %39, %cst_15 {dimension_numbers = #tpu.dot_dimension_numbers<[1], [1], [0], [0], [0, 0, 1, 0], [], []>} : vector<8x4xbf16>, vector<8x4xbf16>, vector<8x8xf32> -> vector<8x8xf32>
    %cst_16 = arith.constant 0xFF800000 : f32
    %42 = vector.broadcast %cst_16 : f32 to vector<8x8xf32>
    %43 = arith.select %15, %42, %41 : vector<8x8xi1>, vector<8x8xf32>
    %cst_17 = arith.constant dense<0xFF800000> : vector<8xf32>
    %44 = vector.multi_reduction <maximumf>, %43, %cst_17 [1] : vector<8x8xf32> to vector<8xf32>
    %45 = vector.shape_cast %44 : vector<8xf32> to vector<8x1xf32>
    %46 = vector.broadcast %45 : vector<8x1xf32> to vector<8x8xf32>
    %47 = arith.subf %43, %46 : vector<8x8xf32>
    %48 = math.exp %47 : vector<8x8xf32>
    %cst_18 = arith.constant dense<0.000000e+00> : vector<8xf32>
    %49 = vector.multi_reduction <add>, %48, %cst_18 [1] : vector<8x8xf32> to vector<8xf32>
    %50 = vector.shape_cast %49 : vector<8xf32> to vector<8x1xf32>
    %51 = arith.truncf %48 : vector<8x8xf32> to vector<8x8xbf16>
    %cst_19 = arith.constant dense<0.000000e+00> : vector<8x4xf32>
    %52 = tpu.matmul %51, %40, %cst_19 {dimension_numbers = #tpu.dot_dimension_numbers<[1], [0], [0], [1], [0, 0, 1, 1], [], []>} : vector<8x8xbf16>, vector<8x4xbf16>, vector<8x4xf32> -> vector<8x4xf32>
    %53 = tpu.reciprocal %50 {approx = true} : vector<8x1xf32> -> vector<8x1xf32>
    %54 = vector.broadcast %53 : vector<8x1xf32> to vector<8x4xf32>
    %55 = arith.mulf %52, %54 : vector<8x4xf32>
    %56 = arith.truncf %55 : vector<8x4xf32> to vector<8x4xbf16>
    %c0_20 = arith.constant 0 : index
    %c4 = arith.constant 4 : index
    %57 = vector.load %arg11[%c0_20, %c4] : memref<8x32xbf16, #tpu.memory_space<vmem>>, vector<8x4xbf16>
    tpu.vector_store %arg11[%c0_20, %c4], %56 {strides = array<i32>} : memref<8x32xbf16, #tpu.memory_space<vmem>>, vector<8x4xbf16>,
    %58 = vector.extract_strided_slice %10 {offsets = [0, 8], sizes = [8, 4], strides = [1, 1]} : vector<8x32xbf16> to vector<8x4xbf16>
    %59 = vector.extract_strided_slice %16 {offsets = [0, 8], sizes = [8, 4], strides = [1, 1]} : vector<8x32xbf16> to vector<8x4xbf16>
    %60 = vector.extract_strided_slice %17 {offsets = [0, 8], sizes = [8, 4], strides = [1, 1]} : vector<8x32xbf16> to vector<8x4xbf16>
    %cst_21 = arith.constant dense<0.000000e+00> : vector<8x8xf32>
    %61 = tpu.matmul %58, %59, %cst_21 {dimension_numbers = #tpu.dot_dimension_numbers<[1], [1], [0], [0], [0, 0, 1, 0], [], []>} : vector<8x4xbf16>, vector<8x4xbf16>, vector<8x8xf32> -> vector<8x8xf32>
    %cst_22 = arith.constant 0xFF800000 : f32
    %62 = vector.broadcast %cst_22 : f32 to vector<8x8xf32>
    %63 = arith.select %15, %62, %61 : vector<8x8xi1>, vector<8x8xf32>
    %cst_23 = arith.constant dense<0xFF800000> : vector<8xf32>
    %64 = vector.multi_reduction <maximumf>, %63, %cst_23 [1] : vector<8x8xf32> to vector<8xf32>
    %65 = vector.shape_cast %64 : vector<8xf32> to vector<8x1xf32>
    %66 = vector.broadcast %65 : vector<8x1xf32> to vector<8x8xf32>
    %67 = arith.subf %63, %66 : vector<8x8xf32>
    %68 = math.exp %67 : vector<8x8xf32>
    %cst_24 = arith.constant dense<0.000000e+00> : vector<8xf32>
    %69 = vector.multi_reduction <add>, %68, %cst_24 [1] : vector<8x8xf32> to vector<8xf32>
    %70 = vector.shape_cast %69 : vector<8xf32> to vector<8x1xf32>
    %71 = arith.truncf %68 : vector<8x8xf32> to vector<8x8xbf16>
    %cst_25 = arith.constant dense<0.000000e+00> : vector<8x4xf32>
    %72 = tpu.matmul %71, %60, %cst_25 {dimension_numbers = #tpu.dot_dimension_numbers<[1], [0], [0], [1], [0, 0, 1, 1], [], []>} : vector<8x8xbf16>, vector<8x4xbf16>, vector<8x4xf32> -> vector<8x4xf32>
    %73 = tpu.reciprocal %70 {approx = true} : vector<8x1xf32> -> vector<8x1xf32>
    %74 = vector.broadcast %73 : vector<8x1xf32> to vector<8x4xf32>
    %75 = arith.mulf %72, %74 : vector<8x4xf32>
    %76 = arith.truncf %75 : vector<8x4xf32> to vector<8x4xbf16>
    %c0_26 = arith.constant 0 : index
    %c8 = arith.constant 8 : index
    %77 = vector.load %arg11[%c0_26, %c8] : memref<8x32xbf16, #tpu.memory_space<vmem>>, vector<8x4xbf16>
    tpu.vector_store %arg11[%c0_26, %c8], %76 {strides = array<i32>} : memref<8x32xbf16, #tpu.memory_space<vmem>>, vector<8x4xbf16>,
    %78 = vector.extract_strided_slice %10 {offsets = [0, 12], sizes = [8, 4], strides = [1, 1]} : vector<8x32xbf16> to vector<8x4xbf16>
    %79 = vector.extract_strided_slice %16 {offsets = [0, 12], sizes = [8, 4], strides = [1, 1]} : vector<8x32xbf16> to vector<8x4xbf16>
    %80 = vector.extract_strided_slice %17 {offsets = [0, 12], sizes = [8, 4], strides = [1, 1]} : vector<8x32xbf16> to vector<8x4xbf16>
    %cst_27 = arith.constant dense<0.000000e+00> : vector<8x8xf32>
    %81 = tpu.matmul %78, %79, %cst_27 {dimension_numbers = #tpu.dot_dimension_numbers<[1], [1], [0], [0], [0, 0, 1, 0], [], []>} : vector<8x4xbf16>, vector<8x4xbf16>, vector<8x8xf32> -> vector<8x8xf32>
    %cst_28 = arith.constant 0xFF800000 : f32
    %82 = vector.broadcast %cst_28 : f32 to vector<8x8xf32>
    %83 = arith.select %15, %82, %81 : vector<8x8xi1>, vector<8x8xf32>
    %cst_29 = arith.constant dense<0xFF800000> : vector<8xf32>
    %84 = vector.multi_reduction <maximumf>, %83, %cst_29 [1] : vector<8x8xf32> to vector<8xf32>
    %85 = vector.shape_cast %84 : vector<8xf32> to vector<8x1xf32>
    %86 = vector.broadcast %85 : vector<8x1xf32> to vector<8x8xf32>
    %87 = arith.subf %83, %86 : vector<8x8xf32>
    %88 = math.exp %87 : vector<8x8xf32>
    %cst_30 = arith.constant dense<0.000000e+00> : vector<8xf32>
    %89 = vector.multi_reduction <add>, %88, %cst_30 [1] : vector<8x8xf32> to vector<8xf32>
    %90 = vector.shape_cast %89 : vector<8xf32> to vector<8x1xf32>
    %91 = arith.truncf %88 : vector<8x8xf32> to vector<8x8xbf16>
    %cst_31 = arith.constant dense<0.000000e+00> : vector<8x4xf32>
    %92 = tpu.matmul %91, %80, %cst_31 {dimension_numbers = #tpu.dot_dimension_numbers<[1], [0], [0], [1], [0, 0, 1, 1], [], []>} : vector<8x8xbf16>, vector<8x4xbf16>, vector<8x4xf32> -> vector<8x4xf32>
    %93 = tpu.reciprocal %90 {approx = true} : vector<8x1xf32> -> vector<8x1xf32>
    %94 = vector.broadcast %93 : vector<8x1xf32> to vector<8x4xf32>
    %95 = arith.mulf %92, %94 : vector<8x4xf32>
    %96 = arith.truncf %95 : vector<8x4xf32> to vector<8x4xbf16>
    %c0_32 = arith.constant 0 : index
    %c12 = arith.constant 12 : index
    %97 = vector.load %arg11[%c0_32, %c12] : memref<8x32xbf16, #tpu.memory_space<vmem>>, vector<8x4xbf16>
    tpu.vector_store %arg11[%c0_32, %c12], %96 {strides = array<i32>} : memref<8x32xbf16, #tpu.memory_space<vmem>>, vector<8x4xbf16>,
    %98 = vector.extract_strided_slice %10 {offsets = [0, 16], sizes = [8, 4], strides = [1, 1]} : vector<8x32xbf16> to vector<8x4xbf16>
    %99 = vector.extract_strided_slice %16 {offsets = [0, 16], sizes = [8, 4], strides = [1, 1]} : vector<8x32xbf16> to vector<8x4xbf16>
    %100 = vector.extract_strided_slice %17 {offsets = [0, 16], sizes = [8, 4], strides = [1, 1]} : vector<8x32xbf16> to vector<8x4xbf16>
    %cst_33 = arith.constant dense<0.000000e+00> : vector<8x8xf32>
    %101 = tpu.matmul %98, %99, %cst_33 {dimension_numbers = #tpu.dot_dimension_numbers<[1], [1], [0], [0], [0, 0, 1, 0], [], []>} : vector<8x4xbf16>, vector<8x4xbf16>, vector<8x8xf32> -> vector<8x8xf32>
    %cst_34 = arith.constant 0xFF800000 : f32
    %102 = vector.broadcast %cst_34 : f32 to vector<8x8xf32>
    %103 = arith.select %15, %102, %101 : vector<8x8xi1>, vector<8x8xf32>
    %cst_35 = arith.constant dense<0xFF800000> : vector<8xf32>
    %104 = vector.multi_reduction <maximumf>, %103, %cst_35 [1] : vector<8x8xf32> to vector<8xf32>
    %105 = vector.shape_cast %104 : vector<8xf32> to vector<8x1xf32>
    %106 = vector.broadcast %105 : vector<8x1xf32> to vector<8x8xf32>
    %107 = arith.subf %103, %106 : vector<8x8xf32>
    %108 = math.exp %107 : vector<8x8xf32>
    %cst_36 = arith.constant dense<0.000000e+00> : vector<8xf32>
    %109 = vector.multi_reduction <add>, %108, %cst_36 [1] : vector<8x8xf32> to vector<8xf32>
    %110 = vector.shape_cast %109 : vector<8xf32> to vector<8x1xf32>
    %111 = arith.truncf %108 : vector<8x8xf32> to vector<8x8xbf16>
    %cst_37 = arith.constant dense<0.000000e+00> : vector<8x4xf32>
    %112 = tpu.matmul %111, %100, %cst_37 {dimension_numbers = #tpu.dot_dimension_numbers<[1], [0], [0], [1], [0, 0, 1, 1], [], []>} : vector<8x8xbf16>, vector<8x4xbf16>, vector<8x4xf32> -> vector<8x4xf32>
    %113 = tpu.reciprocal %110 {approx = true} : vector<8x1xf32> -> vector<8x1xf32>
    %114 = vector.broadcast %113 : vector<8x1xf32> to vector<8x4xf32>
    %115 = arith.mulf %112, %114 : vector<8x4xf32>
    %116 = arith.truncf %115 : vector<8x4xf32> to vector<8x4xbf16>
    %c0_38 = arith.constant 0 : index
    %c16 = arith.constant 16 : index
    %117 = vector.load %arg11[%c0_38, %c16] : memref<8x32xbf16, #tpu.memory_space<vmem>>, vector<8x4xbf16>
    tpu.vector_store %arg11[%c0_38, %c16], %116 {strides = array<i32>} : memref<8x32xbf16, #tpu.memory_space<vmem>>, vector<8x4xbf16>,
    %118 = vector.extract_strided_slice %10 {offsets = [0, 20], sizes = [8, 4], strides = [1, 1]} : vector<8x32xbf16> to vector<8x4xbf16>
    %119 = vector.extract_strided_slice %16 {offsets = [0, 20], sizes = [8, 4], strides = [1, 1]} : vector<8x32xbf16> to vector<8x4xbf16>
    %120 = vector.extract_strided_slice %17 {offsets = [0, 20], sizes = [8, 4], strides = [1, 1]} : vector<8x32xbf16> to vector<8x4xbf16>
    %cst_39 = arith.constant dense<0.000000e+00> : vector<8x8xf32>
    %121 = tpu.matmul %118, %119, %cst_39 {dimension_numbers = #tpu.dot_dimension_numbers<[1], [1], [0], [0], [0, 0, 1, 0], [], []>} : vector<8x4xbf16>, vector<8x4xbf16>, vector<8x8xf32> -> vector<8x8xf32>
    %cst_40 = arith.constant 0xFF800000 : f32
    %122 = vector.broadcast %cst_40 : f32 to vector<8x8xf32>
    %123 = arith.select %15, %122, %121 : vector<8x8xi1>, vector<8x8xf32>
    %cst_41 = arith.constant dense<0xFF800000> : vector<8xf32>
    %124 = vector.multi_reduction <maximumf>, %123, %cst_41 [1] : vector<8x8xf32> to vector<8xf32>
    %125 = vector.shape_cast %124 : vector<8xf32> to vector<8x1xf32>
    %126 = vector.broadcast %125 : vector<8x1xf32> to vector<8x8xf32>
    %127 = arith.subf %123, %126 : vector<8x8xf32>
    %128 = math.exp %127 : vector<8x8xf32>
    %cst_42 = arith.constant dense<0.000000e+00> : vector<8xf32>
    %129 = vector.multi_reduction <add>, %128, %cst_42 [1] : vector<8x8xf32> to vector<8xf32>
    %130 = vector.shape_cast %129 : vector<8xf32> to vector<8x1xf32>
    %131 = arith.truncf %128 : vector<8x8xf32> to vector<8x8xbf16>
    %cst_43 = arith.constant dense<0.000000e+00> : vector<8x4xf32>
    %132 = tpu.matmul %131, %120, %cst_43 {dimension_numbers = #tpu.dot_dimension_numbers<[1], [0], [0], [1], [0, 0, 1, 1], [], []>} : vector<8x8xbf16>, vector<8x4xbf16>, vector<8x4xf32> -> vector<8x4xf32>
    %133 = tpu.reciprocal %130 {approx = true} : vector<8x1xf32> -> vector<8x1xf32>
    %134 = vector.broadcast %133 : vector<8x1xf32> to vector<8x4xf32>
    %135 = arith.mulf %132, %134 : vector<8x4xf32>
    %136 = arith.truncf %135 : vector<8x4xf32> to vector<8x4xbf16>
    %c0_44 = arith.constant 0 : index
    %c20 = arith.constant 20 : index
    %137 = vector.load %arg11[%c0_44, %c20] : memref<8x32xbf16, #tpu.memory_space<vmem>>, vector<8x4xbf16>
    tpu.vector_store %arg11[%c0_44, %c20], %136 {strides = array<i32>} : memref<8x32xbf16, #tpu.memory_space<vmem>>, vector<8x4xbf16>,
    %138 = vector.extract_strided_slice %10 {offsets = [0, 24], sizes = [8, 4], strides = [1, 1]} : vector<8x32xbf16> to vector<8x4xbf16>
    %139 = vector.extract_strided_slice %16 {offsets = [0, 24], sizes = [8, 4], strides = [1, 1]} : vector<8x32xbf16> to vector<8x4xbf16>
    %140 = vector.extract_strided_slice %17 {offsets = [0, 24], sizes = [8, 4], strides = [1, 1]} : vector<8x32xbf16> to vector<8x4xbf16>
    %cst_45 = arith.constant dense<0.000000e+00> : vector<8x8xf32>
    %141 = tpu.matmul %138, %139, %cst_45 {dimension_numbers = #tpu.dot_dimension_numbers<[1], [1], [0], [0], [0, 0, 1, 0], [], []>} : vector<8x4xbf16>, vector<8x4xbf16>, vector<8x8xf32> -> vector<8x8xf32>
    %cst_46 = arith.constant 0xFF800000 : f32
    %142 = vector.broadcast %cst_46 : f32 to vector<8x8xf32>
    %143 = arith.select %15, %142, %141 : vector<8x8xi1>, vector<8x8xf32>
    %cst_47 = arith.constant dense<0xFF800000> : vector<8xf32>
    %144 = vector.multi_reduction <maximumf>, %143, %cst_47 [1] : vector<8x8xf32> to vector<8xf32>
    %145 = vector.shape_cast %144 : vector<8xf32> to vector<8x1xf32>
    %146 = vector.broadcast %145 : vector<8x1xf32> to vector<8x8xf32>
    %147 = arith.subf %143, %146 : vector<8x8xf32>
    %148 = math.exp %147 : vector<8x8xf32>
    %cst_48 = arith.constant dense<0.000000e+00> : vector<8xf32>
    %149 = vector.multi_reduction <add>, %148, %cst_48 [1] : vector<8x8xf32> to vector<8xf32>
    %150 = vector.shape_cast %149 : vector<8xf32> to vector<8x1xf32>
    %151 = arith.truncf %148 : vector<8x8xf32> to vector<8x8xbf16>
    %cst_49 = arith.constant dense<0.000000e+00> : vector<8x4xf32>
    %152 = tpu.matmul %151, %140, %cst_49 {dimension_numbers = #tpu.dot_dimension_numbers<[1], [0], [0], [1], [0, 0, 1, 1], [], []>} : vector<8x8xbf16>, vector<8x4xbf16>, vector<8x4xf32> -> vector<8x4xf32>
    %153 = tpu.reciprocal %150 {approx = true} : vector<8x1xf32> -> vector<8x1xf32>
    %154 = vector.broadcast %153 : vector<8x1xf32> to vector<8x4xf32>
    %155 = arith.mulf %152, %154 : vector<8x4xf32>
    %156 = arith.truncf %155 : vector<8x4xf32> to vector<8x4xbf16>
    %c0_50 = arith.constant 0 : index
    %c24 = arith.constant 24 : index
    %157 = vector.load %arg11[%c0_50, %c24] : memref<8x32xbf16, #tpu.memory_space<vmem>>, vector<8x4xbf16>
    tpu.vector_store %arg11[%c0_50, %c24], %156 {strides = array<i32>} : memref<8x32xbf16, #tpu.memory_space<vmem>>, vector<8x4xbf16>,
    %158 = vector.extract_strided_slice %10 {offsets = [0, 28], sizes = [8, 4], strides = [1, 1]} : vector<8x32xbf16> to vector<8x4xbf16>
    %159 = vector.extract_strided_slice %16 {offsets = [0, 28], sizes = [8, 4], strides = [1, 1]} : vector<8x32xbf16> to vector<8x4xbf16>
    %160 = vector.extract_strided_slice %17 {offsets = [0, 28], sizes = [8, 4], strides = [1, 1]} : vector<8x32xbf16> to vector<8x4xbf16>
    %cst_51 = arith.constant dense<0.000000e+00> : vector<8x8xf32>
    %161 = tpu.matmul %158, %159, %cst_51 {dimension_numbers = #tpu.dot_dimension_numbers<[1], [1], [0], [0], [0, 0, 1, 0], [], []>} : vector<8x4xbf16>, vector<8x4xbf16>, vector<8x8xf32> -> vector<8x8xf32>
    %cst_52 = arith.constant 0xFF800000 : f32
    %162 = vector.broadcast %cst_52 : f32 to vector<8x8xf32>
    %163 = arith.select %15, %162, %161 : vector<8x8xi1>, vector<8x8xf32>
    %cst_53 = arith.constant dense<0xFF800000> : vector<8xf32>
    %164 = vector.multi_reduction <maximumf>, %163, %cst_53 [1] : vector<8x8xf32> to vector<8xf32>
    %165 = vector.shape_cast %164 : vector<8xf32> to vector<8x1xf32>
    %166 = vector.broadcast %165 : vector<8x1xf32> to vector<8x8xf32>
    %167 = arith.subf %163, %166 : vector<8x8xf32>
    %168 = math.exp %167 : vector<8x8xf32>
    %cst_54 = arith.constant dense<0.000000e+00> : vector<8xf32>
    %169 = vector.multi_reduction <add>, %168, %cst_54 [1] : vector<8x8xf32> to vector<8xf32>
    %170 = vector.shape_cast %169 : vector<8xf32> to vector<8x1xf32>
    %171 = arith.truncf %168 : vector<8x8xf32> to vector<8x8xbf16>
    %cst_55 = arith.constant dense<0.000000e+00> : vector<8x4xf32>
    %172 = tpu.matmul %171, %160, %cst_55 {dimension_numbers = #tpu.dot_dimension_numbers<[1], [0], [0], [1], [0, 0, 1, 1], [], []>} : vector<8x8xbf16>, vector<8x4xbf16>, vector<8x4xf32> -> vector<8x4xf32>
    %173 = tpu.reciprocal %170 {approx = true} : vector<8x1xf32> -> vector<8x1xf32>
    %174 = vector.broadcast %173 : vector<8x1xf32> to vector<8x4xf32>
    %175 = arith.mulf %172, %174 : vector<8x4xf32>
    %176 = arith.truncf %175 : vector<8x4xf32> to vector<8x4xbf16>
    %c0_56 = arith.constant 0 : index
    %c28 = arith.constant 28 : index
    %177 = vector.load %arg11[%c0_56, %c28] : memref<8x32xbf16, #tpu.memory_space<vmem>>, vector<8x4xbf16>
    tpu.vector_store %arg11[%c0_56, %c28], %176 {strides = array<i32>} : memref<8x32xbf16, #tpu.memory_space<vmem>>, vector<8x4xbf16>,
    %c0_57 = arith.constant 0 : index
    %c0_58 = arith.constant 0 : index
    %178 = vector.load %arg11[%c0_57, %c0_58] : memref<8x32xbf16, #tpu.memory_space<vmem>>, vector<8x32xbf16>
    %c0_59 = arith.constant 0 : index
    %c0_60 = arith.constant 0 : index
    %179 = vector.load %arg6[%c0_59, %c0_60] : memref<32x128xbf16, #tpu.memory_space<vmem>>, vector<32x128xbf16>
    %cst_61 = arith.constant dense<0.000000e+00> : vector<8x128xf32>
    %180 = tpu.matmul %178, %179, %cst_61 {dimension_numbers = #tpu.dot_dimension_numbers<[1], [0], [0], [1], [0, 0, 1, 1], [], []>} : vector<8x32xbf16>, vector<32x128xbf16>, vector<8x128xf32> -> vector<8x128xf32>
    %c0_62 = arith.constant 0 : index
    %c0_63 = arith.constant 0 : index
    %181 = vector.load %arg7[%c0_62, %c0_63] : memref<1x128xf32, #tpu.memory_space<vmem>>, vector<1x128xf32>
    %182 = vector.broadcast %181 : vector<1x128xf32> to vector<8x128xf32>
    %183 = arith.addf %180, %182 : vector<8x128xf32>
    %c0_64 = arith.constant 0 : index
    %c0_65 = arith.constant 0 : index
    %c0_66 = arith.constant 0 : index
    %184 = vector.load %arg8[%c0_64, %c0_65, %c0_66] : memref<1x8x128xf32, #tpu.memory_space<vmem>>, vector<1x8x128xf32>
    %185 = vector.shape_cast %184 : vector<1x8x128xf32> to vector<8x128xf32>
    %186 = vector.shape_cast %183 : vector<8x128xf32> to vector<1x8x128xf32>
    tpu.vector_store %arg8[%c0_64, %c0_65, %c0_66], %186 {strides = array<i32>} : memref<1x8x128xf32, #tpu.memory_space<vmem>>, vector<1x8x128xf32>,
    return
  }
  func.func @transform_0(%arg0: i32, %arg1: i32) -> (i32, i32, i32) {
    %c0_i32 = arith.constant 0 : i32
    %c0_i32_0 = arith.constant 0 : i32
    %c0_i32_1 = arith.constant 0 : i32
    return %arg0, %c0_i32, %c0_i32_0 : i32, i32, i32
  }
  func.func @transform_1(%arg0: i32, %arg1: i32) -> (i32, i32) {
    %c0_i32 = arith.constant 0 : i32
    %c0_i32_0 = arith.constant 0 : i32
    %c0_i32_1 = arith.constant 0 : i32
    return %c0_i32, %c0_i32_0 : i32, i32
  }
  func.func @transform_2(%arg0: i32, %arg1: i32) -> (i32, i32) {
    %c0_i32 = arith.constant 0 : i32
    %c0_i32_0 = arith.constant 0 : i32
    %c0_i32_1 = arith.constant 0 : i32
    return %c0_i32, %c0_i32_0 : i32, i32
  }
  func.func @transform_3(%arg0: i32, %arg1: i32) -> (i32, i32) {
    %c0_i32 = arith.constant 0 : i32
    %c0_i32_0 = arith.constant 0 : i32
    %c0_i32_1 = arith.constant 0 : i32
    return %c0_i32, %c0_i32_0 : i32, i32
  }
  func.func @transform_4(%arg0: i32, %arg1: i32) -> (i32, i32) {
    %c0_i32 = arith.constant 0 : i32
    %c0_i32_0 = arith.constant 0 : i32
    %c0_i32_1 = arith.constant 0 : i32
    return %c0_i32, %c0_i32_0 : i32, i32
  }
  func.func @transform_5(%arg0: i32, %arg1: i32) -> (i32, i32) {
    %c0_i32 = arith.constant 0 : i32
    %c0_i32_0 = arith.constant 0 : i32
    %c0_i32_1 = arith.constant 0 : i32
    return %c0_i32, %c0_i32_0 : i32, i32
  }
  func.func @transform_6(%arg0: i32, %arg1: i32) -> (i32, i32, i32) {
    %c0_i32 = arith.constant 0 : i32
    %c0_i32_0 = arith.constant 0 : i32
    return %arg0, %arg1, %c0_i32 : i32, i32, i32
  }
}

module attributes {stable_mosaic.version = 11 : i64} {
  func.func @_attention_kernel(%arg0: i32, %arg1: i32, %arg2: memref<1x8x32xbf16, #tpu.memory_space<vmem>>, %arg3: memref<32x32xbf16, #tpu.memory_space<vmem>>, %arg4: memref<32x32xbf16, #tpu.memory_space<vmem>>, %arg5: memref<32x32xbf16, #tpu.memory_space<vmem>>, %arg6: memref<32x128xbf16, #tpu.memory_space<vmem>>, %arg7: memref<1x128xf32, #tpu.memory_space<vmem>>, %arg8: memref<1x8x128xf32, #tpu.memory_space<vmem>>, %arg9: memref<8x32xbf16, #tpu.memory_space<vmem>>, %arg10: memref<8x32xbf16, #tpu.memory_space<vmem>>, %arg11: memref<8x32xbf16, #tpu.memory_space<vmem>>) attributes {dimension_semantics = [#tpu.dimension_semantics<parallel>, #tpu.dimension_semantics<arbitrary>], iteration_bounds = array<i64: 2, 1>, scalar_prefetch = 0 : i64, scratch_operands = 3 : i64, tpu.core_type = #tpu.core_type<tc>, window_params = [{transform_indices = @transform_0, window_bounds = array<i64: 1, 8, 32>}, {pipeline_mode = #tpu.pipeline_mode<synchronous>, transform_indices = @transform_1, window_bounds = array<i64: 32, 32>}, {pipeline_mode = #tpu.pipeline_mode<synchronous>, transform_indices = @transform_2, window_bounds = array<i64: 32, 32>}, {pipeline_mode = #tpu.pipeline_mode<synchronous>, transform_indices = @transform_3, window_bounds = array<i64: 32, 32>}, {pipeline_mode = #tpu.pipeline_mode<synchronous>, transform_indices = @transform_4, window_bounds = array<i64: 32, 128>}, {pipeline_mode = #tpu.pipeline_mode<synchronous>, transform_indices = @transform_5, window_bounds = array<i64: 1, 128>}, {transform_indices = @transform_6, window_bounds = array<i64: 1, 8, 128>}]} {
    %c0_i32 = arith.constant 0 : i32
    %0 = arith.cmpi eq, %arg1, %c0_i32 : i32
    %1 = arith.extui %0 : i1 to i32
    %c0_i32_0 = arith.constant 0 : i32
    %2 = arith.cmpi ne, %1, %c0_i32_0 : i32
    scf.if %2 {
      %c0_67 = arith.constant 0 : index
      %c0_68 = arith.constant 0 : index
      %c0_69 = arith.constant 0 : index
      %187 = vector.load %arg2[%c0_67, %c0_68, %c0_69] : memref<1x8x32xbf16, #tpu.memory_space<vmem>>, vector<1x8x32xbf16>
      %188 = vector.shape_cast %187 : vector<1x8x32xbf16> to vector<8x32xbf16>
      %c0_70 = arith.constant 0 : index
      %c0_71 = arith.constant 0 : index
      %189 = vector.load %arg4[%c0_70, %c0_71] : memref<32x32xbf16, #tpu.memory_space<vmem>>, vector<32x32xbf16>
      %cst_72 = arith.constant dense<0.000000e+00> : vector<8x32xf32>
      %190 = tpu.matmul %188, %189, %cst_72 {dimension_numbers = #tpu.dot_dimension_numbers<[1], [0], [0], [1], [0, 0, 1, 1], [], []>} : vector<8x32xbf16>, vector<32x32xbf16>, vector<8x32xf32> -> vector<8x32xf32>
      %191 = arith.truncf %190 : vector<8x32xf32> to vector<8x32xbf16>
      %c0_73 = arith.constant 0 : index
      %c0_74 = arith.constant 0 : index
      %192 = vector.load %arg9[%c0_73, %c0_74] : memref<8x32xbf16, #tpu.memory_space<vmem>>, vector<8x32xbf16>
      tpu.vector_store %arg9[%c0_73, %c0_74], %191 {strides = array<i32>} : memref<8x32xbf16, #tpu.memory_space<vmem>>, vector<8x32xbf16>,
      %c0_75 = arith.constant 0 : index
      %c0_76 = arith.constant 0 : index
      %193 = vector.load %arg5[%c0_75, %c0_76] : memref<32x32xbf16, #tpu.memory_space<vmem>>, vector<32x32xbf16>
      %cst_77 = arith.constant dense<0.000000e+00> : vector<8x32xf32>
      %194 = tpu.matmul %188, %193, %cst_77 {dimension_numbers = #tpu.dot_dimension_numbers<[1], [0], [0], [1], [0, 0, 1, 1], [], []>} : vector<8x32xbf16>, vector<32x32xbf16>, vector<8x32xf32> -> vector<8x32xf32>
      %195 = arith.truncf %194 : vector<8x32xf32> to vector<8x32xbf16>
      %c0_78 = arith.constant 0 : index
      %c0_79 = arith.constant 0 : index
      %196 = vector.load %arg10[%c0_78, %c0_79] : memref<8x32xbf16, #tpu.memory_space<vmem>>, vector<8x32xbf16>
      tpu.vector_store %arg10[%c0_78, %c0_79], %195 {strides = array<i32>} : memref<8x32xbf16, #tpu.memory_space<vmem>>, vector<8x32xbf16>,
    } else {
    }
    %c8_i32 = arith.constant 8 : i32
    %3 = arith.muli %arg1, %c8_i32 : i32
    %4 = tpu.assume_multiple %3, 8 : i32
    %c0 = arith.constant 0 : index
    %5 = arith.index_cast %4 : i32 to index
    %c0_1 = arith.constant 0 : index
    %6 = vector.load %arg2[%c0, %5, %c0_1] : memref<1x8x32xbf16, #tpu.memory_space<vmem>>, vector<1x8x32xbf16>
    %7 = vector.shape_cast %6 : vector<1x8x32xbf16> to vector<8x32xbf16>
    %c0_2 = arith.constant 0 : index
    %c0_3 = arith.constant 0 : index
    %8 = vector.load %arg3[%c0_2, %c0_3] : memref<32x32xbf16, #tpu.memory_space<vmem>>, vector<32x32xbf16>
    %cst = arith.constant dense<0.000000e+00> : vector<8x32xf32>
    %9 = tpu.matmul %7, %8, %cst {dimension_numbers = #tpu.dot_dimension_numbers<[1], [0], [0], [1], [0, 0, 1, 1], [], []>} : vector<8x32xbf16>, vector<32x32xbf16>, vector<8x32xf32> -> vector<8x32xf32>
    %10 = arith.truncf %9 : vector<8x32xf32> to vector<8x32xbf16>
    %11 = tpu.iota {dimensions = array<i32: 0>} : vector<8x8xi32>
    %12 = vector.broadcast %4 : i32 to vector<8x8xi32>
    %13 = arith.addi %11, %12 : vector<8x8xi32>
    %14 = tpu.iota {dimensions = array<i32: 1>} : vector<8x8xi32>
    %15 = arith.cmpi eq, %13, %14 : vector<8x8xi32>
    %c0_4 = arith.constant 0 : index
    %c0_5 = arith.constant 0 : index
    %16 = vector.load %arg9[%c0_4, %c0_5] : memref<8x32xbf16, #tpu.memory_space<vmem>>, vector<8x32xbf16>
    %c0_6 = arith.constant 0 : index
    %c0_7 = arith.constant 0 : index
    %17 = vector.load %arg10[%c0_6, %c0_7] : memref<8x32xbf16, #tpu.memory_space<vmem>>, vector<8x32xbf16>
    %18 = vector.extract_strided_slice %10 {offsets = [0, 0], sizes = [8, 4], strides = [1, 1]} : vector<8x32xbf16> to vector<8x4xbf16>
    %19 = vector.extract_strided_slice %16 {offsets = [0, 0], sizes = [8, 4], strides = [1, 1]} : vector<8x32xbf16> to vector<8x4xbf16>
    %20 = vector.extract_strided_slice %17 {offsets = [0, 0], sizes = [8, 4], strides = [1, 1]} : vector<8x32xbf16> to vector<8x4xbf16>
    %cst_8 = arith.constant dense<0.000000e+00> : vector<8x8xf32>
    %21 = tpu.matmul %18, %19, %cst_8 {dimension_numbers = #tpu.dot_dimension_numbers<[1], [1], [0], [0], [0, 0, 1, 0], [], []>} : vector<8x4xbf16>, vector<8x4xbf16>, vector<8x8xf32> -> vector<8x8xf32>
    %cst_9 = arith.constant 0xFF800000 : f32
    %22 = vector.broadcast %cst_9 : f32 to vector<8x8xf32>
    %23 = arith.select %15, %22, %21 : vector<8x8xi1>, vector<8x8xf32>
    %cst_10 = arith.constant dense<0xFF800000> : vector<8xf32>
    %24 = vector.multi_reduction <maximumf>, %23, %cst_10 [1] : vector<8x8xf32> to vector<8xf32>
    %25 = vector.shape_cast %24 : vector<8xf32> to vector<8x1xf32>
    %26 = vector.broadcast %25 : vector<8x1xf32> to vector<8x8xf32>
    %27 = arith.subf %23, %26 : vector<8x8xf32>
    %28 = math.exp %27 : vector<8x8xf32>
    %cst_11 = arith.constant dense<0.000000e+00> : vector<8xf32>
    %29 = vector.multi_reduction <add>, %28, %cst_11 [1] : vector<8x8xf32> to vector<8xf32>
    %30 = vector.shape_cast %29 : vector<8xf32> to vector<8x1xf32>
    %31 = arith.truncf %28 : vector<8x8xf32> to vector<8x8xbf16>
    %cst_12 = arith.constant dense<0.000000e+00> : vector<8x4xf32>
    %32 = tpu.matmul %31, %20, %cst_12 {dimension_numbers = #tpu.dot_dimension_numbers<[1], [0], [0], [1], [0, 0, 1, 1], [], []>} : vector<8x8xbf16>, vector<8x4xbf16>, vector<8x4xf32> -> vector<8x4xf32>
    %33 = tpu.reciprocal %30 {approx = true} : vector<8x1xf32> -> vector<8x1xf32>
    %34 = vector.broadcast %33 : vector<8x1xf32> to vector<8x4xf32>
    %35 = arith.mulf %32, %34 : vector<8x4xf32>
    %36 = arith.truncf %35 : vector<8x4xf32> to vector<8x4xbf16>
    %c0_13 = arith.constant 0 : index
    %c0_14 = arith.constant 0 : index
    %37 = vector.load %arg11[%c0_13, %c0_14] : memref<8x32xbf16, #tpu.memory_space<vmem>>, vector<8x4xbf16>
    tpu.vector_store %arg11[%c0_13, %c0_14], %36 {strides = array<i32>} : memref<8x32xbf16, #tpu.memory_space<vmem>>, vector<8x4xbf16>,
    %38 = vector.extract_strided_slice %10 {offsets = [0, 4], sizes = [8, 4], strides = [1, 1]} : vector<8x32xbf16> to vector<8x4xbf16>
    %39 = vector.extract_strided_slice %16 {offsets = [0, 4], sizes = [8, 4], strides = [1, 1]} : vector<8x32xbf16> to vector<8x4xbf16>
    %40 = vector.extract_strided_slice %17 {offsets = [0, 4], sizes = [8, 4], strides = [1, 1]} : vector<8x32xbf16> to vector<8x4xbf16>
    %cst_15 = arith.constant dense<0.000000e+00> : vector<8x8xf32>
    %41 = tpu.matmul %38, %39, %cst_15 {dimension_numbers = #tpu.dot_dimension_numbers<[1], [1], [0], [0], [0, 0, 1, 0], [], []>} : vector<8x4xbf16>, vector<8x4xbf16>, vector<8x8xf32> -> vector<8x8xf32>
    %cst_16 = arith.constant 0xFF800000 : f32
    %42 = vector.broadcast %cst_16 : f32 to vector<8x8xf32>
    %43 = arith.select %15, %42, %41 : vector<8x8xi1>, vector<8x8xf32>
    %cst_17 = arith.constant dense<0xFF800000> : vector<8xf32>
    %44 = vector.multi_reduction <maximumf>, %43, %cst_17 [1] : vector<8x8xf32> to vector<8xf32>
    %45 = vector.shape_cast %44 : vector<8xf32> to vector<8x1xf32>
    %46 = vector.broadcast %45 : vector<8x1xf32> to vector<8x8xf32>
    %47 = arith.subf %43, %46 : vector<8x8xf32>
    %48 = math.exp %47 : vector<8x8xf32>
    %cst_18 = arith.constant dense<0.000000e+00> : vector<8xf32>
    %49 = vector.multi_reduction <add>, %48, %cst_18 [1] : vector<8x8xf32> to vector<8xf32>
    %50 = vector.shape_cast %49 : vector<8xf32> to vector<8x1xf32>
    %51 = arith.truncf %48 : vector<8x8xf32> to vector<8x8xbf16>
    %cst_19 = arith.constant dense<0.000000e+00> : vector<8x4xf32>
    %52 = tpu.matmul %51, %40, %cst_19 {dimension_numbers = #tpu.dot_dimension_numbers<[1], [0], [0], [1], [0, 0, 1, 1], [], []>} : vector<8x8xbf16>, vector<8x4xbf16>, vector<8x4xf32> -> vector<8x4xf32>
    %53 = tpu.reciprocal %50 {approx = true} : vector<8x1xf32> -> vector<8x1xf32>
    %54 = vector.broadcast %53 : vector<8x1xf32> to vector<8x4xf32>
    %55 = arith.mulf %52, %54 : vector<8x4xf32>
    %56 = arith.truncf %55 : vector<8x4xf32> to vector<8x4xbf16>
    %c0_20 = arith.constant 0 : index
    %c4 = arith.constant 4 : index
    %57 = vector.load %arg11[%c0_20, %c4] : memref<8x32xbf16, #tpu.memory_space<vmem>>, vector<8x4xbf16>
    tpu.vector_store %arg11[%c0_20, %c4], %56 {strides = array<i32>} : memref<8x32xbf16, #tpu.memory_space<vmem>>, vector<8x4xbf16>,
    %58 = vector.extract_strided_slice %10 {offsets = [0, 8], sizes = [8, 4], strides = [1, 1]} : vector<8x32xbf16> to vector<8x4xbf16>
    %59 = vector.extract_strided_slice %16 {offsets = [0, 8], sizes = [8, 4], strides = [1, 1]} : vector<8x32xbf16> to vector<8x4xbf16>
    %60 = vector.extract_strided_slice %17 {offsets = [0, 8], sizes = [8, 4], strides = [1, 1]} : vector<8x32xbf16> to vector<8x4xbf16>
    %cst_21 = arith.constant dense<0.000000e+00> : vector<8x8xf32>
    %61 = tpu.matmul %58, %59, %cst_21 {dimension_numbers = #tpu.dot_dimension_numbers<[1], [1], [0], [0], [0, 0, 1, 0], [], []>} : vector<8x4xbf16>, vector<8x4xbf16>, vector<8x8xf32> -> vector<8x8xf32>
    %cst_22 = arith.constant 0xFF800000 : f32
    %62 = vector.broadcast %cst_22 : f32 to vector<8x8xf32>
    %63 = arith.select %15, %62, %61 : vector<8x8xi1>, vector<8x8xf32>
    %cst_23 = arith.constant dense<0xFF800000> : vector<8xf32>
    %64 = vector.multi_reduction <maximumf>, %63, %cst_23 [1] : vector<8x8xf32> to vector<8xf32>
    %65 = vector.shape_cast %64 : vector<8xf32> to vector<8x1xf32>
    %66 = vector.broadcast %65 : vector<8x1xf32> to vector<8x8xf32>
    %67 = arith.subf %63, %66 : vector<8x8xf32>
    %68 = math.exp %67 : vector<8x8xf32>
    %cst_24 = arith.constant dense<0.000000e+00> : vector<8xf32>
    %69 = vector.multi_reduction <add>, %68, %cst_24 [1] : vector<8x8xf32> to vector<8xf32>
    %70 = vector.shape_cast %69 : vector<8xf32> to vector<8x1xf32>
    %71 = arith.truncf %68 : vector<8x8xf32> to vector<8x8xbf16>
    %cst_25 = arith.constant dense<0.000000e+00> : vector<8x4xf32>
    %72 = tpu.matmul %71, %60, %cst_25 {dimension_numbers = #tpu.dot_dimension_numbers<[1], [0], [0], [1], [0, 0, 1, 1], [], []>} : vector<8x8xbf16>, vector<8x4xbf16>, vector<8x4xf32> -> vector<8x4xf32>
    %73 = tpu.reciprocal %70 {approx = true} : vector<8x1xf32> -> vector<8x1xf32>
    %74 = vector.broadcast %73 : vector<8x1xf32> to vector<8x4xf32>
    %75 = arith.mulf %72, %74 : vector<8x4xf32>
    %76 = arith.truncf %75 : vector<8x4xf32> to vector<8x4xbf16>
    %c0_26 = arith.constant 0 : index
    %c8 = arith.constant 8 : index
    %77 = vector.load %arg11[%c0_26, %c8] : memref<8x32xbf16, #tpu.memory_space<vmem>>, vector<8x4xbf16>
    tpu.vector_store %arg11[%c0_26, %c8], %76 {strides = array<i32>} : memref<8x32xbf16, #tpu.memory_space<vmem>>, vector<8x4xbf16>,
    %78 = vector.extract_strided_slice %10 {offsets = [0, 12], sizes = [8, 4], strides = [1, 1]} : vector<8x32xbf16> to vector<8x4xbf16>
    %79 = vector.extract_strided_slice %16 {offsets = [0, 12], sizes = [8, 4], strides = [1, 1]} : vector<8x32xbf16> to vector<8x4xbf16>
    %80 = vector.extract_strided_slice %17 {offsets = [0, 12], sizes = [8, 4], strides = [1, 1]} : vector<8x32xbf16> to vector<8x4xbf16>
    %cst_27 = arith.constant dense<0.000000e+00> : vector<8x8xf32>
    %81 = tpu.matmul %78, %79, %cst_27 {dimension_numbers = #tpu.dot_dimension_numbers<[1], [1], [0], [0], [0, 0, 1, 0], [], []>} : vector<8x4xbf16>, vector<8x4xbf16>, vector<8x8xf32> -> vector<8x8xf32>
    %cst_28 = arith.constant 0xFF800000 : f32
    %82 = vector.broadcast %cst_28 : f32 to vector<8x8xf32>
    %83 = arith.select %15, %82, %81 : vector<8x8xi1>, vector<8x8xf32>
    %cst_29 = arith.constant dense<0xFF800000> : vector<8xf32>
    %84 = vector.multi_reduction <maximumf>, %83, %cst_29 [1] : vector<8x8xf32> to vector<8xf32>
    %85 = vector.shape_cast %84 : vector<8xf32> to vector<8x1xf32>
    %86 = vector.broadcast %85 : vector<8x1xf32> to vector<8x8xf32>
    %87 = arith.subf %83, %86 : vector<8x8xf32>
    %88 = math.exp %87 : vector<8x8xf32>
    %cst_30 = arith.constant dense<0.000000e+00> : vector<8xf32>
    %89 = vector.multi_reduction <add>, %88, %cst_30 [1] : vector<8x8xf32> to vector<8xf32>
    %90 = vector.shape_cast %89 : vector<8xf32> to vector<8x1xf32>
    %91 = arith.truncf %88 : vector<8x8xf32> to vector<8x8xbf16>
    %cst_31 = arith.constant dense<0.000000e+00> : vector<8x4xf32>
    %92 = tpu.matmul %91, %80, %cst_31 {dimension_numbers = #tpu.dot_dimension_numbers<[1], [0], [0], [1], [0, 0, 1, 1], [], []>} : vector<8x8xbf16>, vector<8x4xbf16>, vector<8x4xf32> -> vector<8x4xf32>
    %93 = tpu.reciprocal %90 {approx = true} : vector<8x1xf32> -> vector<8x1xf32>
    %94 = vector.broadcast %93 : vector<8x1xf32> to vector<8x4xf32>
    %95 = arith.mulf %92, %94 : vector<8x4xf32>
    %96 = arith.truncf %95 : vector<8x4xf32> to vector<8x4xbf16>
    %c0_32 = arith.constant 0 : index
    %c12 = arith.constant 12 : index
    %97 = vector.load %arg11[%c0_32, %c12] : memref<8x32xbf16, #tpu.memory_space<vmem>>, vector<8x4xbf16>
    tpu.vector_store %arg11[%c0_32, %c12], %96 {strides = array<i32>} : memref<8x32xbf16, #tpu.memory_space<vmem>>, vector<8x4xbf16>,
    %98 = vector.extract_strided_slice %10 {offsets = [0, 16], sizes = [8, 4], strides = [1, 1]} : vector<8x32xbf16> to vector<8x4xbf16>
    %99 = vector.extract_strided_slice %16 {offsets = [0, 16], sizes = [8, 4], strides = [1, 1]} : vector<8x32xbf16> to vector<8x4xbf16>
    %100 = vector.extract_strided_slice %17 {offsets = [0, 16], sizes = [8, 4], strides = [1, 1]} : vector<8x32xbf16> to vector<8x4xbf16>
    %cst_33 = arith.constant dense<0.000000e+00> : vector<8x8xf32>
    %101 = tpu.matmul %98, %99, %cst_33 {dimension_numbers = #tpu.dot_dimension_numbers<[1], [1], [0], [0], [0, 0, 1, 0], [], []>} : vector<8x4xbf16>, vector<8x4xbf16>, vector<8x8xf32> -> vector<8x8xf32>
    %cst_34 = arith.constant 0xFF800000 : f32
    %102 = vector.broadcast %cst_34 : f32 to vector<8x8xf32>
    %103 = arith.select %15, %102, %101 : vector<8x8xi1>, vector<8x8xf32>
    %cst_35 = arith.constant dense<0xFF800000> : vector<8xf32>
    %104 = vector.multi_reduction <maximumf>, %103, %cst_35 [1] : vector<8x8xf32> to vector<8xf32>
    %105 = vector.shape_cast %104 : vector<8xf32> to vector<8x1xf32>
    %106 = vector.broadcast %105 : vector<8x1xf32> to vector<8x8xf32>
    %107 = arith.subf %103, %106 : vector<8x8xf32>
    %108 = math.exp %107 : vector<8x8xf32>
    %cst_36 = arith.constant dense<0.000000e+00> : vector<8xf32>
    %109 = vector.multi_reduction <add>, %108, %cst_36 [1] : vector<8x8xf32> to vector<8xf32>
    %110 = vector.shape_cast %109 : vector<8xf32> to vector<8x1xf32>
    %111 = arith.truncf %108 : vector<8x8xf32> to vector<8x8xbf16>
    %cst_37 = arith.constant dense<0.000000e+00> : vector<8x4xf32>
    %112 = tpu.matmul %111, %100, %cst_37 {dimension_numbers = #tpu.dot_dimension_numbers<[1], [0], [0], [1], [0, 0, 1, 1], [], []>} : vector<8x8xbf16>, vector<8x4xbf16>, vector<8x4xf32> -> vector<8x4xf32>
    %113 = tpu.reciprocal %110 {approx = true} : vector<8x1xf32> -> vector<8x1xf32>
    %114 = vector.broadcast %113 : vector<8x1xf32> to vector<8x4xf32>
    %115 = arith.mulf %112, %114 : vector<8x4xf32>
    %116 = arith.truncf %115 : vector<8x4xf32> to vector<8x4xbf16>
    %c0_38 = arith.constant 0 : index
    %c16 = arith.constant 16 : index
    %117 = vector.load %arg11[%c0_38, %c16] : memref<8x32xbf16, #tpu.memory_space<vmem>>, vector<8x4xbf16>
    tpu.vector_store %arg11[%c0_38, %c16], %116 {strides = array<i32>} : memref<8x32xbf16, #tpu.memory_space<vmem>>, vector<8x4xbf16>,
    %118 = vector.extract_strided_slice %10 {offsets = [0, 20], sizes = [8, 4], strides = [1, 1]} : vector<8x32xbf16> to vector<8x4xbf16>
    %119 = vector.extract_strided_slice %16 {offsets = [0, 20], sizes = [8, 4], strides = [1, 1]} : vector<8x32xbf16> to vector<8x4xbf16>
    %120 = vector.extract_strided_slice %17 {offsets = [0, 20], sizes = [8, 4], strides = [1, 1]} : vector<8x32xbf16> to vector<8x4xbf16>
    %cst_39 = arith.constant dense<0.000000e+00> : vector<8x8xf32>
    %121 = tpu.matmul %118, %119, %cst_39 {dimension_numbers = #tpu.dot_dimension_numbers<[1], [1], [0], [0], [0, 0, 1, 0], [], []>} : vector<8x4xbf16>, vector<8x4xbf16>, vector<8x8xf32> -> vector<8x8xf32>
    %cst_40 = arith.constant 0xFF800000 : f32
    %122 = vector.broadcast %cst_40 : f32 to vector<8x8xf32>
    %123 = arith.select %15, %122, %121 : vector<8x8xi1>, vector<8x8xf32>
    %cst_41 = arith.constant dense<0xFF800000> : vector<8xf32>
    %124 = vector.multi_reduction <maximumf>, %123, %cst_41 [1] : vector<8x8xf32> to vector<8xf32>
    %125 = vector.shape_cast %124 : vector<8xf32> to vector<8x1xf32>
    %126 = vector.broadcast %125 : vector<8x1xf32> to vector<8x8xf32>
    %127 = arith.subf %123, %126 : vector<8x8xf32>
    %128 = math.exp %127 : vector<8x8xf32>
    %cst_42 = arith.constant dense<0.000000e+00> : vector<8xf32>
    %129 = vector.multi_reduction <add>, %128, %cst_42 [1] : vector<8x8xf32> to vector<8xf32>
    %130 = vector.shape_cast %129 : vector<8xf32> to vector<8x1xf32>
    %131 = arith.truncf %128 : vector<8x8xf32> to vector<8x8xbf16>
    %cst_43 = arith.constant dense<0.000000e+00> : vector<8x4xf32>
    %132 = tpu.matmul %131, %120, %cst_43 {dimension_numbers = #tpu.dot_dimension_numbers<[1], [0], [0], [1], [0, 0, 1, 1], [], []>} : vector<8x8xbf16>, vector<8x4xbf16>, vector<8x4xf32> -> vector<8x4xf32>
    %133 = tpu.reciprocal %130 {approx = true} : vector<8x1xf32> -> vector<8x1xf32>
    %134 = vector.broadcast %133 : vector<8x1xf32> to vector<8x4xf32>
    %135 = arith.mulf %132, %134 : vector<8x4xf32>
    %136 = arith.truncf %135 : vector<8x4xf32> to vector<8x4xbf16>
    %c0_44 = arith.constant 0 : index
    %c20 = arith.constant 20 : index
    %137 = vector.load %arg11[%c0_44, %c20] : memref<8x32xbf16, #tpu.memory_space<vmem>>, vector<8x4xbf16>
    tpu.vector_store %arg11[%c0_44, %c20], %136 {strides = array<i32>} : memref<8x32xbf16, #tpu.memory_space<vmem>>, vector<8x4xbf16>,
    %138 = vector.extract_strided_slice %10 {offsets = [0, 24], sizes = [8, 4], strides = [1, 1]} : vector<8x32xbf16> to vector<8x4xbf16>
    %139 = vector.extract_strided_slice %16 {offsets = [0, 24], sizes = [8, 4], strides = [1, 1]} : vector<8x32xbf16> to vector<8x4xbf16>
    %140 = vector.extract_strided_slice %17 {offsets = [0, 24], sizes = [8, 4], strides = [1, 1]} : vector<8x32xbf16> to vector<8x4xbf16>
    %cst_45 = arith.constant dense<0.000000e+00> : vector<8x8xf32>
    %141 = tpu.matmul %138, %139, %cst_45 {dimension_numbers = #tpu.dot_dimension_numbers<[1], [1], [0], [0], [0, 0, 1, 0], [], []>} : vector<8x4xbf16>, vector<8x4xbf16>, vector<8x8xf32> -> vector<8x8xf32>
    %cst_46 = arith.constant 0xFF800000 : f32
    %142 = vector.broadcast %cst_46 : f32 to vector<8x8xf32>
    %143 = arith.select %15, %142, %141 : vector<8x8xi1>, vector<8x8xf32>
    %cst_47 = arith.constant dense<0xFF800000> : vector<8xf32>
    %144 = vector.multi_reduction <maximumf>, %143, %cst_47 [1] : vector<8x8xf32> to vector<8xf32>
    %145 = vector.shape_cast %144 : vector<8xf32> to vector<8x1xf32>
    %146 = vector.broadcast %145 : vector<8x1xf32> to vector<8x8xf32>
    %147 = arith.subf %143, %146 : vector<8x8xf32>
    %148 = math.exp %147 : vector<8x8xf32>
    %cst_48 = arith.constant dense<0.000000e+00> : vector<8xf32>
    %149 = vector.multi_reduction <add>, %148, %cst_48 [1] : vector<8x8xf32> to vector<8xf32>
    %150 = vector.shape_cast %149 : vector<8xf32> to vector<8x1xf32>
    %151 = arith.truncf %148 : vector<8x8xf32> to vector<8x8xbf16>
    %cst_49 = arith.constant dense<0.000000e+00> : vector<8x4xf32>
    %152 = tpu.matmul %151, %140, %cst_49 {dimension_numbers = #tpu.dot_dimension_numbers<[1], [0], [0], [1], [0, 0, 1, 1], [], []>} : vector<8x8xbf16>, vector<8x4xbf16>, vector<8x4xf32> -> vector<8x4xf32>
    %153 = tpu.reciprocal %150 {approx = true} : vector<8x1xf32> -> vector<8x1xf32>
    %154 = vector.broadcast %153 : vector<8x1xf32> to vector<8x4xf32>
    %155 = arith.mulf %152, %154 : vector<8x4xf32>
    %156 = arith.truncf %155 : vector<8x4xf32> to vector<8x4xbf16>
    %c0_50 = arith.constant 0 : index
    %c24 = arith.constant 24 : index
    %157 = vector.load %arg11[%c0_50, %c24] : memref<8x32xbf16, #tpu.memory_space<vmem>>, vector<8x4xbf16>
    tpu.vector_store %arg11[%c0_50, %c24], %156 {strides = array<i32>} : memref<8x32xbf16, #tpu.memory_space<vmem>>, vector<8x4xbf16>,
    %158 = vector.extract_strided_slice %10 {offsets = [0, 28], sizes = [8, 4], strides = [1, 1]} : vector<8x32xbf16> to vector<8x4xbf16>
    %159 = vector.extract_strided_slice %16 {offsets = [0, 28], sizes = [8, 4], strides = [1, 1]} : vector<8x32xbf16> to vector<8x4xbf16>
    %160 = vector.extract_strided_slice %17 {offsets = [0, 28], sizes = [8, 4], strides = [1, 1]} : vector<8x32xbf16> to vector<8x4xbf16>
    %cst_51 = arith.constant dense<0.000000e+00> : vector<8x8xf32>
    %161 = tpu.matmul %158, %159, %cst_51 {dimension_numbers = #tpu.dot_dimension_numbers<[1], [1], [0], [0], [0, 0, 1, 0], [], []>} : vector<8x4xbf16>, vector<8x4xbf16>, vector<8x8xf32> -> vector<8x8xf32>
    %cst_52 = arith.constant 0xFF800000 : f32
    %162 = vector.broadcast %cst_52 : f32 to vector<8x8xf32>
    %163 = arith.select %15, %162, %161 : vector<8x8xi1>, vector<8x8xf32>
    %cst_53 = arith.constant dense<0xFF800000> : vector<8xf32>
    %164 = vector.multi_reduction <maximumf>, %163, %cst_53 [1] : vector<8x8xf32> to vector<8xf32>
    %165 = vector.shape_cast %164 : vector<8xf32> to vector<8x1xf32>
    %166 = vector.broadcast %165 : vector<8x1xf32> to vector<8x8xf32>
    %167 = arith.subf %163, %166 : vector<8x8xf32>
    %168 = math.exp %167 : vector<8x8xf32>
    %cst_54 = arith.constant dense<0.000000e+00> : vector<8xf32>
    %169 = vector.multi_reduction <add>, %168, %cst_54 [1] : vector<8x8xf32> to vector<8xf32>
    %170 = vector.shape_cast %169 : vector<8xf32> to vector<8x1xf32>
    %171 = arith.truncf %168 : vector<8x8xf32> to vector<8x8xbf16>
    %cst_55 = arith.constant dense<0.000000e+00> : vector<8x4xf32>
    %172 = tpu.matmul %171, %160, %cst_55 {dimension_numbers = #tpu.dot_dimension_numbers<[1], [0], [0], [1], [0, 0, 1, 1], [], []>} : vector<8x8xbf16>, vector<8x4xbf16>, vector<8x4xf32> -> vector<8x4xf32>
    %173 = tpu.reciprocal %170 {approx = true} : vector<8x1xf32> -> vector<8x1xf32>
    %174 = vector.broadcast %173 : vector<8x1xf32> to vector<8x4xf32>
    %175 = arith.mulf %172, %174 : vector<8x4xf32>
    %176 = arith.truncf %175 : vector<8x4xf32> to vector<8x4xbf16>
    %c0_56 = arith.constant 0 : index
    %c28 = arith.constant 28 : index
    %177 = vector.load %arg11[%c0_56, %c28] : memref<8x32xbf16, #tpu.memory_space<vmem>>, vector<8x4xbf16>
    tpu.vector_store %arg11[%c0_56, %c28], %176 {strides = array<i32>} : memref<8x32xbf16, #tpu.memory_space<vmem>>, vector<8x4xbf16>,
    %c0_57 = arith.constant 0 : index
    %c0_58 = arith.constant 0 : index
    %178 = vector.load %arg11[%c0_57, %c0_58] : memref<8x32xbf16, #tpu.memory_space<vmem>>, vector<8x32xbf16>
    %c0_59 = arith.constant 0 : index
    %c0_60 = arith.constant 0 : index
    %179 = vector.load %arg6[%c0_59, %c0_60] : memref<32x128xbf16, #tpu.memory_space<vmem>>, vector<32x128xbf16>
    %cst_61 = arith.constant dense<0.000000e+00> : vector<8x128xf32>
    %180 = tpu.matmul %178, %179, %cst_61 {dimension_numbers = #tpu.dot_dimension_numbers<[1], [0], [0], [1], [0, 0, 1, 1], [], []>} : vector<8x32xbf16>, vector<32x128xbf16>, vector<8x128xf32> -> vector<8x128xf32>
    %c0_62 = arith.constant 0 : index
    %c0_63 = arith.constant 0 : index
    %181 = vector.load %arg7[%c0_62, %c0_63] : memref<1x128xf32, #tpu.memory_space<vmem>>, vector<1x128xf32>
    %182 = vector.broadcast %181 : vector<1x128xf32> to vector<8x128xf32>
    %183 = arith.addf %180, %182 : vector<8x128xf32>
    %c0_64 = arith.constant 0 : index
    %c0_65 = arith.constant 0 : index
    %c0_66 = arith.constant 0 : index
    %184 = vector.load %arg8[%c0_64, %c0_65, %c0_66] : memref<1x8x128xf32, #tpu.memory_space<vmem>>, vector<1x8x128xf32>
    %185 = vector.shape_cast %184 : vector<1x8x128xf32> to vector<8x128xf32>
    %186 = vector.shape_cast %183 : vector<8x128xf32> to vector<1x8x128xf32>
    tpu.vector_store %arg8[%c0_64, %c0_65, %c0_66], %186 {strides = array<i32>} : memref<1x8x128xf32, #tpu.memory_space<vmem>>, vector<1x8x128xf32>,
    return
  }
  func.func @transform_0(%arg0: i32, %arg1: i32) -> (i32, i32, i32) {
    %c0_i32 = arith.constant 0 : i32
    %c0_i32_0 = arith.constant 0 : i32
    %c0_i32_1 = arith.constant 0 : i32
    return %arg0, %c0_i32, %c0_i32_0 : i32, i32, i32
  }
  func.func @transform_1(%arg0: i32, %arg1: i32) -> (i32, i32) {
    %c0_i32 = arith.constant 0 : i32
    %c0_i32_0 = arith.constant 0 : i32
    %c0_i32_1 = arith.constant 0 : i32
    return %c0_i32, %c0_i32_0 : i32, i32
  }
  func.func @transform_2(%arg0: i32, %arg1: i32) -> (i32, i32) {
    %c0_i32 = arith.constant 0 : i32
    %c0_i32_0 = arith.constant 0 : i32
    %c0_i32_1 = arith.constant 0 : i32
    return %c0_i32, %c0_i32_0 : i32, i32
  }
  func.func @transform_3(%arg0: i32, %arg1: i32) -> (i32, i32) {
    %c0_i32 = arith.constant 0 : i32
    %c0_i32_0 = arith.constant 0 : i32
    %c0_i32_1 = arith.constant 0 : i32
    return %c0_i32, %c0_i32_0 : i32, i32
  }
  func.func @transform_4(%arg0: i32, %arg1: i32) -> (i32, i32) {
    %c0_i32 = arith.constant 0 : i32
    %c0_i32_0 = arith.constant 0 : i32
    %c0_i32_1 = arith.constant 0 : i32
    return %c0_i32, %c0_i32_0 : i32, i32
  }
  func.func @transform_5(%arg0: i32, %arg1: i32) -> (i32, i32) {
    %c0_i32 = arith.constant 0 : i32
    %c0_i32_0 = arith.constant 0 : i32
    %c0_i32_1 = arith.constant 0 : i32
    return %c0_i32, %c0_i32_0 : i32, i32
  }
  func.func @transform_6(%arg0: i32, %arg1: i32) -> (i32, i32, i32) {
    %c0_i32 = arith.constant 0 : i32
    %c0_i32_0 = arith.constant 0 : i32
    return %arg0, %arg1, %c0_i32 : i32, i32, i32
  }
}

</mosaic_0001>

<bundles_post_ra>
// kernel: tpu_custom_call.1
= control target key start
LH: loop header
LB: loop body
LE: loop exit
PB: predicated region body
PF: predicated region fallthrough
CT: control target
= control target key end

     0   :  { %s2801_s0 = inlined_call_operand.hbm [shape: bf16[2,8,32], index: 0, kind: input, shape index: {}]   ;;  %s2802_s1 = inlined_call_operand.hbm [shape: bf16[32,32], index: 1, kind: input, shape index: {}]   ;;  %s2803_s2 = inlined_call_operand.hbm [shape: bf16[32,32], index: 2, kind: input, shape index: {}]   ;;  %s2804_s3 = inlined_call_operand.hbm [shape: bf16[32,32], index: 3, kind: input, shape index: {}]   ;;  %s2805_s4 = inlined_call_operand.hbm [shape: bf16[32,128], index: 4, kind: input, shape index: {}]   ;;  %s2806_s5 = inlined_call_operand.vmem [shape: f32[1,128], index: 5, kind: input, shape index: {}]   ;;  %s2807_s6 = inlined_call_operand.hbm [shape: f32[2,8,128], index: 6, kind: output, shape index: {}]  }
   0x1   :  { %2808 = sst [smem:[#allocation19_spill]] %s2802_s1 }
   0x2   :  { %2809 = sst [smem:[#allocation20_spill]] %s2803_s2 }
   0x3   :  { %2810 = sst [smem:[#allocation21_spill]] %s2804_s3 }
   0x4   :  { %11 = vsyncpa [#allocation6], 0 }
   0x5   :  { %13 = vsyncpa [#allocation6 + $0x1], 0 }
   0x6   :  { %14 = vsyncpa [#allocation9], 0 }
   0x7   :  { %15 = vsyncpa [#allocation12], 0 }
   0x8   :  { %16 = vsyncpa [#allocation7], 0 }
   0x9   :  { %18 = vsyncpa [#allocation7 + $0x1], 0  ;;  %s2384_s21 = smov 0   ;;  %s2386_s22 = smov 0  }
   0xa   :  { %s2388_s23 = smov 0   ;;  %s2390_s24 = smov 0  }
   0xb   :  { %s2392_s25 = smov 0   ;;  %s2394_s26 = smov 0  }
   0xc LB: > { %s1702_s27 = sadd.s32 4294967295, %s2323_s26   ;;  %p1704_p0 = scmp.ge.s32.totalorder %s2323_s26, 1  ;;  %s2323_s26 = sphi %s2394_s26, %s24_s26   ;;  %s2319_s25 = sphi %s2392_s25, %s2830_s25   ;;  %s2315_s24 = sphi %s2390_s24, %s2829_s24   ;;  %s2311_s23 = sphi %s2388_s23, %s2828_s23   ;;  %s2307_s22 = sphi %s2386_s22, %s2827_s22   ;;  %s2303_s21 = sphi %s2384_s21, %s2826_s21  }
   0xd   : > { %p2418_p1 = scmp.eq.s32.totalorder %s1702_s27, 0  ;;  %p200_p2 = scmp.lt.s32.totalorder %s2323_s26, 3 }
   0xe   : > { %s2325_s30 = smov [#allocation8]   ;;  %s2326_s9 = smov [#allocation11]  }
   0xf   : > { %p2423_p3 = pnand %p1704_p0, %p200_p2  ;;  %s212_s7 = sshll.u32 %s2325_s30, 4  ;;  %s213_s7 = int_to_ptr.vmem [resolvable:$true] %s212_s7 }
  0x10   : > { %s238_s10 = sshll.u32 %s2326_s9, 4  ;;  %s2327_s11 = smov [#allocation10]   ;;  %s239_s10 = int_to_ptr.vmem [resolvable:$true] %s238_s10 }
  0x11   : > { %p1960_p4 = pneg %p2423_p3  ;;  %s225_s12 = sshll.u32 %s2327_s11, 4  ;;  %s226_s12 = int_to_ptr.vmem [resolvable:$true] %s225_s12 }
  0x12   : > { %s2114_s13 = scalar_lea.vmem %s213_s7, 256  ;;  %p2122_p11 = scmp.lt.s32.totalorder %s213_s7, %s213_s7 }
  0x13   : > { %p2432_p6 = pnand %p1960_p4, %p2418_p1  ;;  %p2115_p8 = scmp.ne.s32.totalorder %s213_s7, %s2114_s13 }
  0x14   : > { %p2123_p12 = scmp.lt.s32.totalorder %s2114_s13, %s2114_s13 }
  0x15   : > { %p2105_p7 = pneg %p2432_p6 }
  0x16   : > { %p2124_p13 = por %p2123_p12, %p2122_p11 }
  0x17   : > { %p2117_p9 = pnand %p2115_p8, %p2105_p7 }
  0x19   : > { %p2118_p10 = pneg %p2117_p9 }
  0x1b   : > { %p2125_p0 = pnand %p2124_p13, %p2118_p10 }
  0x1d   : > { %2128 = shalt.err (!%p2125_p0)
}
  0x1e   : > { %s2328_s14 = smov 64   ;;  %s2329_s15 = smov 4  }
  0x1f   : > { %s2814_s1 = sld [smem:[#allocation19_spill]]  ;;  %s2140_s18 = scalar_lea.vmem %s239_s10, 256 }
  0x20   : > { %p2141_p2 = scmp.ne.s32.totalorder %s239_s10, %s2140_s18  ;;  %p2148_p9 = scmp.lt.s32.totalorder %s239_s10, %s239_s10 }
  0x21   : > { %p2149_p10 = scmp.lt.s32.totalorder %s2140_s18, %s2140_s18 }
  0x22   : > { %p2143_p4 = pnand %p2141_p2, %p2105_p7 }
  0x23   : > { %p2150_p11 = por %p2149_p10, %p2148_p9 }
  0x24   : > { %p2144_p8 = pneg %p2143_p4 }
  0x25   : > { %1963 = dma.hbm_to_vmem [thread:$0]  (!%p2432_p6), %s2814_s1, 256, %s213_s7, [#allocation9], %s2328_s14, %s2328_s14, %s2329_s15  }
  0x26   : > { %p2151_p12 = pnand %p2150_p11, %p2144_p8 }
  0x28   : > { %2154 = shalt.err (!%p2151_p12)
}
  0x29   : > { %s2815_s3 = sld [smem:[#allocation21_spill]]  ;;  %s2166_s30 = scalar_lea.vmem %s226_s12, 256 }
  0x2a   : > { %p2167_p13 = scmp.ne.s32.totalorder %s226_s12, %s2166_s30  ;;  %p2174_p4 = scmp.lt.s32.totalorder %s226_s12, %s226_s12 }
  0x2b   : > { %p2175_p8 = scmp.lt.s32.totalorder %s2166_s30, %s2166_s30 }
  0x2c   : > { %p2169_p0 = pnand %p2167_p13, %p2105_p7 }
  0x2d   : > { %p2176_p9 = por %p2175_p8, %p2174_p4 }
  0x2e   : > { %p2170_p2 = pneg %p2169_p0 }
  0x2f   : > { %1969 = dma.hbm_to_vmem [thread:$0]  (!%p2432_p6), %s2815_s3, 256, %s239_s10, [#allocation12], %s2328_s14, %s2328_s14, %s2329_s15  }
  0x30   : > { %p2177_p10 = pnand %p2176_p9, %p2170_p2 }
  0x32   : > { %2180 = shalt.err (!%p2177_p10)
}
  0x33   : > { %s2816_s2 = sld [smem:[#allocation20_spill]]  ;;  %s2330_s10 = smov [#allocation13]  }
  0x34   : > { %s251_s11 = sshll.u32 %s2330_s10, 4  ;;  %s252_s11 = int_to_ptr.vmem [resolvable:$true] %s251_s11 }
  0x35   : > { %s2192_s13 = scalar_lea.vmem %s252_s11, 256  ;;  %p2200_p0 = scmp.lt.s32.totalorder %s252_s11, %s252_s11 }
  0x36   : > { %p2193_p11 = scmp.ne.s32.totalorder %s252_s11, %s2192_s13  ;;  %p2201_p2 = scmp.lt.s32.totalorder %s2192_s13, %s2192_s13 }
  0x38   : > { %p2195_p12 = pnand %p2193_p11, %p2105_p7  ;;  %p2202_p4 = por %p2201_p2, %p2200_p0 }
  0x39   : > { %1966 = dma.hbm_to_vmem [thread:$0]  (!%p2432_p6), %s2816_s2, 256, %s226_s12, [#allocation9], %s2328_s14, %s2328_s14, %s2329_s15  }
  0x3a   : > { %p2196_p13 = pneg %p2195_p12 }
  0x3c   : > { %p2203_p8 = pnand %p2202_p4, %p2196_p13 }
  0x3e   : > { %2206 = shalt.err (!%p2203_p8)
}
  0x3f   : > { %1972 = dma.hbm_to_vmem [thread:$0]  (!%p2432_p6), %s2805_s4, 256, %s252_s11, [#allocation12], %s2328_s14, %s2328_s14, %s2329_s15  }
  0x40   : > { %s1703_s8 = sadd.s32 4294967294, %s2323_s26   ;;  %s36_s17 = sadd.s32 1, %s2319_s25 }
  0x41   : > { %p38_p7 = scmp.ge.s32.totalorder %s36_s17, 2  ;;  %s43_s18 = sadd.s32 1, %s2311_s23 }
  0x42   : > { %p50_p9 = scmp.ne.s32.totalorder %s2311_s23, %s2307_s22  ;;  %p51_p10 = scmp.eq.s32.totalorder %s2323_s26, 0 }
  0x43   : > { %s2832_s17 = smov (%p38_p7, %s36_s17), 0  ;;  %p56_p12 = scmp.ne.s32.totalorder %s2307_s22, %s2303_s21 }
  0x44   : > { %p2490_p11 = por %p51_p10, %p50_p9  ;;  %s40_s14 = ssub.s32 %s2319_s25, %s2832_s17 }
  0x45   : > { %p187_p6 = scmp.eq.s32.totalorder %s1702_s27, 1  ;;  %p41_p13 = scmp.eq.s32.totalorder %s40_s14, 0 }
  0x46   : > { %p2502_p0 = por %p2418_p1, %p56_p12  ;;  %p193_p4 = scmp.eq.s32.totalorder %s1703_s8, 1 }
  0x47   : > { %p2506_p2 = por %p187_p6, %p50_p9  ;;  %p1985_p7 = scmp.lt.s32.totalorder %s2323_s26, 2 }
  0x48   : > { %s2511_s30 = scalar_select %p41_p13, %s2311_s23, %s43_s18  }
  0x49   : > { %p2513_p8 = por %p193_p4, %p56_p12  ;;  %s268_s9 = sand.u32 1, %s2311_s23  }
  0x4a   : > { %s1711_s27 = sshll.u32 %s2319_s25, 6  ;;  %s1710_s10 = sshll.u32 %s268_s9, 2 }
  0x4b   : > { %s2820_s7 = scalar_select %p2513_p8, 1, 0 }
  0x4c   : > { %s277_s12 = scalar_lea.hbm %s2801_s0, %s1711_s27  ;;  %s272_s16 = scalar_lea.vmem [#allocation5], %s1710_s10 }
  0x4d   : > { %s279_s14 = sshll.u32 %s272_s16, 4  ;;  %p2525_p9 = pnand %p1985_p7, %p2490_p11  ;;  %s280_s14 = int_to_ptr.vmem [resolvable:$true] %s279_s14 }
  0x4e   : > { %s269_s8 = scalar_lea.sflag [#allocation6], %s268_s9  ;;  %s2220_s18 = scalar_lea.vmem %s280_s14, 64 }
  0x4f   : > { %p2209_p10 = pneg %p2525_p9  ;;  %p2221_p12 = scmp.ne.s32.totalorder %s280_s14, %s2220_s18 }
  0x50   : > { %s2331_s2 = smov [#allocation5]  }
  0x51   : > { %p2223_p6 = pnand %p2221_p12, %p2209_p10  ;;  %s2225_s3 = sshll.u32 %s2331_s2, 4  ;;  %s2226_s3 = int_to_ptr.vmem [resolvable:$false] %s2225_s3 }
  0x52   : > { %s2227_s27 = scalar_lea.vmem %s2226_s3, 128  ;;  %p2228_p4 = scmp.lt.s32.totalorder %s280_s14, %s2226_s3 }
  0x53   : > { %p2224_p13 = pneg %p2223_p6  ;;  %p2229_p5 = scmp.lt.s32.totalorder %s2227_s27, %s2220_s18 }
  0x55   : > { %p2230_p8 = por %p2229_p5, %p2228_p4 }
  0x57   : > { %p2231_p11 = pnand %p2230_p8, %p2224_p13 }
  0x59   : > { %2234 = shalt.err (!%p2231_p11)
}
  0x5a   : > { %1976 = dma.hbm_to_vmem [thread:$0]  (!%p2525_p9), %s277_s12, 64, %s280_s14, %s269_s8  }
  0x5b   : > { %288 = sbr.rel (%p2423_p3) target bundleno = 1398 (0x576), region = 44  ;;  %s2536_s19 = sand.u32 (!%p2423_p3), 1, %s2307_s22  }
  0x5c   : > { %s1713_s2 = sshll.u32 (!%p2423_p3), %s2536_s19, 2  ;;  %s291_s9 = scalar_lea.sflag (!%p2423_p3), [#allocation6], %s2536_s19 }
  0x5d   : > { %s2540_s10 = scalar_lea.vmem (!%p2423_p3), [#allocation5], %s1713_s2 }
  0x60   : > { %2286 = dma.done.wait (%p2502_p0), %s291_s9, 64  }
  0x61   : > { %2288 = vsyncadd (%p2502_p0), %s291_s9, 4294967232 }
  0x62   : > { %2290 = dma.done.wait (%p2418_p1), [#allocation9], 512  }
  0x63   : > { %2292 = vsyncadd (%p2418_p1), [#allocation9], 4294966784 }
  0x64   : > { %2294 = dma.done.wait (%p2418_p1), [#allocation12], 512  }
  0x65   : > { %2296 = vsyncadd (%p2418_p1), [#allocation12], 4294966784  ;;  %v2332_v0 = vmov 0.0   ;;  %vm2333_vm0 = vmmov 0   ;;  %v2061_v1 = vld [vmem:[#allocation10 + $0x8] sm:$0xff]   ;;  %v2062_v2 = vld [vmem:[#allocation10] sm:$0xff]   ;;  %v533_v51 = vlaneseq }
  0x66   : > { %1812 = vmatprep.subr.bf16.mxu0 %v2332_v0  ;;  %1816 = vmatprep.mubr.msk.bf16.mxu0 %vm2333_vm0, %v2332_v0  ;;  %v344_v3 = vld [vmem:[%s2540_s10] sm:$0xf]  ;;  %v2063_v4 = vld [vmem:[#allocation8 + $0x8] sm:$0xff]   ;;  %vm361_vm1 = vcmask 261120   ;;  %v2066_v6 = vld [vmem:[#allocation11] sm:$0xff]   ;;  %vm406_vm2 = vcmask 257024  }
  0x67   : > { %1820 = vmatprep.subr.bf16.mxu1 %v2332_v0  ;;  %1824 = vmatprep.mubr.msk.bf16.mxu1 %vm2333_vm0, %v2332_v0  ;;  %v2065_v5 = vld [vmem:[#allocation11 + $0x8] sm:$0xff]   ;;  %v2064_v7 = vld [vmem:[#allocation8] sm:$0xff]   ;;  %v471_v8 = vld [vmem:[%s2540_s10] sm:$0xf]  ;;  %vm542_vm3 = vcmask 31744   ;;  %s2334_s1 = smov 120  }
  0x68   : > { %1813 = vmatpush3.bf16.msra.mxu0 %v2061_v1  ;;  %1821 = vmatpush3.bf16.msra.mxu1 %v2065_v5  ;;  %s2335_s3 = smov 124   ;;  %s2336_s28 = smov 116   ;;  %vm604_vm4 = vcmask 1043456   ;;  %v534_v52 = vshrl.u32 %v533_v51, 7  ;;  %v538_v53 = vand.u32 127, %v533_v51  ;;  %vm590_vm6 = vcmask 64512  }
  0x69   : > { %1814 = vmatprep.subr.bf16.mxu0 %v2332_v0  ;;  %1822 = vmatprep.subr.bf16.mxu1 %v2332_v0  ;;  %s2337_s29 = smov 112   ;;  %s2338_s15 = smov 108   ;;  %vm651_vm7 = vcmask 27648   ;;  %vm778_vm8 = vcmask 60448   ;;  %vm898_vm9 = vcmask 93248   ;;  %vm1018_vm10 = vcmask 126048  }
  0x6a   : > { %s2339_s11 = smov 104   ;;  %s2340_s13 = smov 100   ;;  %vm2641_vm5 = vcmp.eq.s32.totalorder %v534_v52, %v538_v53  ;;  %vm1138_vm11 = vcmask 158848   ;;  %vm1258_vm12 = vcmask 191648   ;;  %vm1378_vm13 = vcmask 224448  }
  0x6b   : > { %s2341_s12 = smov 4   ;;  %s2342_s16 = smov 8   ;;  %vm1498_vm14 = vcmask 257248  }
  0x6c   : > { %1815 = vmatpush3.bf16.msra.mxu0 %v2062_v2  ;;  %1823 = vmatpush3.bf16.msra.mxu1 %v2066_v6  ;;  %s2343_s14 = smov 12   ;;  %s2344_s8 = smov 16  }
  0x6d   : > { %1828 = vmatprep.subr.bf16.mxu0 %v2332_v0  ;;  %1836 = vmatprep.subr.bf16.mxu1 %v2332_v0  ;;  %s2345_s18 = smov 20   ;;  %s2346_s27 = smov 24  }
  0x6e   : > { %s2347_s2 = smov 28   ;;  %s1718_s9 = sshll.u32 %s2536_s19, 3 }
  0x6f   : > { %1817 = vmatmul.mubr.msk.bf16.vlgmr.msra.gmra.mxu0 %vm361_vm1, %v344_v3  ;;  %1825 = vmatmul.mubr.msk.bf16.vlgmr.msra.gmra.mxu1 %vm361_vm1, %v344_v3 }
  0x70   : > { %1829 = vmatpush3.bf16.msra.mxu0 %v2063_v4  ;;  %1832 = vmatprep.mubr.msk.bf16.mxu0 %vm2333_vm0, %v2332_v0 }
  0x71   : > { %1830 = vmatprep.subr.bf16.mxu0 %v2332_v0  ;;  %1838 = vmatprep.mubr.msk.bf16.mxu1 %vm2333_vm0, %v2332_v0 }
  0x74   : > { %1831 = vmatpush3.bf16.msra.mxu0 %v2064_v7 }
  0x75   : > { %1842 = vmatprep.subr.bf16.mxu0 %v2332_v0 }
  0x77   : > { %1833 = vmatmul.mubr.msk.bf16.vlgmr.msra.gmra.mxu0 %vm361_vm1, %v471_v8 }
  0x78   : > { %1844 = vmatprep.mubr.msk.bf16.mxu0 %vm2333_vm0, %v2332_v0 }
 0x12f   : > { %v399_v9 = vpop.f32.mrf.mxu0  ;;  %v458_v22 = vpop.f32.mrf.mxu1 }
 0x130   : > { %v405_v10 = vpack.c.bf16 %v399_v9, %v399_v9  ;;  %v464_v23 = vpack.c.bf16 %v458_v22, %v458_v22 }
 0x131   : > { %v1818_v11 = vpop.f32.mrf.mxu0  ;;  %v1826_v24 = vpop.f32.mrf.mxu1 }
 0x132   : > { %407 = vst.msk [vmem:[#allocation2] sm:$0xf] %vm406_vm2, %v405_v10  ;;  %465 = vst.msk [vmem:[#allocation3] sm:$0xf] %vm406_vm2, %v464_v23 }
 0x133   : > { %v402_v12 = vpop.f32.mrf.mxu0  ;;  %v461_v25 = vpop.f32.mrf.mxu1 }
 0x135   : > { %v1819_v13 = vpop.f32.mrf.mxu0  ;;  %v1827_v26 = vpop.f32.mrf.mxu1 }
 0x137   : > { %v526_v14 = vpop.f32.mrf.mxu0 }
 0x138   : > { %v532_v20 = vpack.c.bf16 %v526_v14, %v526_v14 }
 0x139   : > { %v540_v15 = vld [vmem:[#allocation2] sm:$0xf]  ;;  %v1834_v16 = vpop.f32.mrf.mxu0  ;;  %v541_v27 = vld [vmem:[#allocation3] sm:$0xf] }
 0x13a   : > { %v547_v17 = vsel %vm542_vm3, %v540_v15, 0  ;;  %v1730_v18 = vcombine.low %v540_v15, %v540_v15  ;;  %v2598_v28 = vcombine.low %v541_v27, %v541_v27  ;;  %v606_v29 = vsel %vm604_vm4, %v541_v27, 0 }
 0x13b   : > { %1837 = vmatpush3.bf16.xpose.msra.mxu1 %v547_v17  ;;  %v529_v19 = vpop.f32.mrf.mxu0  ;;  %1843 = vmatpush3.bf16.msra.mxu0 %v606_v29 }
 0x13c   : > { %782 = vrot.lane.b32.xlu1 %v1730_v18, %s2334_s1  ;;  %659 = vrot.lane.b32.xlu0 %v1730_v18, %s2335_s3 }
 0x13d   : > { %v1835_v21 = vpop.f32.mrf.mxu0  ;;  %1848 = vmatprep.subr.bf16.mxu1 %v2332_v0  ;;  %1854 = vmatprep.subr.bf16.mxu0 %v2332_v0 }
 0x140   : > { %780 = vrot.lane.b32.xlu1 %v532_v20, %s2334_s1  ;;  %654 = vrot.lane.b32.xlu0 %v532_v20, %s2335_s3 }
 0x142   : > { %1839 = vmatmul.mubr.msk.bf16.vlgmr.msra.gmra.mxu1 %vm542_vm3, %v532_v20 }
 0x143   : > { %1850 = vmatprep.mubr.msk.bf16.mxu1 %vm2333_vm0, %v2332_v0 }
 0x144   : > { %900 = vrot.lane.b32.xlu1 %v532_v20, %s2336_s28  ;;  %902 = vrot.lane.b32.xlu0 %v1730_v18, %s2336_s28 }
 0x148   : > { %1020 = vrot.lane.b32.xlu1 %v532_v20, %s2337_s29  ;;  %1022 = vrot.lane.b32.xlu0 %v1730_v18, %s2337_s29 }
 0x14c   : > { %1140 = vrot.lane.b32.xlu1 %v532_v20, %s2338_s15  ;;  %1142 = vrot.lane.b32.xlu0 %v1730_v18, %s2338_s15 }
 0x150   : > { %1260 = vrot.lane.b32.xlu1 %v532_v20, %s2339_s11  ;;  %1262 = vrot.lane.b32.xlu0 %v1730_v18, %s2339_s11 }
 0x154   : > { %1380 = vrot.lane.b32.xlu1 %v532_v20, %s2340_s13  ;;  %1382 = vrot.lane.b32.xlu0 %v1730_v18, %s2340_s13 }
 0x158   : > { %721 = vrot.lane.b32.xlu0 %v2598_v28, %s2335_s3  ;;  %841 = vrot.lane.b32.xlu1 %v2598_v28, %s2334_s1  ;;  %s1758_s3 = sshll.u32 %s2315_s24, 7  ;;  %s2348_s24 = smov [#allocation14]  }
 0x1ae   : > { %v660_v30 = vpop.permute.xlu0 %659  ;;  %v783_v32 = vpop.permute.xlu1 %782 }
 0x1af   : > { %v665_v31 = vsel %vm542_vm3, %v660_v30, 0  ;;  %v788_v34 = vsel %vm542_vm3, %v783_v32, 0 }
 0x1b0   : > { %1849 = vmatpush3.bf16.xpose.msra.mxu1 %v665_v31 }
 0x1b1   : > { %1860 = vmatprep.subr.bf16.mxu1 %v2332_v0 }
 0x1b2   : > { %v655_v33 = vpop.permute.xlu0 %654  ;;  %v781_v36 = vpop.permute.xlu1 %780 }
 0x1b6   : > { %v903_v35 = vpop.permute.xlu0 %902  ;;  %v901_v39 = vpop.permute.xlu1 %900 }
 0x1b7   : > { %1851 = vmatmul.mubr.msk.bf16.vlgmr.msra.gmra.mxu1 %vm542_vm3, %v655_v33  ;;  %v908_v37 = vsel %vm542_vm3, %v903_v35, 0 }
 0x1b8   : > { %1861 = vmatpush3.bf16.xpose.msra.mxu1 %v788_v34  ;;  %1862 = vmatprep.mubr.msk.bf16.mxu1 %vm2333_vm0, %v2332_v0 }
 0x1b9   : > { %1872 = vmatprep.subr.bf16.mxu1 %v2332_v0 }
 0x1ba   : > { %v1023_v38 = vpop.permute.xlu0 %1022  ;;  %v1021_v42 = vpop.permute.xlu1 %1020 }
 0x1bb   : > { %v1028_v40 = vsel %vm542_vm3, %v1023_v38, 0 }
 0x1be   : > { %v1143_v41 = vpop.permute.xlu0 %1142  ;;  %v1141_v45 = vpop.permute.xlu1 %1140 }
 0x1bf   : > { %1863 = vmatmul.mubr.msk.bf16.vlgmr.msra.gmra.mxu1 %vm542_vm3, %v781_v36  ;;  %v1148_v43 = vsel %vm542_vm3, %v1143_v41, 0 }
 0x1c0   : > { %1873 = vmatpush3.bf16.xpose.msra.mxu1 %v908_v37  ;;  %1874 = vmatprep.mubr.msk.bf16.mxu1 %vm2333_vm0, %v2332_v0 }
 0x1c1   : > { %1884 = vmatprep.subr.bf16.mxu1 %v2332_v0 }
 0x1c2   : > { %v1263_v44 = vpop.permute.xlu0 %1262  ;;  %v1261_v48 = vpop.permute.xlu1 %1260 }
 0x1c3   : > { %v1268_v46 = vsel %vm542_vm3, %v1263_v44, 0 }
 0x1c6   : > { %v1383_v47 = vpop.permute.xlu0 %1382  ;;  %v1381_v50 = vpop.permute.xlu1 %1380 }
 0x1c7   : > { %1875 = vmatmul.mubr.msk.bf16.vlgmr.msra.gmra.mxu1 %vm542_vm3, %v901_v39  ;;  %v1388_v49 = vsel %vm542_vm3, %v1383_v47, 0 }
 0x1c8   : > { %1885 = vmatpush3.bf16.xpose.msra.mxu1 %v1028_v40  ;;  %1886 = vmatprep.mubr.msk.bf16.mxu1 %vm2333_vm0, %v2332_v0 }
 0x1c9   : > { %1896 = vmatprep.subr.bf16.mxu1 %v2332_v0 }
 0x1ca   : > { %v722_v12 = vpop.permute.xlu0 %721 }
 0x1cb   : > { %v727_v31 = vsel %vm604_vm4, %v722_v12, 0 }
 0x1cf   : > { %1887 = vmatmul.mubr.msk.bf16.vlgmr.msra.gmra.mxu1 %vm542_vm3, %v1021_v42 }
 0x1d0   : > { %1897 = vmatpush3.bf16.xpose.msra.mxu1 %v1148_v43  ;;  %1898 = vmatprep.mubr.msk.bf16.mxu1 %vm2333_vm0, %v2332_v0 }
 0x1d1   : > { %1908 = vmatprep.subr.bf16.mxu1 %v2332_v0 }
 0x1d7   : > { %1899 = vmatmul.mubr.msk.bf16.vlgmr.msra.gmra.mxu1 %vm542_vm3, %v1141_v45 }
 0x1d8   : > { %1909 = vmatpush3.bf16.xpose.msra.mxu1 %v1268_v46  ;;  %1910 = vmatprep.mubr.msk.bf16.mxu1 %vm2333_vm0, %v2332_v0 }
 0x1d9   : > { %1920 = vmatprep.subr.bf16.mxu1 %v2332_v0 }
 0x1df   : > { %1911 = vmatmul.mubr.msk.bf16.vlgmr.msra.gmra.mxu1 %vm542_vm3, %v1261_v48  ;;  %v842_v48 = vpop.permute.xlu1 %841 }
 0x1e0   : > { %1921 = vmatpush3.bf16.xpose.msra.mxu1 %v1388_v49  ;;  %1922 = vmatprep.mubr.msk.bf16.mxu1 %vm2333_vm0, %v2332_v0 }
 0x1e1   : > { %1932 = vmatprep.subr.bf16.mxu1 %v2332_v0 }
 0x1e7   : > { %1923 = vmatmul.mubr.msk.bf16.vlgmr.msra.gmra.mxu1 %vm542_vm3, %v1381_v50 }
 0x1e8   : > { %1936 = vmatprep.mubr.msk.bf16.mxu1 %vm2333_vm0, %v2332_v0 }
 0x202   : > { %v583_v55 = vpop.f32.mrf.mxu1 }
 0x203   : > { %v589_v56 = vsel %vm2641_vm5, -inf, %v583_v55 }
 0x204   : > { %v1840_v57 = vpop.f32.mrf.mxu1  ;;  %v591_v58 = vsel %vm590_vm6, %v589_v56, -inf }
 0x205   : > { %592 = vmax.xlane.f32.xlu0 %v591_v58 }
 0x206   : > { %v586_v59 = vpop.f32.mrf.mxu1 }
 0x208   : > { %v1841_v60 = vpop.f32.mrf.mxu1 }
 0x277   : > { %v701_v61 = vpop.f32.mrf.mxu1 }
 0x278   : > { %v2650_v62 = vsel %vm2641_vm5, -inf, %v701_v61 }
 0x279   : > { %v1852_v63 = vpop.f32.mrf.mxu1  ;;  %v708_v1 = vsel %vm590_vm6, %v2650_v62, -inf }
 0x27a   : > { %709 = vmax.xlane.f32.xlu1 %v708_v1 }
 0x27b   : > { %v704_v2 = vpop.f32.mrf.mxu1 }
 0x27d   : > { %v1853_v3 = vpop.f32.mrf.mxu1 }
 0x27f   : > { %v824_v4 = vpop.f32.mrf.mxu1 }
 0x280   : > { %v2656_v5 = vsel %vm2641_vm5, -inf, %v824_v4 }
 0x281   : > { %v1864_v6 = vpop.f32.mrf.mxu1  ;;  %v831_v7 = vsel %vm590_vm6, %v2656_v5, -inf }
 0x282   : > { %832 = vmax.xlane.f32.xlu0 %v831_v7 }
 0x283   : > { %v827_v8 = vpop.f32.mrf.mxu1 }
 0x285   : > { %v1865_v9 = vpop.f32.mrf.mxu1 }
 0x287   : > { %v944_v10 = vpop.f32.mrf.mxu1 }
 0x288   : > { %v2662_v11 = vsel %vm2641_vm5, -inf, %v944_v10 }
 0x289   : > { %v1876_v13 = vpop.f32.mrf.mxu1  ;;  %v951_v14 = vsel %vm590_vm6, %v2662_v11, -inf }
 0x28a   : > { %952 = vmax.xlane.f32.xlu0 %v951_v14 }
 0x28b   : > { %961 = vrot.lane.b32.xlu1 %v2598_v28, %s2336_s28  ;;  %v947_v15 = vpop.f32.mrf.mxu1  ;;  %s338_s28 = scalar_lea.vmem [#allocation14], %s1718_s9 }
 0x28d   : > { %v1877_v16 = vpop.f32.mrf.mxu1 }
 0x28e   : > { %v593_v17 = vpop.xlane.xlu0 %592 }
 0x28f   : > { %v594_v18 = vsub.f32 %v589_v56, %v593_v17  ;;  %v1064_v19 = vpop.f32.mrf.mxu1 }
 0x290   : > { %v1070_v38 = vsel %vm2641_vm5, -inf, %v1064_v19 }
 0x291   : > { %v595_v20 = vmul.f32 1.442695, %v594_v18  ;;  %v1888_v21 = vpop.f32.mrf.mxu1  ;;  %v1071_v41 = vsel %vm590_vm6, %v1070_v38, -inf }
 0x293   : > { %2071 = vpow2.f32 %v595_v20  ;;  %v1067_v22 = vpop.f32.mrf.mxu1 }
 0x295   : > { %v1889_v23 = vpop.f32.mrf.mxu1 }
 0x297   : > { %v1184_v24 = vpop.f32.mrf.mxu1 }
 0x298   : > { %v1190_v42 = vsel %vm2641_vm5, -inf, %v1184_v24 }
 0x299   : > { %v1900_v25 = vpop.f32.mrf.mxu1  ;;  %v1191_v43 = vsel %vm590_vm6, %v1190_v42, -inf }
 0x29b   : > { %v1187_v26 = vpop.f32.mrf.mxu1 }
 0x29d   : > { %v1901_v27 = vpop.f32.mrf.mxu1 }
 0x29f   : > { %v1304_v29 = vpop.f32.mrf.mxu1 }
 0x2a0   : > { %v2668_v30 = vpop.eup %2071  ;;  %1081 = vrot.lane.b32.xlu0 %v2598_v28, %s2337_s29  ;;  %v2690_v46 = vsel %vm2641_vm5, -inf, %v1304_v29  ;;  %s1583_s29 = sshll.u32 %s338_s28, 4  ;;  %s2755_s29 = int_to_ptr.vmem [resolvable:$true] %s1583_s29 }
 0x2a1   : > { %v1912_v32 = vpop.f32.mrf.mxu1  ;;  %v600_v33 = vpack.c.bf16 %v2668_v30, %v2668_v30  ;;  %v1311_v47 = vsel %vm590_vm6, %v2690_v46, -inf }
 0x2a3   : > { %1845 = vmatmul.mubr.msk.bf16.vlgmr.msra.gmra.mxu0 %vm590_vm6, %v600_v33  ;;  %v1307_v34 = vpop.f32.mrf.mxu1 }
 0x2a4   : > { %1855 = vmatpush3.bf16.msra.mxu0 %v727_v31  ;;  %1856 = vmatprep.mubr.msk.bf16.mxu0 %vm2333_vm0, %v2332_v0 }
 0x2a5   : > { %v1913_v35 = vpop.f32.mrf.mxu1  ;;  %1866 = vmatprep.subr.bf16.mxu0 %v2332_v0 }
 0x2a7   : > { %v1424_v36 = vpop.f32.mrf.mxu1 }
 0x2a8   : > { %v1430_v44 = vsel %vm2641_vm5, -inf, %v1424_v36 }
 0x2a9   : > { %v1924_v37 = vpop.f32.mrf.mxu1  ;;  %v1431_v45 = vsel %vm590_vm6, %v1430_v44, -inf }
 0x2ab   : > { %v1427_v39 = vpop.f32.mrf.mxu1 }
 0x2ac   : > { %v597_v39 = vsel %vm590_vm6, %v2668_v30, 0.0 }
 0x2ad   : > { %v1925_v40 = vpop.f32.mrf.mxu1 }
 0x2af   : > { %1072 = vmax.xlane.f32.xlu1 %v1071_v41 }
 0x2b3   : > { %1192 = vmax.xlane.f32.xlu1 %v1191_v43 }
 0x2b7   : > { %1432 = vmax.xlane.f32.xlu1 %v1431_v45 }
 0x2bf   : > { %1312 = vmax.xlane.f32.xlu0 %v1311_v47 }
 0x2c8   : > { %1201 = vrot.lane.b32.xlu1 %v2598_v28, %s2338_s15 }
 0x2d5   : > { %1321 = vrot.lane.b32.xlu0 %v2598_v28, %s2339_s11 }
 0x2d9   : > { %1441 = vrot.lane.b32.xlu0 %v2598_v28, %s2340_s13  ;;  %v847_v28 = vsel %vm604_vm4, %v842_v48, 0  ;;  %s2753_s13 = scalar_lea.hbm %s2807_s6, %s1758_s3 }
 0x303   : > { %v710_v49 = vpop.xlane.xlu1 %709 }
 0x304   : > { %v711_v50 = vsub.f32 %v2650_v62, %v710_v49 }
 0x306   : > { %v712_v51 = vmul.f32 1.442695, %v711_v50 }
 0x307   : > { %v962_v62 = vpop.permute.xlu1 %961 }
 0x308   : > { %2073 = vpow2.f32 %v712_v51  ;;  %v967_v2 = vsel %vm604_vm4, %v962_v62, 0 }
 0x30b   : > { %v833_v52 = vpop.xlane.xlu0 %832 }
 0x30c   : > { %v834_v53 = vsub.f32 %v2656_v5, %v833_v52 }
 0x30e   : > { %v835_v54 = vmul.f32 1.442695, %v834_v53 }
 0x310   : > { %2075 = vpow2.f32 %v835_v54 }
 0x313   : > { %v953_v55 = vpop.xlane.xlu0 %952 }
 0x314   : > { %v954_v56 = vsub.f32 %v2662_v11, %v953_v55 }
 0x315   : > { %v2074_v57 = vpop.eup %2073 }
 0x316   : > { %v955_v58 = vmul.f32 1.442695, %v954_v56  ;;  %v714_v59 = vsel %vm590_vm6, %v2074_v57, 0.0  ;;  %v717_v60 = vpack.c.bf16 %v2074_v57, %v2074_v57 }
 0x317   : > { %715 = vadd.xlane.f32.xlu1 %v714_v59  ;;  %v1082_v4 = vpop.permute.xlu0 %1081 }
 0x318   : > { %2077 = vpow2.f32 %v955_v58  ;;  %1857 = vmatmul.mubr.msk.bf16.vlgmr.msra.gmra.mxu0 %vm590_vm6, %v717_v60  ;;  %v1087_v7 = vsel %vm604_vm4, %v1082_v4, 0 }
 0x319   : > { %1867 = vmatpush3.bf16.msra.mxu0 %v847_v28  ;;  %1868 = vmatprep.mubr.msk.bf16.mxu0 %vm2333_vm0, %v2332_v0 }
 0x31a   : > { %1878 = vmatprep.subr.bf16.mxu0 %v2332_v0 }
 0x31d   : > { %v2076_v61 = vpop.eup %2075 }
 0x31e   : > { %v837_v63 = vsel %vm590_vm6, %v2076_v61, 0.0  ;;  %v840_v1 = vpack.c.bf16 %v2076_v61, %v2076_v61 }
 0x31f   : > { %838 = vadd.xlane.f32.xlu0 %v837_v63 }
 0x320   : > { %1869 = vmatmul.mubr.msk.bf16.vlgmr.msra.gmra.mxu0 %vm590_vm6, %v840_v1 }
 0x321   : > { %1879 = vmatpush3.bf16.msra.mxu0 %v967_v2  ;;  %1880 = vmatprep.mubr.msk.bf16.mxu0 %vm2333_vm0, %v2332_v0 }
 0x322   : > { %1890 = vmatprep.subr.bf16.mxu0 %v2332_v0 }
 0x325   : > { %v2078_v3 = vpop.eup %2077 }
 0x326   : > { %v957_v5 = vsel %vm590_vm6, %v2078_v3, 0.0  ;;  %v960_v6 = vpack.c.bf16 %v2078_v3, %v2078_v3 }
 0x327   : > { %958 = vadd.xlane.f32.xlu0 %v957_v5 }
 0x328   : > { %1881 = vmatmul.mubr.msk.bf16.vlgmr.msra.gmra.mxu0 %vm590_vm6, %v960_v6 }
 0x329   : > { %1891 = vmatpush3.bf16.msra.mxu0 %v1087_v7  ;;  %1892 = vmatprep.mubr.msk.bf16.mxu0 %vm2333_vm0, %v2332_v0 }
 0x32a   : > { %1902 = vmatprep.subr.bf16.mxu0 %v2332_v0 }
 0x338   : > { %v1073_v8 = vpop.xlane.xlu1 %1072 }
 0x339   : > { %v1074_v9 = vsub.f32 %v1070_v38, %v1073_v8 }
 0x33b   : > { %v1075_v10 = vmul.f32 1.442695, %v1074_v9 }
 0x33c   : > { %v1193_v11 = vpop.xlane.xlu1 %1192 }
 0x33d   : > { %2079 = vpow2.f32 %v1075_v10  ;;  %v1194_v12 = vsub.f32 %v1190_v42, %v1193_v11 }
 0x33f   : > { %v1195_v13 = vmul.f32 1.442695, %v1194_v12 }
 0x340   : > { %v1433_v14 = vpop.xlane.xlu1 %1432 }
 0x341   : > { %2081 = vpow2.f32 %v1195_v13  ;;  %v1434_v15 = vsub.f32 %v1430_v44, %v1433_v14 }
 0x343   : > { %v1435_v16 = vmul.f32 1.442695, %v1434_v15 }
 0x344   : > { %v1202_v20 = vpop.permute.xlu1 %1201 }
 0x345   : > { %2083 = vpow2.f32 %v1435_v16  ;;  %v1207_v24 = vsel %vm604_vm4, %v1202_v20, 0 }
 0x348   : > { %v1313_v17 = vpop.xlane.xlu0 %1312 }
 0x349   : > { %v1314_v18 = vsub.f32 %v2690_v46, %v1313_v17 }
 0x34a   : > { %v2080_v19 = vpop.eup %2079 }
 0x34b   : > { %v1315_v21 = vmul.f32 1.442695, %v1314_v18  ;;  %v1077_v22 = vsel %vm590_vm6, %v2080_v19, 0.0  ;;  %v1080_v23 = vpack.c.bf16 %v2080_v19, %v2080_v19 }
 0x34c   : > { %1078 = vadd.xlane.f32.xlu1 %v1077_v22  ;;  %v1322_v29 = vpop.permute.xlu0 %1321 }
 0x34d   : > { %2085 = vpow2.f32 %v1315_v21  ;;  %1893 = vmatmul.mubr.msk.bf16.vlgmr.msra.gmra.mxu0 %vm590_vm6, %v1080_v23  ;;  %v1327_v33 = vsel %vm604_vm4, %v1322_v29, 0  ;;  %v2069_v29 = vld [vmem:[#allocation13 + $0x8] sm:$0xff]  }
 0x34e   : > { %v2082_v25 = vpop.eup %2081  ;;  %1903 = vmatpush3.bf16.msra.mxu0 %v1207_v24  ;;  %1904 = vmatprep.mubr.msk.bf16.mxu0 %vm2333_vm0, %v2332_v0 }
 0x34f   : > { %v1197_v26 = vsel %vm590_vm6, %v2082_v25, 0.0  ;;  %1914 = vmatprep.subr.bf16.mxu0 %v2332_v0  ;;  %v1200_v32 = vpack.c.bf16 %v2082_v25, %v2082_v25  ;;  %1933 = vmatpush3.bf16.msra.mxu1 %v2069_v29 }
 0x350   : > { %1198 = vadd.xlane.f32.xlu0 %v1197_v26  ;;  %v1442_v35 = vpop.permute.xlu0 %1441  ;;  %1934 = vmatprep.subr.bf16.mxu1 %v2332_v0 }
 0x351   : > { %v1447_v38 = vsel %vm604_vm4, %v1442_v35, 0 }
 0x352   : > { %v2084_v27 = vpop.eup %2083 }
 0x353   : > { %v1437_v31 = vsel %vm590_vm6, %v2084_v27, 0.0  ;;  %v1440_v41 = vpack.c.bf16 %v2084_v27, %v2084_v27 }
 0x354   : > { %1438 = vadd.xlane.f32.xlu0 %v1437_v31 }
 0x355   : > { %1905 = vmatmul.mubr.msk.bf16.vlgmr.msra.gmra.mxu0 %vm590_vm6, %v1200_v32 }
 0x356   : > { %1915 = vmatpush3.bf16.msra.mxu0 %v1327_v33  ;;  %1916 = vmatprep.mubr.msk.bf16.mxu0 %vm2333_vm0, %v2332_v0  ;;  %v2070_v33 = vld [vmem:[#allocation13] sm:$0xff]  }
 0x357   : > { %1926 = vmatprep.subr.bf16.mxu0 %v2332_v0  ;;  %1935 = vmatpush3.bf16.msra.mxu1 %v2070_v33 }
 0x35a   : > { %v2086_v34 = vpop.eup %2085 }
 0x35b   : > { %v1317_v36 = vsel %vm590_vm6, %v2086_v34, 0.0  ;;  %v1320_v37 = vpack.c.bf16 %v2086_v34, %v2086_v34 }
 0x35c   : > { %1318 = vadd.xlane.f32.xlu1 %v1317_v36 }
 0x35d   : > { %1917 = vmatmul.mubr.msk.bf16.vlgmr.msra.gmra.mxu0 %vm590_vm6, %v1320_v37 }
 0x35e   : > { %1927 = vmatpush3.bf16.msra.mxu0 %v1447_v38  ;;  %1928 = vmatprep.mubr.msk.bf16.mxu0 %vm2333_vm0, %v2332_v0 }
 0x360   : > { %598 = vadd.xlane.f32.xlu1 %v597_v39 }
 0x363   : > { %v642_v40 = vpop.f32.mrf.mxu0 }
 0x365   : > { %v1846_v42 = vpop.f32.mrf.mxu0  ;;  %1929 = vmatmul.mubr.msk.bf16.vlgmr.msra.gmra.mxu0 %vm590_vm6, %v1440_v41 }
 0x367   : > { %v645_v43 = vpop.f32.mrf.mxu0 }
 0x369   : > { %v1847_v44 = vpop.f32.mrf.mxu0 }
 0x3a0   : > { %v716_v45 = vpop.xlane.xlu1 %715 }
 0x3a1   : > { %2087 = vrcp.f32 %v716_v45 }
 0x3a8   : > { %v839_v46 = vpop.xlane.xlu0 %838 }
 0x3a9   : > { %2089 = vrcp.f32 %v839_v46 }
 0x3ae   : > { %v2088_v47 = vpop.eup %2087 }
 0x3b0   : > { %v959_v48 = vpop.xlane.xlu0 %958 }
 0x3b1   : > { %2091 = vrcp.f32 %v959_v48 }
 0x3b6   : > { %v2090_v54 = vpop.eup %2089 }
 0x3be   : > { %v2092_v62 = vpop.eup %2091 }
 0x3d5   : > { %v1079_v56 = vpop.xlane.xlu1 %1078 }
 0x3d8   : > { %v763_v49 = vpop.f32.mrf.mxu0 }
 0x3d9   : > { %v770_v50 = vmul.f32 %v2088_v47, %v763_v49  ;;  %v1199_v10 = vpop.xlane.xlu0 %1198 }
 0x3da   : > { %v1858_v51 = vpop.f32.mrf.mxu0 }
 0x3db   : > { %v1761_v52 = vpack.c.bf16 %v770_v50, %v770_v50  ;;  %v1753_v51 = vld [vmem:[%s2806_s5] ss:$0 sm:$0xff] }
 0x3dc   : > { %v766_v30 = vpop.f32.mrf.mxu0 }
 0x3dd   : > { %775 = vrot.lane.b32.xlu0 %v1761_v52, %s2341_s12  ;;  %v1439_v19 = vpop.xlane.xlu0 %1438  ;;  %s1569_s12 = scalar_lea.sflag [#allocation7], %s2536_s19 }
 0x3de   : > { %v1859_v53 = vpop.f32.mrf.mxu0 }
 0x3e0   : > { %v883_v55 = vpop.f32.mrf.mxu0 }
 0x3e1   : > { %v890_v57 = vmul.f32 %v2090_v54, %v883_v55 }
 0x3e2   : > { %v1870_v58 = vpop.f32.mrf.mxu0 }
 0x3e3   : > { %v1762_v59 = vpack.c.bf16 %v890_v57, %v890_v57 }
 0x3e4   : > { %v886_v60 = vpop.f32.mrf.mxu0 }
 0x3e5   : > { %v1319_v28 = vpop.xlane.xlu1 %1318  ;;  %895 = vrot.lane.b32.xlu1 %v1762_v59, %s2342_s16  ;;  %s2235_s16 = scalar_lea.vmem %s2755_s29, 128 }
 0x3e6   : > { %v1871_v61 = vpop.f32.mrf.mxu0  ;;  %p2236_p1 = scmp.ne.s32.totalorder %s2755_s29, %s2235_s16 }
 0x3e8   : > { %v1003_v63 = vpop.f32.mrf.mxu0  ;;  %p2237_p3 = pnand %p2236_p1, %p2506_p2 }
 0x3e9   : > { %v1010_v1 = vmul.f32 %v2092_v62, %v1003_v63  ;;  %v599_v2 = vpop.xlane.xlu1 %598 }
 0x3ea   : > { %2093 = vrcp.f32 %v599_v2  ;;  %v1882_v3 = vpop.f32.mrf.mxu0  ;;  %p2238_p5 = pneg %p2237_p3 }
 0x3eb   : > { %v1763_v4 = vpack.c.bf16 %v1010_v1, %v1010_v1  ;;  %2095 = vrcp.f32 %v1079_v56 }
 0x3ec   : > { %v1006_v5 = vpop.f32.mrf.mxu0  ;;  %2097 = vrcp.f32 %v1199_v10 }
 0x3ed   : > { %1015 = vrot.lane.b32.xlu1 %v1763_v4, %s2343_s14  ;;  %2099 = vrcp.f32 %v1319_v28  ;;  %s2239_s14 = sshll.u32 %s2348_s24, 4  ;;  %s2240_s14 = int_to_ptr.vmem [resolvable:$false] %s2239_s14 }
 0x3ee   : > { %v1883_v6 = vpop.f32.mrf.mxu0  ;;  %2101 = vrcp.f32 %v1439_v19  ;;  %p2242_p0 = scmp.lt.s32.totalorder %s2755_s29, %s2240_s14 }
 0x3f7   : > { %v2094_v7 = vpop.eup %2093 }
 0x3f8   : > { %v649_v8 = vmul.f32 %v2094_v7, %v642_v40  ;;  %v2096_v11 = vpop.eup %2095 }
 0x3f9   : > { %v2098_v18 = vpop.eup %2097 }
 0x3fa   : > { %v650_v9 = vpack.c.bf16 %v649_v8, %v649_v8  ;;  %v2100_v26 = vpop.eup %2099 }
 0x3fb   : > { %v2102_v37 = vpop.eup %2101 }
 0x3fc   : > { %652 = vst.msk [vmem:[#allocation4] sm:$0xf] %vm651_vm7, %v650_v9 }
 0x40d   : > { %v1123_v12 = vpop.f32.mrf.mxu0 }
 0x40e   : > { %v1130_v13 = vmul.f32 %v2096_v11, %v1123_v12 }
 0x40f   : > { %v1894_v14 = vpop.f32.mrf.mxu0 }
 0x410   : > { %v1764_v15 = vpack.c.bf16 %v1130_v13, %v1130_v13 }
 0x411   : > { %v1126_v16 = vpop.f32.mrf.mxu0 }
 0x412   : > { %1135 = vrot.lane.b32.xlu0 %v1764_v15, %s2344_s8  ;;  %s2241_s8 = scalar_lea.vmem %s2240_s14, 256 }
 0x413   : > { %v1895_v17 = vpop.f32.mrf.mxu0  ;;  %p2243_p8 = scmp.lt.s32.totalorder %s2241_s8, %s2235_s16 }
 0x415   : > { %v1243_v20 = vpop.f32.mrf.mxu0  ;;  %p2244_p7 = por %p2243_p8, %p2242_p0 }
 0x416   : > { %v1250_v21 = vmul.f32 %v2098_v18, %v1243_v20 }
 0x417   : > { %v1906_v22 = vpop.f32.mrf.mxu0  ;;  %p2245_p9 = pnand %p2244_p7, %p2238_p5 }
 0x418   : > { %v1765_v23 = vpack.c.bf16 %v1250_v21, %v1250_v21 }
 0x419   : > { %v1246_v24 = vpop.f32.mrf.mxu0 }
 0x41a   : > { %1255 = vrot.lane.b32.xlu1 %v1765_v23, %s2345_s18 }
 0x41b   : > { %v1907_v25 = vpop.f32.mrf.mxu0 }
 0x41d   : > { %v1363_v27 = vpop.f32.mrf.mxu0 }
 0x41e   : > { %v1370_v31 = vmul.f32 %v2100_v26, %v1363_v27 }
 0x41f   : > { %v1918_v32 = vpop.f32.mrf.mxu0 }
 0x420   : > { %v1766_v34 = vpack.c.bf16 %v1370_v31, %v1370_v31 }
 0x421   : > { %v1366_v35 = vpop.f32.mrf.mxu0 }
 0x422   : > { %1375 = vrot.lane.b32.xlu0 %v1766_v34, %s2346_s27 }
 0x423   : > { %v1919_v36 = vpop.f32.mrf.mxu0 }
 0x425   : > { %v1483_v38 = vpop.f32.mrf.mxu0 }
 0x426   : > { %v1490_v39 = vmul.f32 %v2102_v37, %v1483_v38 }
 0x427   : > { %v1930_v40 = vpop.f32.mrf.mxu0 }
 0x428   : > { %v1767_v41 = vpack.c.bf16 %v1490_v39, %v1490_v39 }
 0x429   : > { %v1486_v42 = vpop.f32.mrf.mxu0 }
 0x42a   : > { %1495 = vrot.lane.b32.xlu1 %v1767_v41, %s2347_s2 }
 0x42b   : > { %v1931_v43 = vpop.f32.mrf.mxu0 }
 0x44f   : > { %v776_v44 = vpop.permute.xlu0 %775 }
 0x450   : > { %779 = vst.msk [vmem:[#allocation4] sm:$0xf] %vm778_vm8, %v776_v44 }
 0x457   : > { %v896_v45 = vpop.permute.xlu1 %895 }
 0x458   : > { %899 = vst.msk [vmem:[#allocation4] sm:$0xf] %vm898_vm9, %v896_v45 }
 0x45f   : > { %v1016_v0 = vpop.permute.xlu1 %1015 }
 0x460   : > { %1019 = vst.msk [vmem:[#allocation4] sm:$0xf] %vm1018_vm10, %v1016_v0 }
 0x484   : > { %v1136_v46 = vpop.permute.xlu0 %1135 }
 0x485   : > { %1139 = vst.msk [vmem:[#allocation4] sm:$0xf] %vm1138_vm11, %v1136_v46 }
 0x48c   : > { %v1256_v47 = vpop.permute.xlu1 %1255 }
 0x48d   : > { %1259 = vst.msk [vmem:[#allocation4] sm:$0xf] %vm1258_vm12, %v1256_v47 }
 0x494   : > { %v1376_v48 = vpop.permute.xlu0 %1375 }
 0x495   : > { %1379 = vst.msk [vmem:[#allocation4] sm:$0xf] %vm1378_vm13, %v1376_v48 }
 0x49c   : > { %v1496_v49 = vpop.permute.xlu1 %1495 }
 0x49d   : > { %1499 = vst.msk [vmem:[#allocation4] sm:$0xf] %vm1498_vm14, %v1496_v49 }
 0x4a4   : > { %v1500_v50 = vld [vmem:[#allocation4] sm:$0xf] }
 0x4a5   : > { %1937 = vmatmul.mubr.msk.bf16.vlgmr.msra.gmra.mxu1 %vm361_vm1, %v1500_v50 }
 0x565   : > { %v1561_v52 = vpop.f32.mrf.mxu1 }
 0x566   : > { %v1562_v30 = vadd.f32 %v1753_v51, %v1561_v52 }
 0x567   : > { %v1938_v53 = vpop.f32.mrf.mxu1 }
 0x568   : > { %1567 = vst [vmem:[%s338_s28] sm:$0xff] %v1562_v30 }
 0x569   : > { %v1564_v54 = vpop.f32.mrf.mxu1 }
 0x56a   : > { %2248 = shalt.err (!%p2245_p9)
}
 0x56b   : > { %s2249_s18 = scalar_lea.hbm %s2753_s13, 128  ;;  %s2253_s2 = scalar_lea.hbm %s2807_s6, 256 }
 0x56c   : > { %p2250_p10 = scmp.ne.s32.totalorder %s2753_s13, %s2249_s18  ;;  %p2254_p13 = scmp.lt.s32.totalorder %s2753_s13, %s2807_s6 }
 0x56d   : > { %p2255_p4 = scmp.lt.s32.totalorder %s2253_s2, %s2249_s18 }
 0x56e   : > { %p2251_p12 = pnand %p2250_p10, %p2506_p2 }
 0x56f   : > { %p2256_p11 = por %p2255_p4, %p2254_p13 }
 0x570   : > { %p2252_p6 = pneg %p2251_p12 }
 0x572   : > { %p2257_p1 = pnand %p2256_p11, %p2252_p6 }
 0x574   : > { %2260 = shalt.err (!%p2257_p1)
}
 0x575   : > { %1958 = dma.vmem_to_hbm [thread:$0]  (%p2506_p2), %s2755_s29, 128, %s2753_s13, %s1569_s12   ;;  %v1939_v55 = vpop.f32.mrf.mxu1 }
 0x576 PF: > { %s1595_s1 = sand.u32 1, %s2303_s21   ;;  %p2824_p3 = scmp.ne.s32.totalorder %s2820_s7, 0 }
 0x577   : > { %p2825_p5 = scmp.ge.s32.totalorder %s2323_s26, 2  ;;  %s1596_s3 = scalar_lea.sflag [#allocation7], %s1595_s1 }
 0x579   : > { %p1978_p0 = pnand %p2825_p5, %p2824_p3 }
 0x57b   : > { %p1979_p8 = pneg %p1978_p0 }
 0x57d   : > { %2298 = dma.done.wait (%p1979_p8), %s1596_s3, 128  }
 0x57e   : > { %2300 = vsyncadd (%p1979_p8), %s1596_s3, 4294967168  ;;  %s24_s26 = sadd.s32 1, %s2323_s26   ;;  %s2826_s21 = smov %s2307_s22 }
 0x57f   : > { %p21_p7 = scmp.ge.s32.totalorder %s24_s26, 4   ;;  %s2827_s22 = smov %s2311_s23 }
 0x580   : > { %s2828_s23 = smov %s2511_s30  ;;  %s2829_s24 = smov %s2319_s25 }
 0x581   : > { %s2830_s25 = smov %s2832_s17  ;;  %23 = sbr.rel (!%p21_p7) target bundleno = 12 (0xc), region = 110 }
 0x586   :  { %1601 = vsyncpa [#allocation6], 1 }
 0x587   :  { %1603 = vsyncpa [#allocation6 + $0x1], 1 }
 0x588   :  { %1604 = vsyncpa [#allocation9], 1 }
 0x589   :  { %1605 = vsyncpa [#allocation12], 1 }
 0x58a   :  { %1606 = vsyncpa [#allocation7], 1 }
 0x58b   :  { %1608 = vsyncpa [#allocation7 + $0x1], 1 }

// kernel: tpu_custom_call.1
= control target key start
LH: loop header
LB: loop body
LE: loop exit
PB: predicated region body
PF: predicated region fallthrough
CT: control target
= control target key end

     0   :  { %s2801_s0 = inlined_call_operand.hbm [shape: bf16[2,8,32], index: 0, kind: input, shape index: {}]   ;;  %s2802_s1 = inlined_call_operand.hbm [shape: bf16[32,32], index: 1, kind: input, shape index: {}]   ;;  %s2803_s2 = inlined_call_operand.hbm [shape: bf16[32,32], index: 2, kind: input, shape index: {}]   ;;  %s2804_s3 = inlined_call_operand.hbm [shape: bf16[32,32], index: 3, kind: input, shape index: {}]   ;;  %s2805_s4 = inlined_call_operand.hbm [shape: bf16[32,128], index: 4, kind: input, shape index: {}]   ;;  %s2806_s5 = inlined_call_operand.vmem [shape: f32[1,128], index: 5, kind: input, shape index: {}]   ;;  %s2807_s6 = inlined_call_operand.hbm [shape: f32[2,8,128], index: 6, kind: output, shape index: {}]  }
   0x1   :  { %2808 = sst [smem:[#allocation19_spill]] %s2802_s1 }
   0x2   :  { %2809 = sst [smem:[#allocation20_spill]] %s2803_s2 }
   0x3   :  { %2810 = sst [smem:[#allocation21_spill]] %s2804_s3 }
   0x4   :  { %11 = vsyncpa [#allocation6], 0 }
   0x5   :  { %13 = vsyncpa [#allocation6 + $0x1], 0 }
   0x6   :  { %14 = vsyncpa [#allocation9], 0 }
   0x7   :  { %15 = vsyncpa [#allocation12], 0 }
   0x8   :  { %16 = vsyncpa [#allocation7], 0 }
   0x9   :  { %18 = vsyncpa [#allocation7 + $0x1], 0  ;;  %s2384_s21 = smov 0   ;;  %s2386_s22 = smov 0  }
   0xa   :  { %s2388_s23 = smov 0   ;;  %s2390_s24 = smov 0  }
   0xb   :  { %s2392_s25 = smov 0   ;;  %s2394_s26 = smov 0  }
   0xc LB: > { %s1702_s27 = sadd.s32 4294967295, %s2323_s26   ;;  %p1704_p0 = scmp.ge.s32.totalorder %s2323_s26, 1  ;;  %s2323_s26 = sphi %s2394_s26, %s24_s26   ;;  %s2319_s25 = sphi %s2392_s25, %s2830_s25   ;;  %s2315_s24 = sphi %s2390_s24, %s2829_s24   ;;  %s2311_s23 = sphi %s2388_s23, %s2828_s23   ;;  %s2307_s22 = sphi %s2386_s22, %s2827_s22   ;;  %s2303_s21 = sphi %s2384_s21, %s2826_s21  }
   0xd   : > { %p2418_p1 = scmp.eq.s32.totalorder %s1702_s27, 0  ;;  %p200_p2 = scmp.lt.s32.totalorder %s2323_s26, 3 }
   0xe   : > { %s2325_s30 = smov [#allocation8]   ;;  %s2326_s9 = smov [#allocation11]  }
   0xf   : > { %p2423_p3 = pnand %p1704_p0, %p200_p2  ;;  %s212_s7 = sshll.u32 %s2325_s30, 4  ;;  %s213_s7 = int_to_ptr.vmem [resolvable:$true] %s212_s7 }
  0x10   : > { %s238_s10 = sshll.u32 %s2326_s9, 4  ;;  %s2327_s11 = smov [#allocation10]   ;;  %s239_s10 = int_to_ptr.vmem [resolvable:$true] %s238_s10 }
  0x11   : > { %p1960_p4 = pneg %p2423_p3  ;;  %s225_s12 = sshll.u32 %s2327_s11, 4  ;;  %s226_s12 = int_to_ptr.vmem [resolvable:$true] %s225_s12 }
  0x12   : > { %s2114_s13 = scalar_lea.vmem %s213_s7, 256  ;;  %p2122_p11 = scmp.lt.s32.totalorder %s213_s7, %s213_s7 }
  0x13   : > { %p2432_p6 = pnand %p1960_p4, %p2418_p1  ;;  %p2115_p8 = scmp.ne.s32.totalorder %s213_s7, %s2114_s13 }
  0x14   : > { %p2123_p12 = scmp.lt.s32.totalorder %s2114_s13, %s2114_s13 }
  0x15   : > { %p2105_p7 = pneg %p2432_p6 }
  0x16   : > { %p2124_p13 = por %p2123_p12, %p2122_p11 }
  0x17   : > { %p2117_p9 = pnand %p2115_p8, %p2105_p7 }
  0x19   : > { %p2118_p10 = pneg %p2117_p9 }
  0x1b   : > { %p2125_p0 = pnand %p2124_p13, %p2118_p10 }
  0x1d   : > { %2128 = shalt.err (!%p2125_p0)
}
  0x1e   : > { %s2328_s14 = smov 64   ;;  %s2329_s15 = smov 4  }
  0x1f   : > { %s2814_s1 = sld [smem:[#allocation19_spill]]  ;;  %s2140_s18 = scalar_lea.vmem %s239_s10, 256 }
  0x20   : > { %p2141_p2 = scmp.ne.s32.totalorder %s239_s10, %s2140_s18  ;;  %p2148_p9 = scmp.lt.s32.totalorder %s239_s10, %s239_s10 }
  0x21   : > { %p2149_p10 = scmp.lt.s32.totalorder %s2140_s18, %s2140_s18 }
  0x22   : > { %p2143_p4 = pnand %p2141_p2, %p2105_p7 }
  0x23   : > { %p2150_p11 = por %p2149_p10, %p2148_p9 }
  0x24   : > { %p2144_p8 = pneg %p2143_p4 }
  0x25   : > { %1963 = dma.hbm_to_vmem [thread:$0]  (!%p2432_p6), %s2814_s1, 256, %s213_s7, [#allocation9], %s2328_s14, %s2328_s14, %s2329_s15  }
  0x26   : > { %p2151_p12 = pnand %p2150_p11, %p2144_p8 }
  0x28   : > { %2154 = shalt.err (!%p2151_p12)
}
  0x29   : > { %s2815_s3 = sld [smem:[#allocation21_spill]]  ;;  %s2166_s30 = scalar_lea.vmem %s226_s12, 256 }
  0x2a   : > { %p2167_p13 = scmp.ne.s32.totalorder %s226_s12, %s2166_s30  ;;  %p2174_p4 = scmp.lt.s32.totalorder %s226_s12, %s226_s12 }
  0x2b   : > { %p2175_p8 = scmp.lt.s32.totalorder %s2166_s30, %s2166_s30 }
  0x2c   : > { %p2169_p0 = pnand %p2167_p13, %p2105_p7 }
  0x2d   : > { %p2176_p9 = por %p2175_p8, %p2174_p4 }
  0x2e   : > { %p2170_p2 = pneg %p2169_p0 }
  0x2f   : > { %1969 = dma.hbm_to_vmem [thread:$0]  (!%p2432_p6), %s2815_s3, 256, %s239_s10, [#allocation12], %s2328_s14, %s2328_s14, %s2329_s15  }
  0x30   : > { %p2177_p10 = pnand %p2176_p9, %p2170_p2 }
  0x32   : > { %2180 = shalt.err (!%p2177_p10)
}
  0x33   : > { %s2816_s2 = sld [smem:[#allocation20_spill]]  ;;  %s2330_s10 = smov [#allocation13]  }
  0x34   : > { %s251_s11 = sshll.u32 %s2330_s10, 4  ;;  %s252_s11 = int_to_ptr.vmem [resolvable:$true] %s251_s11 }
  0x35   : > { %s2192_s13 = scalar_lea.vmem %s252_s11, 256  ;;  %p2200_p0 = scmp.lt.s32.totalorder %s252_s11, %s252_s11 }
  0x36   : > { %p2193_p11 = scmp.ne.s32.totalorder %s252_s11, %s2192_s13  ;;  %p2201_p2 = scmp.lt.s32.totalorder %s2192_s13, %s2192_s13 }
  0x38   : > { %p2195_p12 = pnand %p2193_p11, %p2105_p7  ;;  %p2202_p4 = por %p2201_p2, %p2200_p0 }
  0x39   : > { %1966 = dma.hbm_to_vmem [thread:$0]  (!%p2432_p6), %s2816_s2, 256, %s226_s12, [#allocation9], %s2328_s14, %s2328_s14, %s2329_s15  }
  0x3a   : > { %p2196_p13 = pneg %p2195_p12 }
  0x3c   : > { %p2203_p8 = pnand %p2202_p4, %p2196_p13 }
  0x3e   : > { %2206 = shalt.err (!%p2203_p8)
}
  0x3f   : > { %1972 = dma.hbm_to_vmem [thread:$0]  (!%p2432_p6), %s2805_s4, 256, %s252_s11, [#allocation12], %s2328_s14, %s2328_s14, %s2329_s15  }
  0x40   : > { %s1703_s8 = sadd.s32 4294967294, %s2323_s26   ;;  %s36_s17 = sadd.s32 1, %s2319_s25 }
  0x41   : > { %p38_p7 = scmp.ge.s32.totalorder %s36_s17, 2  ;;  %s43_s18 = sadd.s32 1, %s2311_s23 }
  0x42   : > { %p50_p9 = scmp.ne.s32.totalorder %s2311_s23, %s2307_s22  ;;  %p51_p10 = scmp.eq.s32.totalorder %s2323_s26, 0 }
  0x43   : > { %s2832_s17 = smov (%p38_p7, %s36_s17), 0  ;;  %p56_p12 = scmp.ne.s32.totalorder %s2307_s22, %s2303_s21 }
  0x44   : > { %p2490_p11 = por %p51_p10, %p50_p9  ;;  %s40_s14 = ssub.s32 %s2319_s25, %s2832_s17 }
  0x45   : > { %p187_p6 = scmp.eq.s32.totalorder %s1702_s27, 1  ;;  %p41_p13 = scmp.eq.s32.totalorder %s40_s14, 0 }
  0x46   : > { %p2502_p0 = por %p2418_p1, %p56_p12  ;;  %p193_p4 = scmp.eq.s32.totalorder %s1703_s8, 1 }
  0x47   : > { %p2506_p2 = por %p187_p6, %p50_p9  ;;  %p1985_p7 = scmp.lt.s32.totalorder %s2323_s26, 2 }
  0x48   : > { %s2511_s30 = scalar_select %p41_p13, %s2311_s23, %s43_s18  }
  0x49   : > { %p2513_p8 = por %p193_p4, %p56_p12  ;;  %s268_s9 = sand.u32 1, %s2311_s23  }
  0x4a   : > { %s1711_s27 = sshll.u32 %s2319_s25, 6  ;;  %s1710_s10 = sshll.u32 %s268_s9, 2 }
  0x4b   : > { %s2820_s7 = scalar_select %p2513_p8, 1, 0 }
  0x4c   : > { %s277_s12 = scalar_lea.hbm %s2801_s0, %s1711_s27  ;;  %s272_s16 = scalar_lea.vmem [#allocation5], %s1710_s10 }
  0x4d   : > { %s279_s14 = sshll.u32 %s272_s16, 4  ;;  %p2525_p9 = pnand %p1985_p7, %p2490_p11  ;;  %s280_s14 = int_to_ptr.vmem [resolvable:$true] %s279_s14 }
  0x4e   : > { %s269_s8 = scalar_lea.sflag [#allocation6], %s268_s9  ;;  %s2220_s18 = scalar_lea.vmem %s280_s14, 64 }
  0x4f   : > { %p2209_p10 = pneg %p2525_p9  ;;  %p2221_p12 = scmp.ne.s32.totalorder %s280_s14, %s2220_s18 }
  0x50   : > { %s2331_s2 = smov [#allocation5]  }
  0x51   : > { %p2223_p6 = pnand %p2221_p12, %p2209_p10  ;;  %s2225_s3 = sshll.u32 %s2331_s2, 4  ;;  %s2226_s3 = int_to_ptr.vmem [resolvable:$false] %s2225_s3 }
  0x52   : > { %s2227_s27 = scalar_lea.vmem %s2226_s3, 128  ;;  %p2228_p4 = scmp.lt.s32.totalorder %s280_s14, %s2226_s3 }
  0x53   : > { %p2224_p13 = pneg %p2223_p6  ;;  %p2229_p5 = scmp.lt.s32.totalorder %s2227_s27, %s2220_s18 }
  0x55   : > { %p2230_p8 = por %p2229_p5, %p2228_p4 }
  0x57   : > { %p2231_p11 = pnand %p2230_p8, %p2224_p13 }
  0x59   : > { %2234 = shalt.err (!%p2231_p11)
}
  0x5a   : > { %1976 = dma.hbm_to_vmem [thread:$0]  (!%p2525_p9), %s277_s12, 64, %s280_s14, %s269_s8  }
  0x5b   : > { %288 = sbr.rel (%p2423_p3) target bundleno = 1398 (0x576), region = 44  ;;  %s2536_s19 = sand.u32 (!%p2423_p3), 1, %s2307_s22  }
  0x5c   : > { %s1713_s2 = sshll.u32 (!%p2423_p3), %s2536_s19, 2  ;;  %s291_s9 = scalar_lea.sflag (!%p2423_p3), [#allocation6], %s2536_s19 }
  0x5d   : > { %s2540_s10 = scalar_lea.vmem (!%p2423_p3), [#allocation5], %s1713_s2 }
  0x60   : > { %2286 = dma.done.wait (%p2502_p0), %s291_s9, 64  }
  0x61   : > { %2288 = vsyncadd (%p2502_p0), %s291_s9, 4294967232 }
  0x62   : > { %2290 = dma.done.wait (%p2418_p1), [#allocation9], 512  }
  0x63   : > { %2292 = vsyncadd (%p2418_p1), [#allocation9], 4294966784 }
  0x64   : > { %2294 = dma.done.wait (%p2418_p1), [#allocation12], 512  }
  0x65   : > { %2296 = vsyncadd (%p2418_p1), [#allocation12], 4294966784  ;;  %v2332_v0 = vmov 0.0   ;;  %vm2333_vm0 = vmmov 0   ;;  %v2061_v1 = vld [vmem:[#allocation10 + $0x8] sm:$0xff]   ;;  %v2062_v2 = vld [vmem:[#allocation10] sm:$0xff]   ;;  %v533_v51 = vlaneseq }
  0x66   : > { %1812 = vmatprep.subr.bf16.mxu0 %v2332_v0  ;;  %1816 = vmatprep.mubr.msk.bf16.mxu0 %vm2333_vm0, %v2332_v0  ;;  %v344_v3 = vld [vmem:[%s2540_s10] sm:$0xf]  ;;  %v2063_v4 = vld [vmem:[#allocation8 + $0x8] sm:$0xff]   ;;  %vm361_vm1 = vcmask 261120   ;;  %v2066_v6 = vld [vmem:[#allocation11] sm:$0xff]   ;;  %vm406_vm2 = vcmask 257024  }
  0x67   : > { %1820 = vmatprep.subr.bf16.mxu1 %v2332_v0  ;;  %1824 = vmatprep.mubr.msk.bf16.mxu1 %vm2333_vm0, %v2332_v0  ;;  %v2065_v5 = vld [vmem:[#allocation11 + $0x8] sm:$0xff]   ;;  %v2064_v7 = vld [vmem:[#allocation8] sm:$0xff]   ;;  %v471_v8 = vld [vmem:[%s2540_s10] sm:$0xf]  ;;  %vm542_vm3 = vcmask 31744   ;;  %s2334_s1 = smov 120  }
  0x68   : > { %1813 = vmatpush3.bf16.msra.mxu0 %v2061_v1  ;;  %1821 = vmatpush3.bf16.msra.mxu1 %v2065_v5  ;;  %s2335_s3 = smov 124   ;;  %s2336_s28 = smov 116   ;;  %vm604_vm4 = vcmask 1043456   ;;  %v534_v52 = vshrl.u32 %v533_v51, 7  ;;  %v538_v53 = vand.u32 127, %v533_v51  ;;  %vm590_vm6 = vcmask 64512  }
  0x69   : > { %1814 = vmatprep.subr.bf16.mxu0 %v2332_v0  ;;  %1822 = vmatprep.subr.bf16.mxu1 %v2332_v0  ;;  %s2337_s29 = smov 112   ;;  %s2338_s15 = smov 108   ;;  %vm651_vm7 = vcmask 27648   ;;  %vm778_vm8 = vcmask 60448   ;;  %vm898_vm9 = vcmask 93248   ;;  %vm1018_vm10 = vcmask 126048  }
  0x6a   : > { %s2339_s11 = smov 104   ;;  %s2340_s13 = smov 100   ;;  %vm2641_vm5 = vcmp.eq.s32.totalorder %v534_v52, %v538_v53  ;;  %vm1138_vm11 = vcmask 158848   ;;  %vm1258_vm12 = vcmask 191648   ;;  %vm1378_vm13 = vcmask 224448  }
  0x6b   : > { %s2341_s12 = smov 4   ;;  %s2342_s16 = smov 8   ;;  %vm1498_vm14 = vcmask 257248  }
  0x6c   : > { %1815 = vmatpush3.bf16.msra.mxu0 %v2062_v2  ;;  %1823 = vmatpush3.bf16.msra.mxu1 %v2066_v6  ;;  %s2343_s14 = smov 12   ;;  %s2344_s8 = smov 16  }
  0x6d   : > { %1828 = vmatprep.subr.bf16.mxu0 %v2332_v0  ;;  %1836 = vmatprep.subr.bf16.mxu1 %v2332_v0  ;;  %s2345_s18 = smov 20   ;;  %s2346_s27 = smov 24  }
  0x6e   : > { %s2347_s2 = smov 28   ;;  %s1718_s9 = sshll.u32 %s2536_s19, 3 }
  0x6f   : > { %1817 = vmatmul.mubr.msk.bf16.vlgmr.msra.gmra.mxu0 %vm361_vm1, %v344_v3  ;;  %1825 = vmatmul.mubr.msk.bf16.vlgmr.msra.gmra.mxu1 %vm361_vm1, %v344_v3 }
  0x70   : > { %1829 = vmatpush3.bf16.msra.mxu0 %v2063_v4  ;;  %1832 = vmatprep.mubr.msk.bf16.mxu0 %vm2333_vm0, %v2332_v0 }
  0x71   : > { %1830 = vmatprep.subr.bf16.mxu0 %v2332_v0  ;;  %1838 = vmatprep.mubr.msk.bf16.mxu1 %vm2333_vm0, %v2332_v0 }
  0x74   : > { %1831 = vmatpush3.bf16.msra.mxu0 %v2064_v7 }
  0x75   : > { %1842 = vmatprep.subr.bf16.mxu0 %v2332_v0 }
  0x77   : > { %1833 = vmatmul.mubr.msk.bf16.vlgmr.msra.gmra.mxu0 %vm361_vm1, %v471_v8 }
  0x78   : > { %1844 = vmatprep.mubr.msk.bf16.mxu0 %vm2333_vm0, %v2332_v0 }
 0x12f   : > { %v399_v9 = vpop.f32.mrf.mxu0  ;;  %v458_v22 = vpop.f32.mrf.mxu1 }
 0x130   : > { %v405_v10 = vpack.c.bf16 %v399_v9, %v399_v9  ;;  %v464_v23 = vpack.c.bf16 %v458_v22, %v458_v22 }
 0x131   : > { %v1818_v11 = vpop.f32.mrf.mxu0  ;;  %v1826_v24 = vpop.f32.mrf.mxu1 }
 0x132   : > { %407 = vst.msk [vmem:[#allocation2] sm:$0xf] %vm406_vm2, %v405_v10  ;;  %465 = vst.msk [vmem:[#allocation3] sm:$0xf] %vm406_vm2, %v464_v23 }
 0x133   : > { %v402_v12 = vpop.f32.mrf.mxu0  ;;  %v461_v25 = vpop.f32.mrf.mxu1 }
 0x135   : > { %v1819_v13 = vpop.f32.mrf.mxu0  ;;  %v1827_v26 = vpop.f32.mrf.mxu1 }
 0x137   : > { %v526_v14 = vpop.f32.mrf.mxu0 }
 0x138   : > { %v532_v20 = vpack.c.bf16 %v526_v14, %v526_v14 }
 0x139   : > { %v540_v15 = vld [vmem:[#allocation2] sm:$0xf]  ;;  %v1834_v16 = vpop.f32.mrf.mxu0  ;;  %v541_v27 = vld [vmem:[#allocation3] sm:$0xf] }
 0x13a   : > { %v547_v17 = vsel %vm542_vm3, %v540_v15, 0  ;;  %v1730_v18 = vcombine.low %v540_v15, %v540_v15  ;;  %v2598_v28 = vcombine.low %v541_v27, %v541_v27  ;;  %v606_v29 = vsel %vm604_vm4, %v541_v27, 0 }
 0x13b   : > { %1837 = vmatpush3.bf16.xpose.msra.mxu1 %v547_v17  ;;  %v529_v19 = vpop.f32.mrf.mxu0  ;;  %1843 = vmatpush3.bf16.msra.mxu0 %v606_v29 }
 0x13c   : > { %782 = vrot.lane.b32.xlu1 %v1730_v18, %s2334_s1  ;;  %659 = vrot.lane.b32.xlu0 %v1730_v18, %s2335_s3 }
 0x13d   : > { %v1835_v21 = vpop.f32.mrf.mxu0  ;;  %1848 = vmatprep.subr.bf16.mxu1 %v2332_v0  ;;  %1854 = vmatprep.subr.bf16.mxu0 %v2332_v0 }
 0x140   : > { %780 = vrot.lane.b32.xlu1 %v532_v20, %s2334_s1  ;;  %654 = vrot.lane.b32.xlu0 %v532_v20, %s2335_s3 }
 0x142   : > { %1839 = vmatmul.mubr.msk.bf16.vlgmr.msra.gmra.mxu1 %vm542_vm3, %v532_v20 }
 0x143   : > { %1850 = vmatprep.mubr.msk.bf16.mxu1 %vm2333_vm0, %v2332_v0 }
 0x144   : > { %900 = vrot.lane.b32.xlu1 %v532_v20, %s2336_s28  ;;  %902 = vrot.lane.b32.xlu0 %v1730_v18, %s2336_s28 }
 0x148   : > { %1020 = vrot.lane.b32.xlu1 %v532_v20, %s2337_s29  ;;  %1022 = vrot.lane.b32.xlu0 %v1730_v18, %s2337_s29 }
 0x14c   : > { %1140 = vrot.lane.b32.xlu1 %v532_v20, %s2338_s15  ;;  %1142 = vrot.lane.b32.xlu0 %v1730_v18, %s2338_s15 }
 0x150   : > { %1260 = vrot.lane.b32.xlu1 %v532_v20, %s2339_s11  ;;  %1262 = vrot.lane.b32.xlu0 %v1730_v18, %s2339_s11 }
 0x154   : > { %1380 = vrot.lane.b32.xlu1 %v532_v20, %s2340_s13  ;;  %1382 = vrot.lane.b32.xlu0 %v1730_v18, %s2340_s13 }
 0x158   : > { %721 = vrot.lane.b32.xlu0 %v2598_v28, %s2335_s3  ;;  %841 = vrot.lane.b32.xlu1 %v2598_v28, %s2334_s1  ;;  %s1758_s3 = sshll.u32 %s2315_s24, 7  ;;  %s2348_s24 = smov [#allocation14]  }
 0x1ae   : > { %v660_v30 = vpop.permute.xlu0 %659  ;;  %v783_v32 = vpop.permute.xlu1 %782 }
 0x1af   : > { %v665_v31 = vsel %vm542_vm3, %v660_v30, 0  ;;  %v788_v34 = vsel %vm542_vm3, %v783_v32, 0 }
 0x1b0   : > { %1849 = vmatpush3.bf16.xpose.msra.mxu1 %v665_v31 }
 0x1b1   : > { %1860 = vmatprep.subr.bf16.mxu1 %v2332_v0 }
 0x1b2   : > { %v655_v33 = vpop.permute.xlu0 %654  ;;  %v781_v36 = vpop.permute.xlu1 %780 }
 0x1b6   : > { %v903_v35 = vpop.permute.xlu0 %902  ;;  %v901_v39 = vpop.permute.xlu1 %900 }
 0x1b7   : > { %1851 = vmatmul.mubr.msk.bf16.vlgmr.msra.gmra.mxu1 %vm542_vm3, %v655_v33  ;;  %v908_v37 = vsel %vm542_vm3, %v903_v35, 0 }
 0x1b8   : > { %1861 = vmatpush3.bf16.xpose.msra.mxu1 %v788_v34  ;;  %1862 = vmatprep.mubr.msk.bf16.mxu1 %vm2333_vm0, %v2332_v0 }
 0x1b9   : > { %1872 = vmatprep.subr.bf16.mxu1 %v2332_v0 }
 0x1ba   : > { %v1023_v38 = vpop.permute.xlu0 %1022  ;;  %v1021_v42 = vpop.permute.xlu1 %1020 }
 0x1bb   : > { %v1028_v40 = vsel %vm542_vm3, %v1023_v38, 0 }
 0x1be   : > { %v1143_v41 = vpop.permute.xlu0 %1142  ;;  %v1141_v45 = vpop.permute.xlu1 %1140 }
 0x1bf   : > { %1863 = vmatmul.mubr.msk.bf16.vlgmr.msra.gmra.mxu1 %vm542_vm3, %v781_v36  ;;  %v1148_v43 = vsel %vm542_vm3, %v1143_v41, 0 }
 0x1c0   : > { %1873 = vmatpush3.bf16.xpose.msra.mxu1 %v908_v37  ;;  %1874 = vmatprep.mubr.msk.bf16.mxu1 %vm2333_vm0, %v2332_v0 }
 0x1c1   : > { %1884 = vmatprep.subr.bf16.mxu1 %v2332_v0 }
 0x1c2   : > { %v1263_v44 = vpop.permute.xlu0 %1262  ;;  %v1261_v48 = vpop.permute.xlu1 %1260 }
 0x1c3   : > { %v1268_v46 = vsel %vm542_vm3, %v1263_v44, 0 }
 0x1c6   : > { %v1383_v47 = vpop.permute.xlu0 %1382  ;;  %v1381_v50 = vpop.permute.xlu1 %1380 }
 0x1c7   : > { %1875 = vmatmul.mubr.msk.bf16.vlgmr.msra.gmra.mxu1 %vm542_vm3, %v901_v39  ;;  %v1388_v49 = vsel %vm542_vm3, %v1383_v47, 0 }
 0x1c8   : > { %1885 = vmatpush3.bf16.xpose.msra.mxu1 %v1028_v40  ;;  %1886 = vmatprep.mubr.msk.bf16.mxu1 %vm2333_vm0, %v2332_v0 }
 0x1c9   : > { %1896 = vmatprep.subr.bf16.mxu1 %v2332_v0 }
 0x1ca   : > { %v722_v12 = vpop.permute.xlu0 %721 }
 0x1cb   : > { %v727_v31 = vsel %vm604_vm4, %v722_v12, 0 }
 0x1cf   : > { %1887 = vmatmul.mubr.msk.bf16.vlgmr.msra.gmra.mxu1 %vm542_vm3, %v1021_v42 }
 0x1d0   : > { %1897 = vmatpush3.bf16.xpose.msra.mxu1 %v1148_v43  ;;  %1898 = vmatprep.mubr.msk.bf16.mxu1 %vm2333_vm0, %v2332_v0 }
 0x1d1   : > { %1908 = vmatprep.subr.bf16.mxu1 %v2332_v0 }
 0x1d7   : > { %1899 = vmatmul.mubr.msk.bf16.vlgmr.msra.gmra.mxu1 %vm542_vm3, %v1141_v45 }
 0x1d8   : > { %1909 = vmatpush3.bf16.xpose.msra.mxu1 %v1268_v46  ;;  %1910 = vmatprep.mubr.msk.bf16.mxu1 %vm2333_vm0, %v2332_v0 }
 0x1d9   : > { %1920 = vmatprep.subr.bf16.mxu1 %v2332_v0 }
 0x1df   : > { %1911 = vmatmul.mubr.msk.bf16.vlgmr.msra.gmra.mxu1 %vm542_vm3, %v1261_v48  ;;  %v842_v48 = vpop.permute.xlu1 %841 }
 0x1e0   : > { %1921 = vmatpush3.bf16.xpose.msra.mxu1 %v1388_v49  ;;  %1922 = vmatprep.mubr.msk.bf16.mxu1 %vm2333_vm0, %v2332_v0 }
 0x1e1   : > { %1932 = vmatprep.subr.bf16.mxu1 %v2332_v0 }
 0x1e7   : > { %1923 = vmatmul.mubr.msk.bf16.vlgmr.msra.gmra.mxu1 %vm542_vm3, %v1381_v50 }
 0x1e8   : > { %1936 = vmatprep.mubr.msk.bf16.mxu1 %vm2333_vm0, %v2332_v0 }
 0x202   : > { %v583_v55 = vpop.f32.mrf.mxu1 }
 0x203   : > { %v589_v56 = vsel %vm2641_vm5, -inf, %v583_v55 }
 0x204   : > { %v1840_v57 = vpop.f32.mrf.mxu1  ;;  %v591_v58 = vsel %vm590_vm6, %v589_v56, -inf }
 0x205   : > { %592 = vmax.xlane.f32.xlu0 %v591_v58 }
 0x206   : > { %v586_v59 = vpop.f32.mrf.mxu1 }
 0x208   : > { %v1841_v60 = vpop.f32.mrf.mxu1 }
 0x277   : > { %v701_v61 = vpop.f32.mrf.mxu1 }
 0x278   : > { %v2650_v62 = vsel %vm2641_vm5, -inf, %v701_v61 }
 0x279   : > { %v1852_v63 = vpop.f32.mrf.mxu1  ;;  %v708_v1 = vsel %vm590_vm6, %v2650_v62, -inf }
 0x27a   : > { %709 = vmax.xlane.f32.xlu1 %v708_v1 }
 0x27b   : > { %v704_v2 = vpop.f32.mrf.mxu1 }
 0x27d   : > { %v1853_v3 = vpop.f32.mrf.mxu1 }
 0x27f   : > { %v824_v4 = vpop.f32.mrf.mxu1 }
 0x280   : > { %v2656_v5 = vsel %vm2641_vm5, -inf, %v824_v4 }
 0x281   : > { %v1864_v6 = vpop.f32.mrf.mxu1  ;;  %v831_v7 = vsel %vm590_vm6, %v2656_v5, -inf }
 0x282   : > { %832 = vmax.xlane.f32.xlu0 %v831_v7 }
 0x283   : > { %v827_v8 = vpop.f32.mrf.mxu1 }
 0x285   : > { %v1865_v9 = vpop.f32.mrf.mxu1 }
 0x287   : > { %v944_v10 = vpop.f32.mrf.mxu1 }
 0x288   : > { %v2662_v11 = vsel %vm2641_vm5, -inf, %v944_v10 }
 0x289   : > { %v1876_v13 = vpop.f32.mrf.mxu1  ;;  %v951_v14 = vsel %vm590_vm6, %v2662_v11, -inf }
 0x28a   : > { %952 = vmax.xlane.f32.xlu0 %v951_v14 }
 0x28b   : > { %961 = vrot.lane.b32.xlu1 %v2598_v28, %s2336_s28  ;;  %v947_v15 = vpop.f32.mrf.mxu1  ;;  %s338_s28 = scalar_lea.vmem [#allocation14], %s1718_s9 }
 0x28d   : > { %v1877_v16 = vpop.f32.mrf.mxu1 }
 0x28e   : > { %v593_v17 = vpop.xlane.xlu0 %592 }
 0x28f   : > { %v594_v18 = vsub.f32 %v589_v56, %v593_v17  ;;  %v1064_v19 = vpop.f32.mrf.mxu1 }
 0x290   : > { %v1070_v38 = vsel %vm2641_vm5, -inf, %v1064_v19 }
 0x291   : > { %v595_v20 = vmul.f32 1.442695, %v594_v18  ;;  %v1888_v21 = vpop.f32.mrf.mxu1  ;;  %v1071_v41 = vsel %vm590_vm6, %v1070_v38, -inf }
 0x293   : > { %2071 = vpow2.f32 %v595_v20  ;;  %v1067_v22 = vpop.f32.mrf.mxu1 }
 0x295   : > { %v1889_v23 = vpop.f32.mrf.mxu1 }
 0x297   : > { %v1184_v24 = vpop.f32.mrf.mxu1 }
 0x298   : > { %v1190_v42 = vsel %vm2641_vm5, -inf, %v1184_v24 }
 0x299   : > { %v1900_v25 = vpop.f32.mrf.mxu1  ;;  %v1191_v43 = vsel %vm590_vm6, %v1190_v42, -inf }
 0x29b   : > { %v1187_v26 = vpop.f32.mrf.mxu1 }
 0x29d   : > { %v1901_v27 = vpop.f32.mrf.mxu1 }
 0x29f   : > { %v1304_v29 = vpop.f32.mrf.mxu1 }
 0x2a0   : > { %v2668_v30 = vpop.eup %2071  ;;  %1081 = vrot.lane.b32.xlu0 %v2598_v28, %s2337_s29  ;;  %v2690_v46 = vsel %vm2641_vm5, -inf, %v1304_v29  ;;  %s1583_s29 = sshll.u32 %s338_s28, 4  ;;  %s2755_s29 = int_to_ptr.vmem [resolvable:$true] %s1583_s29 }
 0x2a1   : > { %v1912_v32 = vpop.f32.mrf.mxu1  ;;  %v600_v33 = vpack.c.bf16 %v2668_v30, %v2668_v30  ;;  %v1311_v47 = vsel %vm590_vm6, %v2690_v46, -inf }
 0x2a3   : > { %1845 = vmatmul.mubr.msk.bf16.vlgmr.msra.gmra.mxu0 %vm590_vm6, %v600_v33  ;;  %v1307_v34 = vpop.f32.mrf.mxu1 }
 0x2a4   : > { %1855 = vmatpush3.bf16.msra.mxu0 %v727_v31  ;;  %1856 = vmatprep.mubr.msk.bf16.mxu0 %vm2333_vm0, %v2332_v0 }
 0x2a5   : > { %v1913_v35 = vpop.f32.mrf.mxu1  ;;  %1866 = vmatprep.subr.bf16.mxu0 %v2332_v0 }
 0x2a7   : > { %v1424_v36 = vpop.f32.mrf.mxu1 }
 0x2a8   : > { %v1430_v44 = vsel %vm2641_vm5, -inf, %v1424_v36 }
 0x2a9   : > { %v1924_v37 = vpop.f32.mrf.mxu1  ;;  %v1431_v45 = vsel %vm590_vm6, %v1430_v44, -inf }
 0x2ab   : > { %v1427_v39 = vpop.f32.mrf.mxu1 }
 0x2ac   : > { %v597_v39 = vsel %vm590_vm6, %v2668_v30, 0.0 }
 0x2ad   : > { %v1925_v40 = vpop.f32.mrf.mxu1 }
 0x2af   : > { %1072 = vmax.xlane.f32.xlu1 %v1071_v41 }
 0x2b3   : > { %1192 = vmax.xlane.f32.xlu1 %v1191_v43 }
 0x2b7   : > { %1432 = vmax.xlane.f32.xlu1 %v1431_v45 }
 0x2bf   : > { %1312 = vmax.xlane.f32.xlu0 %v1311_v47 }
 0x2c8   : > { %1201 = vrot.lane.b32.xlu1 %v2598_v28, %s2338_s15 }
 0x2d5   : > { %1321 = vrot.lane.b32.xlu0 %v2598_v28, %s2339_s11 }
 0x2d9   : > { %1441 = vrot.lane.b32.xlu0 %v2598_v28, %s2340_s13  ;;  %v847_v28 = vsel %vm604_vm4, %v842_v48, 0  ;;  %s2753_s13 = scalar_lea.hbm %s2807_s6, %s1758_s3 }
 0x303   : > { %v710_v49 = vpop.xlane.xlu1 %709 }
 0x304   : > { %v711_v50 = vsub.f32 %v2650_v62, %v710_v49 }
 0x306   : > { %v712_v51 = vmul.f32 1.442695, %v711_v50 }
 0x307   : > { %v962_v62 = vpop.permute.xlu1 %961 }
 0x308   : > { %2073 = vpow2.f32 %v712_v51  ;;  %v967_v2 = vsel %vm604_vm4, %v962_v62, 0 }
 0x30b   : > { %v833_v52 = vpop.xlane.xlu0 %832 }
 0x30c   : > { %v834_v53 = vsub.f32 %v2656_v5, %v833_v52 }
 0x30e   : > { %v835_v54 = vmul.f32 1.442695, %v834_v53 }
 0x310   : > { %2075 = vpow2.f32 %v835_v54 }
 0x313   : > { %v953_v55 = vpop.xlane.xlu0 %952 }
 0x314   : > { %v954_v56 = vsub.f32 %v2662_v11, %v953_v55 }
 0x315   : > { %v2074_v57 = vpop.eup %2073 }
 0x316   : > { %v955_v58 = vmul.f32 1.442695, %v954_v56  ;;  %v714_v59 = vsel %vm590_vm6, %v2074_v57, 0.0  ;;  %v717_v60 = vpack.c.bf16 %v2074_v57, %v2074_v57 }
 0x317   : > { %715 = vadd.xlane.f32.xlu1 %v714_v59  ;;  %v1082_v4 = vpop.permute.xlu0 %1081 }
 0x318   : > { %2077 = vpow2.f32 %v955_v58  ;;  %1857 = vmatmul.mubr.msk.bf16.vlgmr.msra.gmra.mxu0 %vm590_vm6, %v717_v60  ;;  %v1087_v7 = vsel %vm604_vm4, %v1082_v4, 0 }
 0x319   : > { %1867 = vmatpush3.bf16.msra.mxu0 %v847_v28  ;;  %1868 = vmatprep.mubr.msk.bf16.mxu0 %vm2333_vm0, %v2332_v0 }
 0x31a   : > { %1878 = vmatprep.subr.bf16.mxu0 %v2332_v0 }
 0x31d   : > { %v2076_v61 = vpop.eup %2075 }
 0x31e   : > { %v837_v63 = vsel %vm590_vm6, %v2076_v61, 0.0  ;;  %v840_v1 = vpack.c.bf16 %v2076_v61, %v2076_v61 }
 0x31f   : > { %838 = vadd.xlane.f32.xlu0 %v837_v63 }
 0x320   : > { %1869 = vmatmul.mubr.msk.bf16.vlgmr.msra.gmra.mxu0 %vm590_vm6, %v840_v1 }
 0x321   : > { %1879 = vmatpush3.bf16.msra.mxu0 %v967_v2  ;;  %1880 = vmatprep.mubr.msk.bf16.mxu0 %vm2333_vm0, %v2332_v0 }
 0x322   : > { %1890 = vmatprep.subr.bf16.mxu0 %v2332_v0 }
 0x325   : > { %v2078_v3 = vpop.eup %2077 }
 0x326   : > { %v957_v5 = vsel %vm590_vm6, %v2078_v3, 0.0  ;;  %v960_v6 = vpack.c.bf16 %v2078_v3, %v2078_v3 }
 0x327   : > { %958 = vadd.xlane.f32.xlu0 %v957_v5 }
 0x328   : > { %1881 = vmatmul.mubr.msk.bf16.vlgmr.msra.gmra.mxu0 %vm590_vm6, %v960_v6 }
 0x329   : > { %1891 = vmatpush3.bf16.msra.mxu0 %v1087_v7  ;;  %1892 = vmatprep.mubr.msk.bf16.mxu0 %vm2333_vm0, %v2332_v0 }
 0x32a   : > { %1902 = vmatprep.subr.bf16.mxu0 %v2332_v0 }
 0x338   : > { %v1073_v8 = vpop.xlane.xlu1 %1072 }
 0x339   : > { %v1074_v9 = vsub.f32 %v1070_v38, %v1073_v8 }
 0x33b   : > { %v1075_v10 = vmul.f32 1.442695, %v1074_v9 }
 0x33c   : > { %v1193_v11 = vpop.xlane.xlu1 %1192 }
 0x33d   : > { %2079 = vpow2.f32 %v1075_v10  ;;  %v1194_v12 = vsub.f32 %v1190_v42, %v1193_v11 }
 0x33f   : > { %v1195_v13 = vmul.f32 1.442695, %v1194_v12 }
 0x340   : > { %v1433_v14 = vpop.xlane.xlu1 %1432 }
 0x341   : > { %2081 = vpow2.f32 %v1195_v13  ;;  %v1434_v15 = vsub.f32 %v1430_v44, %v1433_v14 }
 0x343   : > { %v1435_v16 = vmul.f32 1.442695, %v1434_v15 }
 0x344   : > { %v1202_v20 = vpop.permute.xlu1 %1201 }
 0x345   : > { %2083 = vpow2.f32 %v1435_v16  ;;  %v1207_v24 = vsel %vm604_vm4, %v1202_v20, 0 }
 0x348   : > { %v1313_v17 = vpop.xlane.xlu0 %1312 }
 0x349   : > { %v1314_v18 = vsub.f32 %v2690_v46, %v1313_v17 }
 0x34a   : > { %v2080_v19 = vpop.eup %2079 }
 0x34b   : > { %v1315_v21 = vmul.f32 1.442695, %v1314_v18  ;;  %v1077_v22 = vsel %vm590_vm6, %v2080_v19, 0.0  ;;  %v1080_v23 = vpack.c.bf16 %v2080_v19, %v2080_v19 }
 0x34c   : > { %1078 = vadd.xlane.f32.xlu1 %v1077_v22  ;;  %v1322_v29 = vpop.permute.xlu0 %1321 }
 0x34d   : > { %2085 = vpow2.f32 %v1315_v21  ;;  %1893 = vmatmul.mubr.msk.bf16.vlgmr.msra.gmra.mxu0 %vm590_vm6, %v1080_v23  ;;  %v1327_v33 = vsel %vm604_vm4, %v1322_v29, 0  ;;  %v2069_v29 = vld [vmem:[#allocation13 + $0x8] sm:$0xff]  }
 0x34e   : > { %v2082_v25 = vpop.eup %2081  ;;  %1903 = vmatpush3.bf16.msra.mxu0 %v1207_v24  ;;  %1904 = vmatprep.mubr.msk.bf16.mxu0 %vm2333_vm0, %v2332_v0 }
 0x34f   : > { %v1197_v26 = vsel %vm590_vm6, %v2082_v25, 0.0  ;;  %1914 = vmatprep.subr.bf16.mxu0 %v2332_v0  ;;  %v1200_v32 = vpack.c.bf16 %v2082_v25, %v2082_v25  ;;  %1933 = vmatpush3.bf16.msra.mxu1 %v2069_v29 }
 0x350   : > { %1198 = vadd.xlane.f32.xlu0 %v1197_v26  ;;  %v1442_v35 = vpop.permute.xlu0 %1441  ;;  %1934 = vmatprep.subr.bf16.mxu1 %v2332_v0 }
 0x351   : > { %v1447_v38 = vsel %vm604_vm4, %v1442_v35, 0 }
 0x352   : > { %v2084_v27 = vpop.eup %2083 }
 0x353   : > { %v1437_v31 = vsel %vm590_vm6, %v2084_v27, 0.0  ;;  %v1440_v41 = vpack.c.bf16 %v2084_v27, %v2084_v27 }
 0x354   : > { %1438 = vadd.xlane.f32.xlu0 %v1437_v31 }
 0x355   : > { %1905 = vmatmul.mubr.msk.bf16.vlgmr.msra.gmra.mxu0 %vm590_vm6, %v1200_v32 }
 0x356   : > { %1915 = vmatpush3.bf16.msra.mxu0 %v1327_v33  ;;  %1916 = vmatprep.mubr.msk.bf16.mxu0 %vm2333_vm0, %v2332_v0  ;;  %v2070_v33 = vld [vmem:[#allocation13] sm:$0xff]  }
 0x357   : > { %1926 = vmatprep.subr.bf16.mxu0 %v2332_v0  ;;  %1935 = vmatpush3.bf16.msra.mxu1 %v2070_v33 }
 0x35a   : > { %v2086_v34 = vpop.eup %2085 }
 0x35b   : > { %v1317_v36 = vsel %vm590_vm6, %v2086_v34, 0.0  ;;  %v1320_v37 = vpack.c.bf16 %v2086_v34, %v2086_v34 }
 0x35c   : > { %1318 = vadd.xlane.f32.xlu1 %v1317_v36 }
 0x35d   : > { %1917 = vmatmul.mubr.msk.bf16.vlgmr.msra.gmra.mxu0 %vm590_vm6, %v1320_v37 }
 0x35e   : > { %1927 = vmatpush3.bf16.msra.mxu0 %v1447_v38  ;;  %1928 = vmatprep.mubr.msk.bf16.mxu0 %vm2333_vm0, %v2332_v0 }
 0x360   : > { %598 = vadd.xlane.f32.xlu1 %v597_v39 }
 0x363   : > { %v642_v40 = vpop.f32.mrf.mxu0 }
 0x365   : > { %v1846_v42 = vpop.f32.mrf.mxu0  ;;  %1929 = vmatmul.mubr.msk.bf16.vlgmr.msra.gmra.mxu0 %vm590_vm6, %v1440_v41 }
 0x367   : > { %v645_v43 = vpop.f32.mrf.mxu0 }
 0x369   : > { %v1847_v44 = vpop.f32.mrf.mxu0 }
 0x3a0   : > { %v716_v45 = vpop.xlane.xlu1 %715 }
 0x3a1   : > { %2087 = vrcp.f32 %v716_v45 }
 0x3a8   : > { %v839_v46 = vpop.xlane.xlu0 %838 }
 0x3a9   : > { %2089 = vrcp.f32 %v839_v46 }
 0x3ae   : > { %v2088_v47 = vpop.eup %2087 }
 0x3b0   : > { %v959_v48 = vpop.xlane.xlu0 %958 }
 0x3b1   : > { %2091 = vrcp.f32 %v959_v48 }
 0x3b6   : > { %v2090_v54 = vpop.eup %2089 }
 0x3be   : > { %v2092_v62 = vpop.eup %2091 }
 0x3d5   : > { %v1079_v56 = vpop.xlane.xlu1 %1078 }
 0x3d8   : > { %v763_v49 = vpop.f32.mrf.mxu0 }
 0x3d9   : > { %v770_v50 = vmul.f32 %v2088_v47, %v763_v49  ;;  %v1199_v10 = vpop.xlane.xlu0 %1198 }
 0x3da   : > { %v1858_v51 = vpop.f32.mrf.mxu0 }
 0x3db   : > { %v1761_v52 = vpack.c.bf16 %v770_v50, %v770_v50  ;;  %v1753_v51 = vld [vmem:[%s2806_s5] ss:$0 sm:$0xff] }
 0x3dc   : > { %v766_v30 = vpop.f32.mrf.mxu0 }
 0x3dd   : > { %775 = vrot.lane.b32.xlu0 %v1761_v52, %s2341_s12  ;;  %v1439_v19 = vpop.xlane.xlu0 %1438  ;;  %s1569_s12 = scalar_lea.sflag [#allocation7], %s2536_s19 }
 0x3de   : > { %v1859_v53 = vpop.f32.mrf.mxu0 }
 0x3e0   : > { %v883_v55 = vpop.f32.mrf.mxu0 }
 0x3e1   : > { %v890_v57 = vmul.f32 %v2090_v54, %v883_v55 }
 0x3e2   : > { %v1870_v58 = vpop.f32.mrf.mxu0 }
 0x3e3   : > { %v1762_v59 = vpack.c.bf16 %v890_v57, %v890_v57 }
 0x3e4   : > { %v886_v60 = vpop.f32.mrf.mxu0 }
 0x3e5   : > { %v1319_v28 = vpop.xlane.xlu1 %1318  ;;  %895 = vrot.lane.b32.xlu1 %v1762_v59, %s2342_s16  ;;  %s2235_s16 = scalar_lea.vmem %s2755_s29, 128 }
 0x3e6   : > { %v1871_v61 = vpop.f32.mrf.mxu0  ;;  %p2236_p1 = scmp.ne.s32.totalorder %s2755_s29, %s2235_s16 }
 0x3e8   : > { %v1003_v63 = vpop.f32.mrf.mxu0  ;;  %p2237_p3 = pnand %p2236_p1, %p2506_p2 }
 0x3e9   : > { %v1010_v1 = vmul.f32 %v2092_v62, %v1003_v63  ;;  %v599_v2 = vpop.xlane.xlu1 %598 }
 0x3ea   : > { %2093 = vrcp.f32 %v599_v2  ;;  %v1882_v3 = vpop.f32.mrf.mxu0  ;;  %p2238_p5 = pneg %p2237_p3 }
 0x3eb   : > { %v1763_v4 = vpack.c.bf16 %v1010_v1, %v1010_v1  ;;  %2095 = vrcp.f32 %v1079_v56 }
 0x3ec   : > { %v1006_v5 = vpop.f32.mrf.mxu0  ;;  %2097 = vrcp.f32 %v1199_v10 }
 0x3ed   : > { %1015 = vrot.lane.b32.xlu1 %v1763_v4, %s2343_s14  ;;  %2099 = vrcp.f32 %v1319_v28  ;;  %s2239_s14 = sshll.u32 %s2348_s24, 4  ;;  %s2240_s14 = int_to_ptr.vmem [resolvable:$false] %s2239_s14 }
 0x3ee   : > { %v1883_v6 = vpop.f32.mrf.mxu0  ;;  %2101 = vrcp.f32 %v1439_v19  ;;  %p2242_p0 = scmp.lt.s32.totalorder %s2755_s29, %s2240_s14 }
 0x3f7   : > { %v2094_v7 = vpop.eup %2093 }
 0x3f8   : > { %v649_v8 = vmul.f32 %v2094_v7, %v642_v40  ;;  %v2096_v11 = vpop.eup %2095 }
 0x3f9   : > { %v2098_v18 = vpop.eup %2097 }
 0x3fa   : > { %v650_v9 = vpack.c.bf16 %v649_v8, %v649_v8  ;;  %v2100_v26 = vpop.eup %2099 }
 0x3fb   : > { %v2102_v37 = vpop.eup %2101 }
 0x3fc   : > { %652 = vst.msk [vmem:[#allocation4] sm:$0xf] %vm651_vm7, %v650_v9 }
 0x40d   : > { %v1123_v12 = vpop.f32.mrf.mxu0 }
 0x40e   : > { %v1130_v13 = vmul.f32 %v2096_v11, %v1123_v12 }
 0x40f   : > { %v1894_v14 = vpop.f32.mrf.mxu0 }
 0x410   : > { %v1764_v15 = vpack.c.bf16 %v1130_v13, %v1130_v13 }
 0x411   : > { %v1126_v16 = vpop.f32.mrf.mxu0 }
 0x412   : > { %1135 = vrot.lane.b32.xlu0 %v1764_v15, %s2344_s8  ;;  %s2241_s8 = scalar_lea.vmem %s2240_s14, 256 }
 0x413   : > { %v1895_v17 = vpop.f32.mrf.mxu0  ;;  %p2243_p8 = scmp.lt.s32.totalorder %s2241_s8, %s2235_s16 }
 0x415   : > { %v1243_v20 = vpop.f32.mrf.mxu0  ;;  %p2244_p7 = por %p2243_p8, %p2242_p0 }
 0x416   : > { %v1250_v21 = vmul.f32 %v2098_v18, %v1243_v20 }
 0x417   : > { %v1906_v22 = vpop.f32.mrf.mxu0  ;;  %p2245_p9 = pnand %p2244_p7, %p2238_p5 }
 0x418   : > { %v1765_v23 = vpack.c.bf16 %v1250_v21, %v1250_v21 }
 0x419   : > { %v1246_v24 = vpop.f32.mrf.mxu0 }
 0x41a   : > { %1255 = vrot.lane.b32.xlu1 %v1765_v23, %s2345_s18 }
 0x41b   : > { %v1907_v25 = vpop.f32.mrf.mxu0 }
 0x41d   : > { %v1363_v27 = vpop.f32.mrf.mxu0 }
 0x41e   : > { %v1370_v31 = vmul.f32 %v2100_v26, %v1363_v27 }
 0x41f   : > { %v1918_v32 = vpop.f32.mrf.mxu0 }
 0x420   : > { %v1766_v34 = vpack.c.bf16 %v1370_v31, %v1370_v31 }
 0x421   : > { %v1366_v35 = vpop.f32.mrf.mxu0 }
 0x422   : > { %1375 = vrot.lane.b32.xlu0 %v1766_v34, %s2346_s27 }
 0x423   : > { %v1919_v36 = vpop.f32.mrf.mxu0 }
 0x425   : > { %v1483_v38 = vpop.f32.mrf.mxu0 }
 0x426   : > { %v1490_v39 = vmul.f32 %v2102_v37, %v1483_v38 }
 0x427   : > { %v1930_v40 = vpop.f32.mrf.mxu0 }
 0x428   : > { %v1767_v41 = vpack.c.bf16 %v1490_v39, %v1490_v39 }
 0x429   : > { %v1486_v42 = vpop.f32.mrf.mxu0 }
 0x42a   : > { %1495 = vrot.lane.b32.xlu1 %v1767_v41, %s2347_s2 }
 0x42b   : > { %v1931_v43 = vpop.f32.mrf.mxu0 }
 0x44f   : > { %v776_v44 = vpop.permute.xlu0 %775 }
 0x450   : > { %779 = vst.msk [vmem:[#allocation4] sm:$0xf] %vm778_vm8, %v776_v44 }
 0x457   : > { %v896_v45 = vpop.permute.xlu1 %895 }
 0x458   : > { %899 = vst.msk [vmem:[#allocation4] sm:$0xf] %vm898_vm9, %v896_v45 }
 0x45f   : > { %v1016_v0 = vpop.permute.xlu1 %1015 }
 0x460   : > { %1019 = vst.msk [vmem:[#allocation4] sm:$0xf] %vm1018_vm10, %v1016_v0 }
 0x484   : > { %v1136_v46 = vpop.permute.xlu0 %1135 }
 0x485   : > { %1139 = vst.msk [vmem:[#allocation4] sm:$0xf] %vm1138_vm11, %v1136_v46 }
 0x48c   : > { %v1256_v47 = vpop.permute.xlu1 %1255 }
 0x48d   : > { %1259 = vst.msk [vmem:[#allocation4] sm:$0xf] %vm1258_vm12, %v1256_v47 }
 0x494   : > { %v1376_v48 = vpop.permute.xlu0 %1375 }
 0x495   : > { %1379 = vst.msk [vmem:[#allocation4] sm:$0xf] %vm1378_vm13, %v1376_v48 }
 0x49c   : > { %v1496_v49 = vpop.permute.xlu1 %1495 }
 0x49d   : > { %1499 = vst.msk [vmem:[#allocation4] sm:$0xf] %vm1498_vm14, %v1496_v49 }
 0x4a4   : > { %v1500_v50 = vld [vmem:[#allocation4] sm:$0xf] }
 0x4a5   : > { %1937 = vmatmul.mubr.msk.bf16.vlgmr.msra.gmra.mxu1 %vm361_vm1, %v1500_v50 }
 0x565   : > { %v1561_v52 = vpop.f32.mrf.mxu1 }
 0x566   : > { %v1562_v30 = vadd.f32 %v1753_v51, %v1561_v52 }
 0x567   : > { %v1938_v53 = vpop.f32.mrf.mxu1 }
 0x568   : > { %1567 = vst [vmem:[%s338_s28] sm:$0xff] %v1562_v30 }
 0x569   : > { %v1564_v54 = vpop.f32.mrf.mxu1 }
 0x56a   : > { %2248 = shalt.err (!%p2245_p9)
}
 0x56b   : > { %s2249_s18 = scalar_lea.hbm %s2753_s13, 128  ;;  %s2253_s2 = scalar_lea.hbm %s2807_s6, 256 }
 0x56c   : > { %p2250_p10 = scmp.ne.s32.totalorder %s2753_s13, %s2249_s18  ;;  %p2254_p13 = scmp.lt.s32.totalorder %s2753_s13, %s2807_s6 }
 0x56d   : > { %p2255_p4 = scmp.lt.s32.totalorder %s2253_s2, %s2249_s18 }
 0x56e   : > { %p2251_p12 = pnand %p2250_p10, %p2506_p2 }
 0x56f   : > { %p2256_p11 = por %p2255_p4, %p2254_p13 }
 0x570   : > { %p2252_p6 = pneg %p2251_p12 }
 0x572   : > { %p2257_p1 = pnand %p2256_p11, %p2252_p6 }
 0x574   : > { %2260 = shalt.err (!%p2257_p1)
}
 0x575   : > { %1958 = dma.vmem_to_hbm [thread:$0]  (%p2506_p2), %s2755_s29, 128, %s2753_s13, %s1569_s12   ;;  %v1939_v55 = vpop.f32.mrf.mxu1 }
 0x576 PF: > { %s1595_s1 = sand.u32 1, %s2303_s21   ;;  %p2824_p3 = scmp.ne.s32.totalorder %s2820_s7, 0 }
 0x577   : > { %p2825_p5 = scmp.ge.s32.totalorder %s2323_s26, 2  ;;  %s1596_s3 = scalar_lea.sflag [#allocation7], %s1595_s1 }
 0x579   : > { %p1978_p0 = pnand %p2825_p5, %p2824_p3 }
 0x57b   : > { %p1979_p8 = pneg %p1978_p0 }
 0x57d   : > { %2298 = dma.done.wait (%p1979_p8), %s1596_s3, 128  }
 0x57e   : > { %2300 = vsyncadd (%p1979_p8), %s1596_s3, 4294967168  ;;  %s24_s26 = sadd.s32 1, %s2323_s26   ;;  %s2826_s21 = smov %s2307_s22 }
 0x57f   : > { %p21_p7 = scmp.ge.s32.totalorder %s24_s26, 4   ;;  %s2827_s22 = smov %s2311_s23 }
 0x580   : > { %s2828_s23 = smov %s2511_s30  ;;  %s2829_s24 = smov %s2319_s25 }
 0x581   : > { %s2830_s25 = smov %s2832_s17  ;;  %23 = sbr.rel (!%p21_p7) target bundleno = 12 (0xc), region = 110 }
 0x586   :  { %1601 = vsyncpa [#allocation6], 1 }
 0x587   :  { %1603 = vsyncpa [#allocation6 + $0x1], 1 }
 0x588   :  { %1604 = vsyncpa [#allocation9], 1 }
 0x589   :  { %1605 = vsyncpa [#allocation12], 1 }
 0x58a   :  { %1606 = vsyncpa [#allocation7], 1 }
 0x58b   :  { %1608 = vsyncpa [#allocation7 + $0x1], 1 }

</bundles_post_ra>
